<compile_context>
chip_gen: v7x
topology: tpu7x:2x2x1
jax: 0.10.0
libtpu: 0.0.40
codegen_flags: <defaults>
</compile_context>

<pallas_src>
import functools

import jax
import jax.numpy as jnp
import numpy as np
from jax import lax
from jax.experimental import pallas as pl
from jax.experimental.pallas import tpu as pltpu


def _round_up(x, m):
  return (x + m - 1) // m * m


def bilinear_fusion_kernel(
    v12_ref,
    wh_ref, bh_ref, wz_ref, bz_ref, wo_ref, bo_ref,
    we1a_ref, we1ones_ref, rexp_ref, be1_ref,
    we2_ref, be2_ref,
    out_ref,
    *, d2, enc_dim):
  f32 = jnp.float32

  def dot(a, b):
    return jnp.dot(a, b, preferred_element_type=f32)

  v12 = v12_ref[...]                                        # [TB, dim1_og+dim2_og]

  # ---- fused gates (gate1 || gate2): 3 MXU matmuls instead of 6, K=64 ----
  h12 = jax.nn.relu(dot(v12, wh_ref[...]) + bh_ref[...])    # [TB, d1+d2]
  z12 = dot(v12, wz_ref[...]) + bz_ref[...]                 # [TB, d1+d2]
  g12 = jax.nn.sigmoid(z12) * h12
  o12 = jax.nn.relu(dot(g12, wo_ref[...]) + bo_ref[...])    # o1 = [:, :d1], o2 = [:, d1:]

  # ---- bilinear outer product + encoder1 without materializing the flatten ----
  # A[b, j*E + n] = sum_i o1p[b, i] * We1[i*(d2+1)+j, n]   (i = d1 "ones" row added)
  A = dot(o12, we1a_ref[...]) + we1ones_ref[...]            # [TB, (d2+1)*E]
  # o2e[b, j*E + n] = o2[b, j]  — lane expansion via a constant 0/1 matrix (MXU, no XLU)
  o2e = dot(o12, rexp_ref[...])                             # [TB, d2*E]
  prod = A[:, :d2 * enc_dim] * o2e                          # wide VPU multiply

  # log-depth block tree-sum of the d2 blocks of width enc_dim; every slice offset is a
  # multiple of enc_dim (256) -> lane-tile aligned, pure vreg adds, no serial 32-chain.
  x = prod
  nblocks = d2
  tail = None
  while nblocks > 1:
    if nblocks % 2 == 1:
      last = x[:, (nblocks - 1) * enc_dim: nblocks * enc_dim]
      tail = last if tail is None else tail + last
      nblocks -= 1
    half = nblocks // 2
    x = x[:, :half * enc_dim] + x[:, half * enc_dim: nblocks * enc_dim]
    nblocks = half
  if tail is not None:
    x = x + tail

  # add the j = d2 ("ones") block of A, bias, relu.
  e1 = jax.nn.relu(x + A[:, d2 * enc_dim:(d2 + 1) * enc_dim] + be1_ref[...])

  # TODO(synk): dropout layers are treated as identity (eval-mode semantics).
  # ---- encoder2 (output padded to a lane-dense width; zero columns sliced off in glue) ----
  out_ref[...] = jax.nn.relu(dot(e1, we2_ref[...]) + be2_ref[...])


def bilinear_fusion(vec1, vec2, params, *, d1, d2, enc_dim, mmhid, max_tb=128):
  (wh1, bh1, wz1, bz1, wo1, bo1,
   wh2, bh2, wz2, bz2, wo2, bo2,
   we1, be1, we2, be2) = params
  f32 = jnp.float32
  B = vec1.shape[0]
  dim1_og, dim2_og = vec1.shape[1], vec2.shape[1]

  # ---------------- glue-side packing (done once, outside the kernel) ----------------
  v12 = jnp.concatenate([vec1, vec2], axis=1)                       # [B, dim1_og+dim2_og]

  # fused gate weights: block-diag Wh / Wo, concatenated Wz.
  wh = jnp.zeros((dim1_og + dim2_og, d1 + d2), f32)
  wh = wh.at[:dim1_og, :d1].set(wh1).at[dim1_og:, d1:].set(wh2)
  bh = jnp.concatenate([bh1, bh2], axis=1)
  wz = jnp.concatenate([wz1, wz2], axis=1)
  bz = jnp.concatenate([bz1, bz2], axis=1)
  wo = jnp.zeros((d1 + d2, d1 + d2), f32)
  wo = wo.at[:d1, :d1].set(wo1).at[d1:, d1:].set(wo2)
  bo = jnp.concatenate([bo1, bo2], axis=1)

  # encoder1 weight, re-laid-out so the kernel never flattens:
  # we1_2d[i, j*E + n] = we1[i*(d2+1)+j, n]
  we1_2d = we1.reshape(d1 + 1, (d2 + 1) * enc_dim)
  we1a = jnp.zeros((d1 + d2, (d2 + 1) * enc_dim), f32).at[:d1, :].set(we1_2d[:d1])
  we1ones = we1_2d[d1:d1 + 1]                                       # i = d1 "ones" row

  # constant 0/1 lane-expansion matrix: (o12 @ rexp)[b, j*E + n] = o2[b, j]
  rexp_np = np.zeros((d1 + d2, d2 * enc_dim), np.float32)
  for j in range(d2):
    rexp_np[d1 + j, j * enc_dim:(j + 1) * enc_dim] = 1.0
  rexp = jnp.asarray(rexp_np)

  # lane-dense output: pad mmhid up to a multiple of 128 with zero columns.
  out_pad = _round_up(mmhid, 128)
  we2p = jnp.zeros((enc_dim, out_pad), f32).at[:, :mmhid].set(we2)
  be2p = jnp.zeros((1, out_pad), f32).at[:, :mmhid].set(be2)

  # NOTE: on v6e/v7x, bf16 weights for we1a/rexp/we2p would halve streaming bytes once B
  # is large; kept f32 here to preserve the tight numerical tolerance.

  # batch tiling: whole batch in one block if small, else 128-row tiles (pad batch).
  if B <= max_tb:
    tb, bp = B, B
  else:
    tb = max_tb
    bp = _round_up(B, tb)
  if bp != B:
    v12 = jnp.pad(v12, ((0, bp - B), (0, 0)))

  weights = (wh, bh, wz, bz, wo, bo, we1a, we1ones, rexp, be1, we2p, be2p)

  def wspec(w):
    return pl.BlockSpec(w.shape, lambda i: (0, 0))                  # resident weights

  kernel = functools.partial(bilinear_fusion_kernel, d2=d2, enc_dim=enc_dim)
  out = pl.pallas_call(
      kernel,
      out_shape=jax.ShapeDtypeStruct((bp, out_pad), f32),
      grid=(bp // tb,),
      in_specs=[pl.BlockSpec((tb, v12.shape[1]), lambda i: (i, 0))]
               + [wspec(w) for w in weights],
      out_specs=pl.BlockSpec((tb, out_pad), lambda i: (i, 0)),
      compiler_params=pltpu.CompilerParams(
          dimension_semantics=("parallel",),
          vmem_limit_bytes=48 * 1024 * 1024),
  )(v12, *weights)
  return out[:B, :mmhid]


def init_params(key, dim1_og, dim2_og, d1, d2, enc_dim, mmhid):
  keys = jax.random.split(key, 8)

  def lin(k, fan_in, fan_out):
    bound = 1.0 / float(fan_in) ** 0.5
    kw, kb = jax.random.split(k)
    w = jax.random.uniform(kw, (fan_in, fan_out), jnp.float32, -bound, bound)
    b = jax.random.uniform(kb, (1, fan_out), jnp.float32, -bound, bound)
    return w, b

  wh1, bh1 = lin(keys[0], dim1_og, d1)
  wz1, bz1 = lin(keys[1], dim1_og + dim2_og, d1)
  wo1, bo1 = lin(keys[2], d1, d1)
  wh2, bh2 = lin(keys[3], dim2_og, d2)
  wz2, bz2 = lin(keys[4], dim1_og + dim2_og, d2)
  wo2, bo2 = lin(keys[5], d2, d2)
  we1, be1 = lin(keys[6], (d1 + 1) * (d2 + 1), enc_dim)
  we2, be2 = lin(keys[7], enc_dim, mmhid)
  return (wh1, bh1, wz1, bz1, wo1, bo1,
          wh2, bh2, wz2, bz2, wo2, bo2,
          we1, be1, we2, be2)


def reference(vec1, vec2, params):
  """Pure-JAX mirror of the PyTorch forward (eval mode: dropout = identity)."""
  (wh1, bh1, wz1, bz1, wo1, bo1,
   wh2, bh2, wz2, bz2, wo2, bo2,
   we1, be1, we2, be2) = params

  def mm(a, b):
    return jnp.dot(a, b, precision=lax.Precision.HIGHEST)

  cat = jnp.concatenate([vec1, vec2], axis=1)
  h1 = jax.nn.relu(mm(vec1, wh1) + bh1)
  z1 = mm(cat, wz1) + bz1
  o1 = jax.nn.relu(mm(jax.nn.sigmoid(z1) * h1, wo1) + bo1)
  h2 = jax.nn.relu(mm(vec2, wh2) + bh2)
  z2 = mm(cat, wz2) + bz2
  o2 = jax.nn.relu(mm(jax.nn.sigmoid(z2) * h2, wo2) + bo2)
  b = vec1.shape[0]
  ones = jnp.ones((b, 1), jnp.float32)
  o1p = jnp.concatenate([o1, ones], axis=1)
  o2p = jnp.concatenate([o2, ones], axis=1)
  o12 = (o1p[:, :, None] * o2p[:, None, :]).reshape(b, -1)
  e1 = jax.nn.relu(mm(o12, we1) + be1)
  return jax.nn.relu(mm(e1, we2) + be2)


if __name__ == "__main__":
  # Small shapes consistent with the module: dim1=dim2=32, scale=1, mmhid=64.
  B = 4
  DIM1_OG = DIM2_OG = 32
  D1 = D2 = 32          # dim // scale_dim
  ENC_DIM = 256         # encoder1 output width (hard-coded in the module)
  MMHID = 64

  key = jax.random.PRNGKey(0)
  kp, k1, k2 = jax.random.split(key, 3)
  params = init_params(kp, DIM1_OG, DIM2_OG, D1, D2, ENC_DIM, MMHID)
  vec1 = jax.random.normal(k1, (B, DIM1_OG), jnp.float32)
  vec2 = jax.random.normal(k2, (B, DIM2_OG), jnp.float32)

  out = bilinear_fusion(vec1, vec2, params, d1=D1, d2=D2,
                        enc_dim=ENC_DIM, mmhid=MMHID)
  out = jax.block_until_ready(out)

  ref = reference(vec1, vec2, params)
  assert out.shape == (B, MMHID)
  assert jnp.allclose(out, ref, atol=2e-4, rtol=2e-4), (
      f"max abs diff {jnp.max(jnp.abs(out - ref))}")
  print("KERNEL_OK")
</pallas_src>

<mosaic_0001>
module attributes {stable_mosaic.version = 11 : i64} {
  func.func @bilinear_fusion_kernel(%arg0: i32, %arg1: memref<4x64xf32, #tpu.memory_space<vmem>>, %arg2: memref<64x64xf32, #tpu.memory_space<vmem>>, %arg3: memref<1x64xf32, #tpu.memory_space<vmem>>, %arg4: memref<64x64xf32, #tpu.memory_space<vmem>>, %arg5: memref<1x64xf32, #tpu.memory_space<vmem>>, %arg6: memref<64x64xf32, #tpu.memory_space<vmem>>, %arg7: memref<1x64xf32, #tpu.memory_space<vmem>>, %arg8: memref<64x8448xf32, #tpu.memory_space<vmem>>, %arg9: memref<1x8448xf32, #tpu.memory_space<vmem>>, %arg10: memref<64x8192xf32, #tpu.memory_space<vmem>>, %arg11: memref<1x256xf32, #tpu.memory_space<vmem>>, %arg12: memref<256x128xf32, #tpu.memory_space<vmem>>, %arg13: memref<1x128xf32, #tpu.memory_space<vmem>>, %arg14: memref<4x128xf32, #tpu.memory_space<vmem>>) attributes {dimension_semantics = [#tpu.dimension_semantics<parallel>], iteration_bounds = array<i64: 1>, scalar_prefetch = 0 : i64, scratch_operands = 0 : i64, tpu.core_type = #tpu.core_type<tc>, window_params = [{transform_indices = @transform_0, window_bounds = array<i64: 4, 64>}, {pipeline_mode = #tpu.pipeline_mode<synchronous>, transform_indices = @transform_1, window_bounds = array<i64: 64, 64>}, {pipeline_mode = #tpu.pipeline_mode<synchronous>, transform_indices = @transform_2, window_bounds = array<i64: 1, 64>}, {pipeline_mode = #tpu.pipeline_mode<synchronous>, transform_indices = @transform_3, window_bounds = array<i64: 64, 64>}, {pipeline_mode = #tpu.pipeline_mode<synchronous>, transform_indices = @transform_4, window_bounds = array<i64: 1, 64>}, {pipeline_mode = #tpu.pipeline_mode<synchronous>, transform_indices = @transform_5, window_bounds = array<i64: 64, 64>}, {pipeline_mode = #tpu.pipeline_mode<synchronous>, transform_indices = @transform_6, window_bounds = array<i64: 1, 64>}, {pipeline_mode = #tpu.pipeline_mode<synchronous>, transform_indices = @transform_7, window_bounds = array<i64: 64, 8448>}, {pipeline_mode = #tpu.pipeline_mode<synchronous>, transform_indices = @transform_8, window_bounds = array<i64: 1, 8448>}, {pipeline_mode = #tpu.pipeline_mode<synchronous>, transform_indices = @transform_9, window_bounds = array<i64: 64, 8192>}, {pipeline_mode = #tpu.pipeline_mode<synchronous>, transform_indices = @transform_10, window_bounds = array<i64: 1, 256>}, {pipeline_mode = #tpu.pipeline_mode<synchronous>, transform_indices = @transform_11, window_bounds = array<i64: 256, 128>}, {pipeline_mode = #tpu.pipeline_mode<synchronous>, transform_indices = @transform_12, window_bounds = array<i64: 1, 128>}, {transform_indices = @transform_13, window_bounds = array<i64: 4, 128>}]} {
    %c0 = arith.constant 0 : index
    %c0_0 = arith.constant 0 : index
    %0 = vector.load %arg1[%c0, %c0_0] : memref<4x64xf32, #tpu.memory_space<vmem>>, vector<4x64xf32>
    %c0_1 = arith.constant 0 : index
    %c0_2 = arith.constant 0 : index
    %1 = vector.load %arg2[%c0_1, %c0_2] : memref<64x64xf32, #tpu.memory_space<vmem>>, vector<64x64xf32>
    %cst = arith.constant dense<0.000000e+00> : vector<4x64xf32>
    %2 = tpu.matmul %0, %1, %cst {dimension_numbers = #tpu.dot_dimension_numbers<[1], [0], [0], [1], [0, 0, 1, 1], [], []>} : vector<4x64xf32>, vector<64x64xf32>, vector<4x64xf32> -> vector<4x64xf32>
    %c0_3 = arith.constant 0 : index
    %c0_4 = arith.constant 0 : index
    %3 = vector.load %arg3[%c0_3, %c0_4] : memref<1x64xf32, #tpu.memory_space<vmem>>, vector<1x64xf32>
    %4 = vector.broadcast %3 : vector<1x64xf32> to vector<4x64xf32>
    %5 = arith.addf %2, %4 : vector<4x64xf32>
    %cst_5 = arith.constant 0.000000e+00 : f32
    %6 = vector.broadcast %cst_5 : f32 to vector<4x64xf32>
    %7 = arith.maximumf %5, %6 : vector<4x64xf32>
    %c0_6 = arith.constant 0 : index
    %c0_7 = arith.constant 0 : index
    %8 = vector.load %arg4[%c0_6, %c0_7] : memref<64x64xf32, #tpu.memory_space<vmem>>, vector<64x64xf32>
    %cst_8 = arith.constant dense<0.000000e+00> : vector<4x64xf32>
    %9 = tpu.matmul %0, %8, %cst_8 {dimension_numbers = #tpu.dot_dimension_numbers<[1], [0], [0], [1], [0, 0, 1, 1], [], []>} : vector<4x64xf32>, vector<64x64xf32>, vector<4x64xf32> -> vector<4x64xf32>
    %c0_9 = arith.constant 0 : index
    %c0_10 = arith.constant 0 : index
    %10 = vector.load %arg5[%c0_9, %c0_10] : memref<1x64xf32, #tpu.memory_space<vmem>>, vector<1x64xf32>
    %11 = vector.broadcast %10 : vector<1x64xf32> to vector<4x64xf32>
    %12 = arith.addf %9, %11 : vector<4x64xf32>
    %13 = arith.negf %12 : vector<4x64xf32>
    %14 = math.exp %13 : vector<4x64xf32>
    %cst_11 = arith.constant 1.000000e+00 : f32
    %15 = vector.broadcast %cst_11 : f32 to vector<4x64xf32>
    %16 = arith.addf %15, %14 : vector<4x64xf32>
    %17 = arith.divf %15, %16 : vector<4x64xf32>
    %18 = arith.mulf %17, %7 : vector<4x64xf32>
    %c0_12 = arith.constant 0 : index
    %c0_13 = arith.constant 0 : index
    %19 = vector.load %arg6[%c0_12, %c0_13] : memref<64x64xf32, #tpu.memory_space<vmem>>, vector<64x64xf32>
    %cst_14 = arith.constant dense<0.000000e+00> : vector<4x64xf32>
    %20 = tpu.matmul %18, %19, %cst_14 {dimension_numbers = #tpu.dot_dimension_numbers<[1], [0], [0], [1], [0, 0, 1, 1], [], []>} : vector<4x64xf32>, vector<64x64xf32>, vector<4x64xf32> -> vector<4x64xf32>
    %c0_15 = arith.constant 0 : index
    %c0_16 = arith.constant 0 : index
    %21 = vector.load %arg7[%c0_15, %c0_16] : memref<1x64xf32, #tpu.memory_space<vmem>>, vector<1x64xf32>
    %22 = vector.broadcast %21 : vector<1x64xf32> to vector<4x64xf32>
    %23 = arith.addf %20, %22 : vector<4x64xf32>
    %cst_17 = arith.constant 0.000000e+00 : f32
    %24 = vector.broadcast %cst_17 : f32 to vector<4x64xf32>
    %25 = arith.maximumf %23, %24 : vector<4x64xf32>
    %c0_18 = arith.constant 0 : index
    %c0_19 = arith.constant 0 : index
    %26 = vector.load %arg8[%c0_18, %c0_19] : memref<64x8448xf32, #tpu.memory_space<vmem>>, vector<64x8448xf32>
    %cst_20 = arith.constant dense<0.000000e+00> : vector<4x8448xf32>
    %27 = tpu.matmul %25, %26, %cst_20 {dimension_numbers = #tpu.dot_dimension_numbers<[1], [0], [0], [1], [0, 0, 1, 1], [], []>} : vector<4x64xf32>, vector<64x8448xf32>, vector<4x8448xf32> -> vector<4x8448xf32>
    %c0_21 = arith.constant 0 : index
    %c0_22 = arith.constant 0 : index
    %28 = vector.load %arg9[%c0_21, %c0_22] : memref<1x8448xf32, #tpu.memory_space<vmem>>, vector<1x8448xf32>
    %29 = vector.broadcast %28 : vector<1x8448xf32> to vector<4x8448xf32>
    %30 = arith.addf %27, %29 : vector<4x8448xf32>
    %c0_23 = arith.constant 0 : index
    %c0_24 = arith.constant 0 : index
    %31 = vector.load %arg10[%c0_23, %c0_24] : memref<64x8192xf32, #tpu.memory_space<vmem>>, vector<64x8192xf32>
    %cst_25 = arith.constant dense<0.000000e+00> : vector<4x8192xf32>
    %32 = tpu.matmul %25, %31, %cst_25 {dimension_numbers = #tpu.dot_dimension_numbers<[1], [0], [0], [1], [0, 0, 1, 1], [], []>} : vector<4x64xf32>, vector<64x8192xf32>, vector<4x8192xf32> -> vector<4x8192xf32>
    %33 = vector.extract_strided_slice %30 {offsets = [0, 0], sizes = [4, 8192], strides = [1, 1]} : vector<4x8448xf32> to vector<4x8192xf32>
    %34 = arith.mulf %33, %32 : vector<4x8192xf32>
    %35 = vector.extract_strided_slice %34 {offsets = [0, 0], sizes = [4, 4096], strides = [1, 1]} : vector<4x8192xf32> to vector<4x4096xf32>
    %36 = vector.extract_strided_slice %34 {offsets = [0, 4096], sizes = [4, 4096], strides = [1, 1]} : vector<4x8192xf32> to vector<4x4096xf32>
    %37 = arith.addf %35, %36 : vector<4x4096xf32>
    %38 = vector.extract_strided_slice %37 {offsets = [0, 0], sizes = [4, 2048], strides = [1, 1]} : vector<4x4096xf32> to vector<4x2048xf32>
    %39 = vector.extract_strided_slice %37 {offsets = [0, 2048], sizes = [4, 2048], strides = [1, 1]} : vector<4x4096xf32> to vector<4x2048xf32>
    %40 = arith.addf %38, %39 : vector<4x2048xf32>
    %41 = vector.extract_strided_slice %40 {offsets = [0, 0], sizes = [4, 1024], strides = [1, 1]} : vector<4x2048xf32> to vector<4x1024xf32>
    %42 = vector.extract_strided_slice %40 {offsets = [0, 1024], sizes = [4, 1024], strides = [1, 1]} : vector<4x2048xf32> to vector<4x1024xf32>
    %43 = arith.addf %41, %42 : vector<4x1024xf32>
    %44 = vector.extract_strided_slice %43 {offsets = [0, 0], sizes = [4, 512], strides = [1, 1]} : vector<4x1024xf32> to vector<4x512xf32>
    %45 = vector.extract_strided_slice %43 {offsets = [0, 512], sizes = [4, 512], strides = [1, 1]} : vector<4x1024xf32> to vector<4x512xf32>
    %46 = arith.addf %44, %45 : vector<4x512xf32>
    %47 = vector.extract_strided_slice %46 {offsets = [0, 0], sizes = [4, 256], strides = [1, 1]} : vector<4x512xf32> to vector<4x256xf32>
    %48 = vector.extract_strided_slice %46 {offsets = [0, 256], sizes = [4, 256], strides = [1, 1]} : vector<4x512xf32> to vector<4x256xf32>
    %49 = arith.addf %47, %48 : vector<4x256xf32>
    %50 = vector.extract_strided_slice %30 {offsets = [0, 8192], sizes = [4, 256], strides = [1, 1]} : vector<4x8448xf32> to vector<4x256xf32>
    %51 = arith.addf %49, %50 : vector<4x256xf32>
    %c0_26 = arith.constant 0 : index
    %c0_27 = arith.constant 0 : index
    %52 = vector.load %arg11[%c0_26, %c0_27] : memref<1x256xf32, #tpu.memory_space<vmem>>, vector<1x256xf32>
    %53 = vector.broadcast %52 : vector<1x256xf32> to vector<4x256xf32>
    %54 = arith.addf %51, %53 : vector<4x256xf32>
    %cst_28 = arith.constant 0.000000e+00 : f32
    %55 = vector.broadcast %cst_28 : f32 to vector<4x256xf32>
    %56 = arith.maximumf %54, %55 : vector<4x256xf32>
    %c0_29 = arith.constant 0 : index
    %c0_30 = arith.constant 0 : index
    %57 = vector.load %arg12[%c0_29, %c0_30] : memref<256x128xf32, #tpu.memory_space<vmem>>, vector<256x128xf32>
    %cst_31 = arith.constant dense<0.000000e+00> : vector<4x128xf32>
    %58 = tpu.matmul %56, %57, %cst_31 {dimension_numbers = #tpu.dot_dimension_numbers<[1], [0], [0], [1], [0, 0, 1, 1], [], []>} : vector<4x256xf32>, vector<256x128xf32>, vector<4x128xf32> -> vector<4x128xf32>
    %c0_32 = arith.constant 0 : index
    %c0_33 = arith.constant 0 : index
    %59 = vector.load %arg13[%c0_32, %c0_33] : memref<1x128xf32, #tpu.memory_space<vmem>>, vector<1x128xf32>
    %60 = vector.broadcast %59 : vector<1x128xf32> to vector<4x128xf32>
    %61 = arith.addf %58, %60 : vector<4x128xf32>
    %cst_34 = arith.constant 0.000000e+00 : f32
    %62 = vector.broadcast %cst_34 : f32 to vector<4x128xf32>
    %63 = arith.maximumf %61, %62 : vector<4x128xf32>
    %c0_35 = arith.constant 0 : index
    %c0_36 = arith.constant 0 : index
    %64 = vector.load %arg14[%c0_35, %c0_36] : memref<4x128xf32, #tpu.memory_space<vmem>>, vector<4x128xf32>
    tpu.vector_store %arg14[%c0_35, %c0_36], %63 {strides = array<i32>} : memref<4x128xf32, #tpu.memory_space<vmem>>, vector<4x128xf32>,
    return
  }
  func.func @transform_0(%arg0: i32) -> (i32, i32) {
    %c0_i32 = arith.constant 0 : i32
    %c0_i32_0 = arith.constant 0 : i32
    return %arg0, %c0_i32 : i32, i32
  }
  func.func @transform_1(%arg0: i32) -> (i32, i32) {
    %c0_i32 = arith.constant 0 : i32
    %c0_i32_0 = arith.constant 0 : i32
    %c0_i32_1 = arith.constant 0 : i32
    return %c0_i32, %c0_i32_0 : i32, i32
  }
  func.func @transform_2(%arg0: i32) -> (i32, i32) {
    %c0_i32 = arith.constant 0 : i32
    %c0_i32_0 = arith.constant 0 : i32
    %c0_i32_1 = arith.constant 0 : i32
    return %c0_i32, %c0_i32_0 : i32, i32
  }
  func.func @transform_3(%arg0: i32) -> (i32, i32) {
    %c0_i32 = arith.constant 0 : i32
    %c0_i32_0 = arith.constant 0 : i32
    %c0_i32_1 = arith.constant 0 : i32
    return %c0_i32, %c0_i32_0 : i32, i32
  }
  func.func @transform_4(%arg0: i32) -> (i32, i32) {
    %c0_i32 = arith.constant 0 : i32
    %c0_i32_0 = arith.constant 0 : i32
    %c0_i32_1 = arith.constant 0 : i32
    return %c0_i32, %c0_i32_0 : i32, i32
  }
  func.func @transform_5(%arg0: i32) -> (i32, i32) {
    %c0_i32 = arith.constant 0 : i32
    %c0_i32_0 = arith.constant 0 : i32
    %c0_i32_1 = arith.constant 0 : i32
    return %c0_i32, %c0_i32_0 : i32, i32
  }
  func.func @transform_6(%arg0: i32) -> (i32, i32) {
    %c0_i32 = arith.constant 0 : i32
    %c0_i32_0 = arith.constant 0 : i32
    %c0_i32_1 = arith.constant 0 : i32
    return %c0_i32, %c0_i32_0 : i32, i32
  }
  func.func @transform_7(%arg0: i32) -> (i32, i32) {
    %c0_i32 = arith.constant 0 : i32
    %c0_i32_0 = arith.constant 0 : i32
    %c0_i32_1 = arith.constant 0 : i32
    return %c0_i32, %c0_i32_0 : i32, i32
  }
  func.func @transform_8(%arg0: i32) -> (i32, i32) {
    %c0_i32 = arith.constant 0 : i32
    %c0_i32_0 = arith.constant 0 : i32
    %c0_i32_1 = arith.constant 0 : i32
    return %c0_i32, %c0_i32_0 : i32, i32
  }
  func.func @transform_9(%arg0: i32) -> (i32, i32) {
    %c0_i32 = arith.constant 0 : i32
    %c0_i32_0 = arith.constant 0 : i32
    %c0_i32_1 = arith.constant 0 : i32
    return %c0_i32, %c0_i32_0 : i32, i32
  }
  func.func @transform_10(%arg0: i32) -> (i32, i32) {
    %c0_i32 = arith.constant 0 : i32
    %c0_i32_0 = arith.constant 0 : i32
    %c0_i32_1 = arith.constant 0 : i32
    return %c0_i32, %c0_i32_0 : i32, i32
  }
  func.func @transform_11(%arg0: i32) -> (i32, i32) {
    %c0_i32 = arith.constant 0 : i32
    %c0_i32_0 = arith.constant 0 : i32
    %c0_i32_1 = arith.constant 0 : i32
    return %c0_i32, %c0_i32_0 : i32, i32
  }
  func.func @transform_12(%arg0: i32) -> (i32, i32) {
    %c0_i32 = arith.constant 0 : i32
    %c0_i32_0 = arith.constant 0 : i32
    %c0_i32_1 = arith.constant 0 : i32
    return %c0_i32, %c0_i32_0 : i32, i32
  }
  func.func @transform_13(%arg0: i32) -> (i32, i32) {
    %c0_i32 = arith.constant 0 : i32
    %c0_i32_0 = arith.constant 0 : i32
    return %arg0, %c0_i32 : i32, i32
  }
}

</mosaic_0001>

<bundles_post_ra>
// kernel: tpu_custom_call.1
= control target key start
LH: loop header
LB: loop body
LE: loop exit
PB: predicated region body
PF: predicated region fallthrough
CT: control target
= control target key end

     0   :  { %18 = vsyncpa [#allocation3], 0  ;;  %s9379_s0 = inlined_call_operand.hbm [shape: f32[4,64], index: 0, kind: input, shape index: {}]   ;;  %s9380_s1 = inlined_call_operand.hbm [shape: f32[64,64], index: 1, kind: input, shape index: {}]   ;;  %s9381_s2 = inlined_call_operand.hbm [shape: f32[1,64], index: 2, kind: input, shape index: {}]   ;;  %s9382_s3 = inlined_call_operand.hbm [shape: f32[64,64], index: 3, kind: input, shape index: {}]   ;;  %s9383_s4 = inlined_call_operand.hbm [shape: f32[1,64], index: 4, kind: input, shape index: {}]   ;;  %s9384_s5 = inlined_call_operand.hbm [shape: f32[64,64], index: 5, kind: input, shape index: {}]   ;;  %s9385_s6 = inlined_call_operand.hbm [shape: f32[1,64], index: 6, kind: input, shape index: {}]   ;;  %s9386_s7 = inlined_call_operand.hbm [shape: f32[64,8448], index: 7, kind: input, shape index: {}]   ;;  %s9387_s8 = inlined_call_operand.hbm [shape: f32[1,8448], index: 8, kind: input, shape index: {}]   ;;  %s9388_s9 = inlined_call_operand.hbm [shape: f32[64,8192], index: 9, kind: input, shape index: {}]   ;;  %s9389_s10 = inlined_call_operand.hbm [shape: f32[1,256], index: 10, kind: input, shape index: {}]   ;;  %s9390_s11 = inlined_call_operand.hbm [shape: f32[256,128], index: 11, kind: input, shape index: {}]   ;;  %s9391_s12 = inlined_call_operand.hbm [shape: f32[1,128], index: 12, kind: input, shape index: {}]   ;;  %s9392_s13 = inlined_call_operand.hbm [shape: f32[4,128], index: 13, kind: output, shape index: {}]  }
   0x1   :  { %19 = vsyncpa [#allocation6], 0 }
   0x2   :  { %20 = vsyncpa [#allocation9], 0 }
   0x3   :  { %21 = vsyncpa [#allocation12], 0 }
   0x4   :  { %22 = vsyncpa [#allocation15], 0 }
   0x5   :  { %23 = vsyncpa [#allocation18], 0 }
   0x6   :  { %24 = vsyncpa [#allocation21], 0 }
   0x7   :  { %25 = vsyncpa [#allocation4], 0  ;;  %s8412_s25 = smov [#allocation5]   ;;  %s8088_s29 = scalar_lea.hbm %s9380_s1, 1024 }
   0x8   :  { %s41_s26 = sshll.u32 %s8412_s25, 4  ;;  %p8089_p0 = scmp.ne.s32.totalorder %s9380_s1, %s8088_s29  ;;  %s42_s26 = int_to_ptr.vmem [resolvable:$true] %s41_s26 }
   0x9   :  { %p8092_p1 = scmp.lt.u32.totalorder %s8088_s29, %s9380_s1 }
   0xb   :  { %p8094_p2 = pnand %p8092_p1, %p8089_p0 }
   0xd   :  { %8097 = shalt.err (!%p8094_p2)
}
   0xe   :  { %s8098_s17 = scalar_lea.vmem %s42_s26, 1024  ;;  %p8103_p4 = scmp.lt.s32.totalorder %s42_s26, %s42_s26 }
   0xf   :  { %p8099_p3 = scmp.ne.s32.totalorder %s42_s26, %s8098_s17  ;;  %p8104_p5 = scmp.lt.s32.totalorder %s8098_s17, %s8098_s17 }
  0x11   :  { %p8105_p6 = por %p8104_p5, %p8103_p4 }
  0x13   :  { %p8106_p7 = pnand %p8105_p6, %p8099_p3 }
  0x15   :  { %8109 = shalt.err (!%p8106_p7)
}
  0x16   :  { %s8413_s18 = smov 128   ;;  %s8414_s19 = smov 8  }
  0x17   :  { %47 = dma.hbm_to_vmem [thread:$0]  %s9380_s1, 1024, %s42_s26, [#allocation6], %s8413_s18, %s8413_s18, %s8414_s19  }
  0x18   :  { %s8415_s22 = smov [#allocation8]   ;;  %s8416_s24 = smov [#allocation11]  }
  0x19   :  { %s63_s23 = sshll.u32 %s8415_s22, 4  ;;  %s85_s25 = sshll.u32 %s8416_s24, 4  ;;  %s64_s23 = int_to_ptr.vmem [resolvable:$true] %s63_s23  ;;  %s86_s25 = int_to_ptr.vmem [resolvable:$true] %s85_s25 }
  0x1a   :  { %s8110_s29 = scalar_lea.hbm %s9382_s3, 1024 }
  0x1b   :  { %p8111_p8 = scmp.ne.s32.totalorder %s9382_s3, %s8110_s29  ;;  %p8114_p9 = scmp.lt.u32.totalorder %s8110_s29, %s9382_s3 }
  0x1d   :  { %p8116_p10 = pnand %p8114_p9, %p8111_p8 }
  0x1f   :  { %8119 = shalt.err (!%p8116_p10)
}
  0x20   :  { %s8120_s1 = scalar_lea.vmem %s64_s23, 1024  ;;  %p8125_p12 = scmp.lt.s32.totalorder %s64_s23, %s64_s23 }
  0x21   :  { %p8121_p11 = scmp.ne.s32.totalorder %s64_s23, %s8120_s1  ;;  %p8126_p13 = scmp.lt.s32.totalorder %s8120_s1, %s8120_s1 }
  0x23   :  { %p8127_p0 = por %p8126_p13, %p8125_p12 }
  0x25   :  { %p8128_p1 = pnand %p8127_p0, %p8121_p11 }
  0x27   :  { %8131 = shalt.err (!%p8128_p1)
}
  0x28   :  { %69 = dma.hbm_to_vmem [thread:$0]  %s9382_s3, 1024, %s64_s23, [#allocation9], %s8413_s18, %s8413_s18, %s8414_s19  }
  0x29   :  { %s8132_s22 = scalar_lea.hbm %s9384_s5, 1024 }
  0x2a   :  { %p8133_p2 = scmp.ne.s32.totalorder %s9384_s5, %s8132_s22  ;;  %p8136_p3 = scmp.lt.u32.totalorder %s8132_s22, %s9384_s5 }
  0x2c   :  { %p8138_p4 = pnand %p8136_p3, %p8133_p2 }
  0x2e   :  { %8141 = shalt.err (!%p8138_p4)
}
  0x2f   :  { %s8142_s30 = scalar_lea.vmem %s86_s25, 1024  ;;  %p8147_p6 = scmp.lt.s32.totalorder %s86_s25, %s86_s25 }
  0x30   :  { %p8143_p5 = scmp.ne.s32.totalorder %s86_s25, %s8142_s30  ;;  %p8148_p7 = scmp.lt.s32.totalorder %s8142_s30, %s8142_s30 }
  0x32   :  { %p8149_p8 = por %p8148_p7, %p8147_p6 }
  0x34   :  { %p8150_p9 = pnand %p8149_p8, %p8143_p5 }
  0x36   :  { %8153 = shalt.err (!%p8150_p9)
}
  0x37   :  { %91 = dma.hbm_to_vmem [thread:$0]  %s9384_s5, 1024, %s86_s25, [#allocation12], %s8413_s18, %s8413_s18, %s8414_s19  }
  0x38   :  { %s8417_s14 = smov [#allocation14]   ;;  %s8154_s26 = scalar_lea.hbm %s9386_s7, 67584 }
  0x39   :  { %s107_s15 = sshll.u32 %s8417_s14, 4  ;;  %p8155_p10 = scmp.ne.s32.totalorder %s9386_s7, %s8154_s26  ;;  %s108_s15 = int_to_ptr.vmem [resolvable:$true] %s107_s15 }
  0x3a   :  { %p8158_p11 = scmp.lt.u32.totalorder %s8154_s26, %s9386_s7 }
  0x3c   :  { %p8160_p12 = pnand %p8158_p11, %p8155_p10 }
  0x3e   :  { %8163 = shalt.err (!%p8160_p12)
}
  0x3f   :  { %s8164_s24 = scalar_lea.vmem %s108_s15, 67584  ;;  %p8169_p0 = scmp.lt.s32.totalorder %s108_s15, %s108_s15 }
  0x40   :  { %p8165_p13 = scmp.ne.s32.totalorder %s108_s15, %s8164_s24  ;;  %p8170_p1 = scmp.lt.s32.totalorder %s8164_s24, %s8164_s24 }
  0x42   :  { %p8171_p2 = por %p8170_p1, %p8169_p0 }
  0x44   :  { %p8172_p3 = pnand %p8171_p2, %p8165_p13 }
  0x46   :  { %8175 = shalt.err (!%p8172_p3)
}
  0x47   :  { %s8418_s5 = smov 8448   ;;  %s8419_s25 = smov 528  }
  0x48   :  { %113 = dma.hbm_to_vmem [thread:$0]  %s9386_s7, 67584, %s108_s15, [#allocation15], %s8418_s5, %s8418_s5, %s8419_s25  }
  0x49   :  { %s8420_s29 = smov [#allocation17]   ;;  %s8176_s14 = scalar_lea.hbm %s9388_s9, 65536 }
  0x4a   :  { %s129_s30 = sshll.u32 %s8420_s29, 4  ;;  %p8177_p4 = scmp.ne.s32.totalorder %s9388_s9, %s8176_s14  ;;  %s130_s30 = int_to_ptr.vmem [resolvable:$true] %s129_s30 }
  0x4b   :  { %p8180_p5 = scmp.lt.u32.totalorder %s8176_s14, %s9388_s9 }
  0x4d   :  { %p8182_p6 = pnand %p8180_p5, %p8177_p4 }
  0x4f   :  { %8185 = shalt.err (!%p8182_p6)
}
  0x50   :  { %s8186_s20 = scalar_lea.vmem %s130_s30, 65536  ;;  %p8191_p8 = scmp.lt.s32.totalorder %s130_s30, %s130_s30 }
  0x51   :  { %p8187_p7 = scmp.ne.s32.totalorder %s130_s30, %s8186_s20  ;;  %p8192_p9 = scmp.lt.s32.totalorder %s8186_s20, %s8186_s20 }
  0x53   :  { %p8193_p10 = por %p8192_p9, %p8191_p8 }
  0x55   :  { %p8194_p11 = pnand %p8193_p10, %p8187_p7 }
  0x57   :  { %8197 = shalt.err (!%p8194_p11)
}
  0x58   :  { %s8421_s7 = smov 8192   ;;  %s8422_s15 = smov 512  }
  0x59   :  { %135 = dma.hbm_to_vmem [thread:$0]  %s9388_s9, 65536, %s130_s30, [#allocation18], %s8421_s7, %s8421_s7, %s8422_s15  }
  0x5a   :  { %s8423_s24 = smov [#allocation20]   ;;  %s8424_s25 = smov [#allocation2]  }
  0x5b   :  { %s151_s5 = sshll.u32 %s8423_s24, 4  ;;  %s32_s27 = sshll.u32 %s8424_s25, 4  ;;  %s152_s5 = int_to_ptr.vmem [resolvable:$true] %s151_s5  ;;  %s33_s27 = int_to_ptr.vmem [resolvable:$true] %s32_s27 }
  0x5c   :  { %s8198_s3 = scalar_lea.hbm %s9390_s11, 4096 }
  0x5d   :  { %p8199_p12 = scmp.ne.s32.totalorder %s9390_s11, %s8198_s3  ;;  %p8202_p13 = scmp.lt.u32.totalorder %s8198_s3, %s9390_s11 }
  0x5f   :  { %p8204_p0 = pnand %p8202_p13, %p8199_p12 }
  0x61   :  { %8207 = shalt.err (!%p8204_p0)
}
  0x62   :  { %s8208_s9 = scalar_lea.vmem %s152_s5, 4096  ;;  %p8213_p2 = scmp.lt.s32.totalorder %s152_s5, %s152_s5 }
  0x63   :  { %p8209_p1 = scmp.ne.s32.totalorder %s152_s5, %s8208_s9  ;;  %p8214_p3 = scmp.lt.s32.totalorder %s8208_s9, %s8208_s9 }
  0x65   :  { %p8215_p4 = por %p8214_p3, %p8213_p2 }
  0x67   :  { %p8216_p5 = pnand %p8215_p4, %p8209_p1 }
  0x69   :  { %8219 = shalt.err (!%p8216_p5)
}
  0x6a   :  { %157 = dma.hbm_to_vmem [thread:$0]  %s9390_s11, 4096, %s152_s5, [#allocation21], %s8413_s18, %s8413_s18, %s8414_s19  }
  0x6b   :  { %s8220_s7 = scalar_lea.hbm %s9379_s0, 64 }
  0x6c   :  { %p8221_p6 = scmp.ne.s32.totalorder %s9379_s0, %s8220_s7  ;;  %p8224_p7 = scmp.lt.u32.totalorder %s8220_s7, %s9379_s0 }
  0x6e   :  { %p8226_p8 = pnand %p8224_p7, %p8221_p6 }
  0x70   :  { %8229 = shalt.err (!%p8226_p8)
}
  0x71   :  { %s8230_s25 = scalar_lea.vmem %s33_s27, 64  ;;  %p8235_p10 = scmp.lt.s32.totalorder %s33_s27, %s33_s27 }
  0x72   :  { %p8231_p9 = scmp.ne.s32.totalorder %s33_s27, %s8230_s25  ;;  %p8236_p11 = scmp.lt.s32.totalorder %s8230_s25, %s8230_s25 }
  0x74   :  { %p8237_p12 = por %p8236_p11, %p8235_p10 }
  0x76   :  { %p8238_p13 = pnand %p8237_p12, %p8231_p9 }
  0x78   :  { %8241 = shalt.err (!%p8238_p13)
}
  0x79   :  { %35 = dma.hbm_to_vmem [thread:$0]  %s9379_s0, 64, %s33_s27, [#allocation3]  }
  0x7a   :  { %s8425_s19 = smov [#allocation7]   ;;  %s8426_s28 = smov [#allocation10]  }
  0x7b   :  { %s54_s5 = sshll.u32 %s8425_s19, 4  ;;  %s76_s29 = sshll.u32 %s8426_s28, 4  ;;  %s55_s5 = int_to_ptr.vmem [resolvable:$true] %s54_s5  ;;  %s77_s29 = int_to_ptr.vmem [resolvable:$true] %s76_s29 }
  0x7c   :  { %s8242_s14 = scalar_lea.hbm %s9381_s2, 16 }
  0x7d   :  { %p8243_p0 = scmp.ne.s32.totalorder %s9381_s2, %s8242_s14  ;;  %p8246_p1 = scmp.lt.u32.totalorder %s8242_s14, %s9381_s2 }
  0x7f   :  { %p8248_p2 = pnand %p8246_p1, %p8243_p0 }
  0x81   :  { %8251 = shalt.err (!%p8248_p2)
}
  0x82   :  { %s8252_s0 = scalar_lea.vmem %s55_s5, 16  ;;  %s8256_s27 = scalar_lea.vmem %s55_s5, 32 }
  0x83   :  { %p8253_p3 = scmp.ne.s32.totalorder %s55_s5, %s8252_s0  ;;  %p8257_p4 = scmp.lt.s32.totalorder %s55_s5, %s55_s5 }
  0x84   :  { %p8258_p5 = scmp.lt.s32.totalorder %s8256_s27, %s8252_s0 }
  0x86   :  { %p8259_p6 = por %p8258_p5, %p8257_p4 }
  0x88   :  { %p8260_p7 = pnand %p8259_p6, %p8253_p3 }
  0x8a   :  { %8263 = shalt.err (!%p8260_p7)
}
  0x8b   :  { %57 = dma.hbm_to_vmem [thread:$0]  %s9381_s2, 16, %s55_s5, [#allocation6]  }
  0x8c   :  { %s8264_s15 = scalar_lea.hbm %s9383_s4, 16 }
  0x8d   :  { %p8265_p8 = scmp.ne.s32.totalorder %s9383_s4, %s8264_s15  ;;  %p8268_p9 = scmp.lt.u32.totalorder %s8264_s15, %s9383_s4 }
  0x8f   :  { %p8270_p10 = pnand %p8268_p9, %p8265_p8 }
  0x91   :  { %8273 = shalt.err (!%p8270_p10)
}
  0x92   :  { %s8274_s11 = scalar_lea.vmem %s77_s29, 16  ;;  %s8278_s18 = scalar_lea.vmem %s77_s29, 32 }
  0x93   :  { %p8275_p11 = scmp.ne.s32.totalorder %s77_s29, %s8274_s11  ;;  %p8279_p12 = scmp.lt.s32.totalorder %s77_s29, %s77_s29 }
  0x94   :  { %p8280_p13 = scmp.lt.s32.totalorder %s8278_s18, %s8274_s11 }
  0x96   :  { %p8281_p0 = por %p8280_p13, %p8279_p12 }
  0x98   :  { %p8282_p1 = pnand %p8281_p0, %p8275_p11 }
  0x9a   :  { %8285 = shalt.err (!%p8282_p1)
}
  0x9b   :  { %79 = dma.hbm_to_vmem [thread:$0]  %s9383_s4, 16, %s77_s29, [#allocation9]  }
  0x9c   :  { %s8427_s5 = smov [#allocation13]   ;;  %s8428_s3 = smov [#allocation16]  }
  0x9d   :  { %s98_s28 = sshll.u32 %s8427_s5, 4  ;;  %s120_s23 = sshll.u32 %s8428_s3, 4  ;;  %s99_s28 = int_to_ptr.vmem [resolvable:$true] %s98_s28  ;;  %s121_s23 = int_to_ptr.vmem [resolvable:$true] %s120_s23 }
  0x9e   :  { %s8286_s1 = scalar_lea.hbm %s9385_s6, 16 }
  0x9f   :  { %p8287_p2 = scmp.ne.s32.totalorder %s9385_s6, %s8286_s1  ;;  %p8290_p3 = scmp.lt.u32.totalorder %s8286_s1, %s9385_s6 }
  0xa1   :  { %p8292_p4 = pnand %p8290_p3, %p8287_p2 }
  0xa3   :  { %8295 = shalt.err (!%p8292_p4)
}
  0xa4   :  { %s8296_s4 = scalar_lea.vmem %s99_s28, 16  ;;  %s8300_s29 = scalar_lea.vmem %s99_s28, 32 }
  0xa5   :  { %p8297_p5 = scmp.ne.s32.totalorder %s99_s28, %s8296_s4  ;;  %p8301_p6 = scmp.lt.s32.totalorder %s99_s28, %s99_s28 }
  0xa6   :  { %p8302_p7 = scmp.lt.s32.totalorder %s8300_s29, %s8296_s4 }
  0xa8   :  { %p8303_p8 = por %p8302_p7, %p8301_p6 }
  0xaa   :  { %p8304_p9 = pnand %p8303_p8, %p8297_p5 }
  0xac   :  { %8307 = shalt.err (!%p8304_p9)
}
  0xad   :  { %101 = dma.hbm_to_vmem [thread:$0]  %s9385_s6, 16, %s99_s28, [#allocation12]  }
  0xae   :  { %s8308_s15 = scalar_lea.hbm %s9387_s8, 1056 }
  0xaf   :  { %p8309_p10 = scmp.ne.s32.totalorder %s9387_s8, %s8308_s15  ;;  %p8312_p11 = scmp.lt.u32.totalorder %s8308_s15, %s9387_s8 }
  0xb1   :  { %p8314_p12 = pnand %p8312_p11, %p8309_p10 }
  0xb3   :  { %8317 = shalt.err (!%p8314_p12)
}
  0xb4   :  { %s8318_s11 = scalar_lea.vmem %s121_s23, 1056  ;;  %p8323_p0 = scmp.lt.s32.totalorder %s121_s23, %s121_s23 }
  0xb5   :  { %p8319_p13 = scmp.ne.s32.totalorder %s121_s23, %s8318_s11  ;;  %p8324_p1 = scmp.lt.s32.totalorder %s8318_s11, %s8318_s11 }
  0xb7   :  { %p8325_p2 = por %p8324_p1, %p8323_p0 }
  0xb9   :  { %p8326_p3 = pnand %p8325_p2, %p8319_p13 }
  0xbb   :  { %8329 = shalt.err (!%p8326_p3)
}
  0xbc   :  { %123 = dma.hbm_to_vmem [thread:$0]  %s9387_s8, 1056, %s121_s23, [#allocation15]  }
  0xbd   :  { %s8429_s2 = smov [#allocation19]   ;;  %s8430_s5 = smov [#allocation22]  }
  0xbe   :  { %s142_s19 = sshll.u32 %s8429_s2, 4  ;;  %s164_s28 = sshll.u32 %s8430_s5, 4  ;;  %s143_s19 = int_to_ptr.vmem [resolvable:$true] %s142_s19  ;;  %s165_s28 = int_to_ptr.vmem [resolvable:$true] %s164_s28 }
  0xbf   :  { %s8330_s16 = scalar_lea.hbm %s9389_s10, 32 }
  0xc0   :  { %p8331_p4 = scmp.ne.s32.totalorder %s9389_s10, %s8330_s16  ;;  %p8334_p5 = scmp.lt.u32.totalorder %s8330_s16, %s9389_s10 }
  0xc2   :  { %p8336_p6 = pnand %p8334_p5, %p8331_p4 }
  0xc4   :  { %8339 = shalt.err (!%p8336_p6)
}
  0xc5   :  { %s8340_s8 = scalar_lea.vmem %s143_s19, 32  ;;  %p8345_p8 = scmp.lt.s32.totalorder %s143_s19, %s143_s19 }
  0xc6   :  { %p8341_p7 = scmp.ne.s32.totalorder %s143_s19, %s8340_s8  ;;  %p8346_p9 = scmp.lt.s32.totalorder %s8340_s8, %s8340_s8 }
  0xc8   :  { %p8347_p10 = por %p8346_p9, %p8345_p8 }
  0xca   :  { %p8348_p11 = pnand %p8347_p10, %p8341_p7 }
  0xcc   :  { %8351 = shalt.err (!%p8348_p11)
}
  0xcd   :  { %145 = dma.hbm_to_vmem [thread:$0]  %s9389_s10, 32, %s143_s19, [#allocation18]  }
  0xce   :  { %s8352_s26 = scalar_lea.hbm %s9391_s12, 16 }
  0xcf   :  { %p8353_p12 = scmp.ne.s32.totalorder %s9391_s12, %s8352_s26  ;;  %p8356_p13 = scmp.lt.u32.totalorder %s8352_s26, %s9391_s12 }
  0xd1   :  { %p8358_p0 = pnand %p8356_p13, %p8353_p12 }
  0xd3   :  { %8361 = shalt.err (!%p8358_p0)
}
  0xd4   :  { %s8362_s21 = scalar_lea.vmem %s165_s28, 16  ;;  %s8366_s22 = scalar_lea.vmem %s165_s28, 32 }
  0xd5   :  { %p8363_p1 = scmp.ne.s32.totalorder %s165_s28, %s8362_s21  ;;  %p8367_p2 = scmp.lt.s32.totalorder %s165_s28, %s165_s28 }
  0xd6   :  { %p8368_p3 = scmp.lt.s32.totalorder %s8366_s22, %s8362_s21 }
  0xd8   :  { %p8369_p4 = por %p8368_p3, %p8367_p2 }
  0xda   :  { %p8370_p5 = pnand %p8369_p4, %p8363_p1 }
  0xdc   :  { %8373 = shalt.err (!%p8370_p5)
}
  0xdd   :  { %167 = dma.hbm_to_vmem [thread:$0]  %s9391_s12, 16, %s165_s28, [#allocation21]  }
  0xde   :  { %8396 = dma.done.wait [#allocation3], 64  }
  0xdf   :  { %8397 = vsyncadd [#allocation3], 4294967232 }
  0xe0   :  { %8398 = dma.done.wait [#allocation6], 1040  }
  0xe1   :  { %8399 = vsyncadd [#allocation6], 4294966256 }
  0xe2   :  { %8400 = dma.done.wait [#allocation9], 1040  }
  0xe3   :  { %8401 = vsyncadd [#allocation9], 4294966256 }
  0xe4   :  { %8402 = dma.done.wait [#allocation12], 1040  }
  0xe5   :  { %8403 = vsyncadd [#allocation12], 4294966256 }
  0xe6   :  { %8404 = dma.done.wait [#allocation15], 68640  }
  0xe7   :  { %8405 = vsyncadd [#allocation15], 4294898656 }
  0xe8   :  { %8406 = dma.done.wait [#allocation18], 65568  }
  0xe9   :  { %8407 = vsyncadd [#allocation18], 4294901728 }
  0xea   :  { %8408 = dma.done.wait [#allocation21], 4112  }
  0xeb   :  { %8409 = vsyncadd [#allocation21], 4294963184  ;;  %v8431_v0 = vmov 0.0|0.0   ;;  %vm8432_vm0 = vmmov 0   ;;  %v9393_v1 = vmov 0.0   ;;  %v208_v2 = vld [vmem:[#allocation5] sm:$0xff] }
  0xec   :  { %6953 = vmatprep.subr.bf16.mxu1 %v8431_v0  ;;  %6912 = vmatprep.mubr.msk.f32.mxu1 %vm8432_vm0, %v9393_v1  ;;  %v209_v3 = vld [vmem:[#allocation5 + $0x8] sm:$0xff]  ;;  %v210_v4 = vld [vmem:[#allocation5 + $0x10] sm:$0xff]  ;;  %v211_v6 = vld [vmem:[#allocation5 + $0x18] sm:$0xff]  ;;  %vm223_vm1 = vcmask 523264   ;;  %s8434_s12 = smov [#allocation23]  }
  0xed   :  { %6977 = vmatprep.subr.bf16.mxu0 %v8431_v0  ;;  %6950 = vmatprep.mubr.msk.f32.mxu0 %vm8432_vm0, %v9393_v1  ;;  %v6954_v5 = vpack.c.bf16 %v209_v3, %v208_v2  ;;  %v6957_v7 = vpack.c.bf16 %v211_v6, %v210_v4  ;;  %v212_v8 = vld [vmem:[#allocation5 + $0x20] sm:$0xff]  ;;  %v213_v9 = vld [vmem:[#allocation5 + $0x28] sm:$0xff]  ;;  %v214_v11 = vld [vmem:[#allocation5 + $0x30] sm:$0xff]  ;;  %s6746_s25 = sshll.u32 %s8434_s12, 4  ;;  %s6747_s25 = int_to_ptr.vmem [resolvable:$true] %s6746_s25 }
  0xee   :  { %v6960_v10 = vpack.c.bf16 %v213_v9, %v212_v8  ;;  %v215_v12 = vld [vmem:[#allocation5 + $0x38] sm:$0xff]  ;;  %v298_v14 = vld [vmem:[#allocation8] sm:$0xff]  ;;  %v299_v15 = vld [vmem:[#allocation8 + $0x8] sm:$0xff]  ;;  %s8374_s11 = scalar_lea.vmem %s6747_s25, 64  ;;  %p8379_p7 = scmp.lt.s32.totalorder %s6747_s25, %s6747_s25 }
  0xef   :  { %6955 = vmatpush3.bf16.msra.mxu1 %v6954_v5  ;;  %v6963_v13 = vpack.c.bf16 %v215_v12, %v214_v11  ;;  %v207_v16 = vld [vmem:[#allocation2] sm:$0xf]  ;;  %v6966_v17 = vpack.c.bf16 %v299_v15, %v298_v14  ;;  %v300_v18 = vld [vmem:[#allocation8 + $0x10] sm:$0xff]  ;;  %v302_v21 = vld [vmem:[#allocation8 + $0x20] sm:$0xff]  ;;  %p8375_p6 = scmp.ne.s32.totalorder %s6747_s25, %s8374_s11  ;;  %p8380_p8 = scmp.lt.s32.totalorder %s8374_s11, %s8374_s11 }
  0xf0   :  { %6956 = vmatprep.subr.bf16.mxu1 %v8431_v0  ;;  %v301_v19 = vld [vmem:[#allocation8 + $0x18] sm:$0xff]  ;;  %v303_v22 = vld [vmem:[#allocation8 + $0x28] sm:$0xff]  ;;  %v304_v24 = vld [vmem:[#allocation8 + $0x30] sm:$0xff] }
  0xf1   :  { %v6969_v20 = vpack.c.bf16 %v301_v19, %v300_v18  ;;  %v6972_v23 = vpack.c.bf16 %v303_v22, %v302_v21  ;;  %v305_v25 = vld [vmem:[#allocation8 + $0x38] sm:$0xff]  ;;  %v390_v27 = vld [vmem:[#allocation11] sm:$0xff]  ;;  %v391_v28 = vld [vmem:[#allocation11 + $0x8] sm:$0xff]  ;;  %p8381_p9 = por %p8380_p8, %p8379_p7 }
  0xf2   :  { %v6975_v26 = vpack.c.bf16 %v305_v25, %v304_v24  ;;  %v6978_v29 = vpack.c.bf16 %v391_v28, %v390_v27  ;;  %v392_v30 = vld [vmem:[#allocation11 + $0x10] sm:$0xff]  ;;  %v393_v31 = vld [vmem:[#allocation11 + $0x18] sm:$0xff]  ;;  %v394_v33 = vld [vmem:[#allocation11 + $0x20] sm:$0xff] }
  0xf3   :  { %6958 = vmatpush3.bf16.msra.mxu1 %v6957_v7  ;;  %v6981_v32 = vpack.c.bf16 %v393_v31, %v392_v30  ;;  %v395_v34 = vld [vmem:[#allocation11 + $0x28] sm:$0xff]  ;;  %v396_v36 = vld [vmem:[#allocation11 + $0x30] sm:$0xff]  ;;  %v397_v37 = vld [vmem:[#allocation11 + $0x38] sm:$0xff]  ;;  %p8382_p10 = pnand %p8381_p9, %p8375_p6 }
  0xf4   :  { %6959 = vmatprep.subr.bf16.mxu1 %v8431_v0  ;;  %6979 = vmatpush3.bf16.msra.mxu0 %v6978_v29  ;;  %v6984_v35 = vpack.c.bf16 %v395_v34, %v394_v33  ;;  %v6987_v38 = vpack.c.bf16 %v397_v37, %v396_v36  ;;  %v480_v39 = vld [vmem:[#allocation14 + $0x8] sm:$0xff]  ;;  %v546_v40 = vld [vmem:[#allocation14 + $0x218] sm:$0xff]  ;;  %v479_v44 = vld [vmem:[#allocation14] sm:$0xff] }
  0xf5   :  { %6980 = vmatprep.subr.bf16.mxu0 %v8431_v0  ;;  %v482_v41 = vld [vmem:[#allocation14 + $0x18] sm:$0xff]  ;;  %v6989_v42 = vpack.c.bf16 %v546_v40, %v480_v39  ;;  %v548_v43 = vld [vmem:[#allocation14 + $0x228] sm:$0xff]  ;;  %v545_v45 = vld [vmem:[#allocation14 + $0x210] sm:$0xff] }
  0xf6   :  { %v7005_v46 = vpack.c.bf16 %v548_v43, %v482_v41  ;;  %v6991_v47 = vpack.c.bf16 %v545_v45, %v479_v44  ;;  %v612_v48 = vld [vmem:[#allocation14 + $0x428] sm:$0xff]  ;;  %v678_v49 = vld [vmem:[#allocation14 + $0x638] sm:$0xff]  ;;  %v611_v51 = vld [vmem:[#allocation14 + $0x420] sm:$0xff] }
  0xf7   :  { %6961 = vmatpush3.bf16.msra.mxu1 %v6960_v10  ;;  %v6993_v50 = vpack.c.bf16 %v678_v49, %v612_v48  ;;  %v677_v52 = vld [vmem:[#allocation14 + $0x630] sm:$0xff]  ;;  %v744_v54 = vld [vmem:[#allocation14 + $0x848] sm:$0xff]  ;;  %v810_v55 = vld [vmem:[#allocation14 + $0xa58] sm:$0xff] }
  0xf8   :  { %6962 = vmatprep.subr.bf16.mxu1 %v8431_v0  ;;  %6982 = vmatpush3.bf16.msra.mxu0 %v6981_v32  ;;  %v6995_v53 = vpack.c.bf16 %v677_v52, %v611_v51  ;;  %v6997_v56 = vpack.c.bf16 %v810_v55, %v744_v54  ;;  %v743_v57 = vld [vmem:[#allocation14 + $0x840] sm:$0xff]  ;;  %v809_v58 = vld [vmem:[#allocation14 + $0xa50] sm:$0xff]  ;;  %v6763_v62 = vld [vmem:[#allocation10] ss:$0 sm:$0xff] }
  0xf9   :  { %6983 = vmatprep.subr.bf16.mxu0 %v8431_v0  ;;  %v6999_v59 = vpack.c.bf16 %v809_v58, %v743_v57  ;;  %v6761_v6 = vld [vmem:[#allocation7] ss:$0 sm:$0xff]  ;;  %v481_v8 = vld [vmem:[#allocation14 + $0x10] sm:$0xff]  ;;  %v547_v9 = vld [vmem:[#allocation14 + $0x220] sm:$0xff] }
  0xfa   :  { %v614_v10 = vld [vmem:[#allocation14 + $0x438] sm:$0xff]  ;;  %v680_v11 = vld [vmem:[#allocation14 + $0x648] sm:$0xff]  ;;  %v7007_v14 = vpack.c.bf16 %v547_v9, %v481_v8  ;;  %v679_v18 = vld [vmem:[#allocation14 + $0x640] sm:$0xff] }
  0xfb   :  { %6964 = vmatpush3.bf16.msra.mxu1 %v6963_v13  ;;  %v746_v19 = vld [vmem:[#allocation14 + $0x858] sm:$0xff]  ;;  %v811_v24 = vld [vmem:[#allocation14 + $0xa60] sm:$0xff]  ;;  %v944_v30 = vld [vmem:[#allocation14 + $0xe88] sm:$0xff] }
  0xfc   :  { %6965 = vmatprep.subr.bf16.mxu1 %v8431_v0  ;;  %6985 = vmatpush3.bf16.msra.mxu0 %v6984_v35  ;;  %v942_v27 = vld [vmem:[#allocation14 + $0xe78] sm:$0xff]  ;;  %v875_v31 = vld [vmem:[#allocation14 + $0xc60] sm:$0xff]  ;;  %v941_v32 = vld [vmem:[#allocation14 + $0xe70] sm:$0xff] }
  0xfd   :  { %6986 = vmatprep.subr.bf16.mxu0 %v8431_v0  ;;  %v878_v28 = vld [vmem:[#allocation14 + $0xc78] sm:$0xff]  ;;  %v7003_v34 = vpack.c.bf16 %v941_v32, %v875_v31  ;;  %v877_v35 = vld [vmem:[#allocation14 + $0xc70] sm:$0xff]  ;;  %v943_v36 = vld [vmem:[#allocation14 + $0xe80] sm:$0xff] }
  0xfe   :  { %6913 = vmatmul.mubr.msk.f32.vlgmr.msra.gmra.mrb[0].mxu1 %vm223_vm1, %v207_v16  ;;  %v7017_v33 = vpack.c.bf16 %v944_v30, %v878_v28  ;;  %v7019_v37 = vpack.c.bf16 %v943_v36, %v877_v35  ;;  %v550_v39 = vld [vmem:[#allocation14 + $0x238] sm:$0xff]  ;;  %v483_v45 = vld [vmem:[#allocation14 + $0x20] sm:$0xff]  ;;  %v616_v49 = vld [vmem:[#allocation14 + $0x448] sm:$0xff] }
  0xff   :  { %6967 = vmatpush3.bf16.msra.mxu1 %v6966_v17  ;;  %6931 = vmatprep.mubr.msk.f32.mxu1 %vm8432_vm0, %v9393_v1  ;;  %v613_v17 = vld [vmem:[#allocation14 + $0x430] sm:$0xff]  ;;  %v486_v40 = vld [vmem:[#allocation14 + $0x38] sm:$0xff]  ;;  %v551_v48 = vld [vmem:[#allocation14 + $0x240] sm:$0xff] }
 0x100   :  { %6968 = vmatprep.subr.bf16.mxu1 %v8431_v0  ;;  %6988 = vmatpush3.bf16.msra.mxu0 %v6987_v38  ;;  %v7011_v21 = vpack.c.bf16 %v679_v18, %v613_v17  ;;  %v484_v38 = vld [vmem:[#allocation14 + $0x28] sm:$0xff]  ;;  %v6766_v44 = vld [vmem:[#allocation13] ss:$0 sm:$0xff]  ;;  %v615_v58 = vld [vmem:[#allocation14 + $0x440] sm:$0xff] }
 0x101   :  { %7006 = vmatprep.subr.bf16.mxu0 %v7005_v46  ;;  %v7021_v41 = vpack.c.bf16 %v550_v39, %v484_v38  ;;  %v549_v46 = vld [vmem:[#allocation14 + $0x230] sm:$0xff]  ;;  %v682_v51 = vld [vmem:[#allocation14 + $0x658] sm:$0xff]  ;;  %v747_v8 = vld [vmem:[#allocation14 + $0x860] sm:$0xff] }
 0x102   :  { %v618_v52 = vld [vmem:[#allocation14 + $0x458] sm:$0xff]  ;;  %v813_v9 = vld [vmem:[#allocation14 + $0xa70] sm:$0xff]  ;;  %v948_v17 = vld [vmem:[#allocation14 + $0xea8] sm:$0xff] }
 0x103   :  { %6970 = vmatpush3.bf16.msra.mxu1 %v6969_v20  ;;  %v812_v20 = vld [vmem:[#allocation14 + $0xa68] sm:$0xff]  ;;  %v7031_v18 = vpack.c.bf16 %v813_v9, %v747_v8  ;;  %v490_v28 = vld [vmem:[#allocation14 + $0x58] sm:$0xff]  ;;  %v487_v32 = vld [vmem:[#allocation14 + $0x40] sm:$0xff] }
 0x104   :  { %6971 = vmatprep.subr.bf16.mxu1 %v8431_v0  ;;  %v7013_v22 = vpack.c.bf16 %v812_v20, %v746_v19  ;;  %v879_v20 = vld [vmem:[#allocation14 + $0xc80] sm:$0xff]  ;;  %v489_v36 = vld [vmem:[#allocation14 + $0x50] sm:$0xff]  ;;  %v620_v38 = vld [vmem:[#allocation14 + $0x468] sm:$0xff] }
 0x105   :  { %v686_v39 = vld [vmem:[#allocation14 + $0x678] sm:$0xff] }
 0x107   :  { %6973 = vmatpush3.bf16.msra.mxu1 %v6972_v23  ;;  %v745_v23 = vld [vmem:[#allocation14 + $0x850] sm:$0xff] }
 0x108   :  { %6974 = vmatprep.subr.bf16.mxu1 %v8431_v0  ;;  %v7015_v25 = vpack.c.bf16 %v811_v24, %v745_v23  ;;  %v881_v24 = vld [vmem:[#allocation14 + $0xc90] sm:$0xff] }
 0x10b   :  { %6976 = vmatpush3.bf16.msra.mxu1 %v6975_v26  ;;  %v876_v26 = vld [vmem:[#allocation14 + $0xc68] sm:$0xff] }
 0x10c   :  { %6990 = vmatprep.subr.bf16.mxu1 %v6989_v42  ;;  %v7001_v29 = vpack.c.bf16 %v942_v27, %v876_v26  ;;  %v552_v42 = vld [vmem:[#allocation14 + $0x248] sm:$0xff]  ;;  %v554_v27 = vld [vmem:[#allocation14 + $0x258] sm:$0xff] }
 0x10d   :  { %v7037_v43 = vpack.c.bf16 %v552_v42, %v486_v40  ;;  %v488_v26 = vld [vmem:[#allocation14 + $0x48] sm:$0xff]  ;;  %v622_v40 = vld [vmem:[#allocation14 + $0x478] sm:$0xff] }
 0x10e   :  { %6932 = vmatmul.mubr.msk.f32.vlgmr.msra.gmra.mrb[2].mxu1 %vm223_vm1, %v207_v16  ;;  %v7009_v16 = vpack.c.bf16 %v680_v11, %v614_v10 }
 0x10f   :  { %1422 = vmatprep.mubr.f32.mxu1 %v9393_v1  ;;  %6992 = vmatpush1.bf16.msra.mxu1 %v6991_v47  ;;  %v485_v47 = vld [vmem:[#allocation14 + $0x30] sm:$0xff] }
 0x110   :  { %6994 = vmatprep.subr.bf16.mxu1 %v6993_v50  ;;  %v7039_v57 = vpack.c.bf16 %v551_v48, %v485_v47  ;;  %v621_v48 = vld [vmem:[#allocation14 + $0x470] sm:$0xff] }
 0x113   :  { %6996 = vmatpush1.bf16.msra.mxu1 %v6995_v53  ;;  %v684_v53 = vld [vmem:[#allocation14 + $0x668] sm:$0xff] }
 0x114   :  { %6998 = vmatprep.subr.bf16.mxu1 %v6997_v56  ;;  %v7023_v56 = vpack.c.bf16 %v549_v46, %v483_v45  ;;  %v685_v45 = vld [vmem:[#allocation14 + $0x670] sm:$0xff]  ;;  %v7057_v46 = vpack.c.bf16 %v686_v39, %v620_v38  ;;  %v758_v38 = vld [vmem:[#allocation14 + $0x8b8] sm:$0xff]  ;;  %v824_v39 = vld [vmem:[#allocation14 + $0xac8] sm:$0xff] }
 0x117   :  { %7000 = vmatpush1.bf16.msra.mxu1 %v6999_v59  ;;  %v681_v59 = vld [vmem:[#allocation14 + $0x650] sm:$0xff] }
 0x118   :  { %7002 = vmatprep.subr.bf16.mxu1 %v7001_v29  ;;  %v556_v29 = vld [vmem:[#allocation14 + $0x268] sm:$0xff] }
 0x119   :  { %v7069_v35 = vpack.c.bf16 %v556_v29, %v490_v28 }
 0x11b   :  { %7004 = vmatpush1.bf16.msra.mxu1 %v7003_v34  ;;  %v7053_v34 = vpack.c.bf16 %v554_v27, %v488_v26  ;;  %v626_v26 = vld [vmem:[#allocation14 + $0x498] sm:$0xff]  ;;  %v692_v27 = vld [vmem:[#allocation14 + $0x6a8] sm:$0xff] }
 0x11c   :  { %7022 = vmatprep.subr.bf16.mxu1 %v7021_v41  ;;  %v688_v41 = vld [vmem:[#allocation14 + $0x688] sm:$0xff] }
 0x11d   :  { %v7073_v47 = vpack.c.bf16 %v688_v41, %v622_v40 }
 0x1d1   :  { %v293_v60 = vpop.f32.mrb[0].mxu1 }
 0x1d2   :  { %v6914_v61 = vpop.f32.mrb[1].mxu1  ;;  %v294_v7 = vadd.f32 %v6761_v6, %v293_v60  ;;  %v7027_v6 = vpack.c.bf16 %v681_v59, %v615_v58 }
 0x1d3   :  { %v7025_v61 = vpack.c.bf16 %v682_v51, %v616_v49  ;;  %v687_v49 = vld [vmem:[#allocation14 + $0x680] sm:$0xff]  ;;  %v818_v51 = vld [vmem:[#allocation14 + $0xa98] sm:$0xff] }
 0x1d4   :  { %v297_v12 = vmax.f32 %v294_v7, 0.0 }
 0x1e1   :  { %v379_v63 = vpop.f32.mrb[2].mxu1 }
 0x1e2   :  { %v380_v0 = vadd.f32 %v6763_v62, %v379_v63  ;;  %v6933_v2 = vpop.f32.mrb[3].mxu1  ;;  %v7041_v62 = vpack.c.bf16 %v684_v53, %v618_v52  ;;  %v617_v63 = vld [vmem:[#allocation14 + $0x450] sm:$0xff]  ;;  %v754_v52 = vld [vmem:[#allocation14 + $0x898] sm:$0xff]  ;;  %v820_v53 = vld [vmem:[#allocation14 + $0xaa8] sm:$0xff] }
 0x1e3   :  { %v748_v2 = vld [vmem:[#allocation14 + $0x868] sm:$0xff]  ;;  %v7077_v59 = vpack.c.bf16 %v820_v53, %v754_v52 }
 0x1e4   :  { %v6765_v3 = vmul.f32 -1.442695, %v380_v0  ;;  %v683_v0 = vld [vmem:[#allocation14 + $0x660] sm:$0xff] }
 0x1e5   :  { %v7043_v7 = vpack.c.bf16 %v683_v0, %v617_v63  ;;  %v884_v63 = vld [vmem:[#allocation14 + $0xca8] sm:$0xff]  ;;  %v950_v0 = vld [vmem:[#allocation14 + $0xeb8] sm:$0xff] }
 0x1e6   :  { %8084 = vpow2.f32 %v6765_v3  ;;  %v814_v3 = vld [vmem:[#allocation14 + $0xa78] sm:$0xff]  ;;  %v7065_v8 = vpack.c.bf16 %v950_v0, %v884_v63  ;;  %v564_v0 = vld [vmem:[#allocation14 + $0x2a8] sm:$0xff] }
 0x1e7   :  { %v7029_v10 = vpack.c.bf16 %v814_v3, %v748_v2  ;;  %v886_v2 = vld [vmem:[#allocation14 + $0xcb8] sm:$0xff]  ;;  %v952_v3 = vld [vmem:[#allocation14 + $0xec8] sm:$0xff] }
 0x1e8   :  { %v7081_v9 = vpack.c.bf16 %v952_v3, %v886_v2  ;;  %v498_v63 = vld [vmem:[#allocation14 + $0x98] sm:$0xff] }
 0x1f0   :  { %v8085_v4 = vpop.eup %8084 }
 0x1f1   :  { %v386_v5 = vadd.f32 1.0, %v8085_v4  ;;  %v750_v4 = vld [vmem:[#allocation14 + $0x878] sm:$0xff] }
 0x1f3   :  { %8086 = vrcp.f32 %v386_v5  ;;  %v816_v5 = vld [vmem:[#allocation14 + $0xa88] sm:$0xff] }
 0x1f4   :  { %v7045_v11 = vpack.c.bf16 %v816_v5, %v750_v4 }
 0x1fd   :  { %v8087_v13 = vpop.eup %8086 }
 0x1fe   :  { %v389_v15 = vmul.f32 %v8087_v13, %v297_v12  ;;  %v749_v12 = vld [vmem:[#allocation14 + $0x870] sm:$0xff]  ;;  %v815_v13 = vld [vmem:[#allocation14 + $0xa80] sm:$0xff] }
 0x1ff   :  { %v7047_v19 = vpack.c.bf16 %v815_v13, %v749_v12  ;;  %v492_v12 = vld [vmem:[#allocation14 + $0x68] sm:$0xff]  ;;  %v558_v13 = vld [vmem:[#allocation14 + $0x278] sm:$0xff] }
 0x200   :  { %6951 = vmatmul.mubr.msk.f32.vlgmr.msra.gmra.mrb[0].mxu0 %vm223_vm1, %v389_v15  ;;  %v946_v15 = vld [vmem:[#allocation14 + $0xe98] sm:$0xff] }
 0x201   :  { %7008 = vmatpush1.bf16.msra.mxu0 %v7007_v14  ;;  %1493 = vmatprep.mubr.f32.mxu0 %v9393_v1  ;;  %v880_v14 = vld [vmem:[#allocation14 + $0xc88] sm:$0xff] }
 0x202   :  { %7010 = vmatprep.subr.bf16.mxu0 %v7009_v16  ;;  %v882_v16 = vld [vmem:[#allocation14 + $0xc98] sm:$0xff] }
 0x203   :  { %v7049_v23 = vpack.c.bf16 %v948_v17, %v882_v16 }
 0x205   :  { %7012 = vmatpush1.bf16.msra.mxu0 %v7011_v21  ;;  %v945_v21 = vld [vmem:[#allocation14 + $0xe90] sm:$0xff] }
 0x206   :  { %7014 = vmatprep.subr.bf16.mxu0 %v7013_v22  ;;  %v7033_v22 = vpack.c.bf16 %v946_v15, %v880_v14  ;;  %v7035_v30 = vpack.c.bf16 %v945_v21, %v879_v20  ;;  %v494_v14 = vld [vmem:[#allocation14 + $0x78] sm:$0xff]  ;;  %v560_v15 = vld [vmem:[#allocation14 + $0x288] sm:$0xff]  ;;  %v7085_v20 = vpack.c.bf16 %v558_v13, %v492_v12 }
 0x207   :  { %v7101_v21 = vpack.c.bf16 %v560_v15, %v494_v14  ;;  %v630_v12 = vld [vmem:[#allocation14 + $0x4b8] sm:$0xff]  ;;  %v696_v13 = vld [vmem:[#allocation14 + $0x6c8] sm:$0xff] }
 0x209   :  { %7016 = vmatpush1.bf16.msra.mxu0 %v7015_v25  ;;  %v947_v25 = vld [vmem:[#allocation14 + $0xea0] sm:$0xff] }
 0x20a   :  { %7018 = vmatprep.subr.bf16.mxu0 %v7017_v33  ;;  %v7051_v31 = vpack.c.bf16 %v947_v25, %v881_v24  ;;  %v553_v33 = vld [vmem:[#allocation14 + $0x250] sm:$0xff]  ;;  %v624_v24 = vld [vmem:[#allocation14 + $0x488] sm:$0xff]  ;;  %v690_v25 = vld [vmem:[#allocation14 + $0x698] sm:$0xff] }
 0x20b   :  { %v7055_v42 = vpack.c.bf16 %v553_v33, %v487_v32  ;;  %v7089_v32 = vpack.c.bf16 %v690_v25, %v624_v24  ;;  %v7105_v33 = vpack.c.bf16 %v692_v27, %v626_v26  ;;  %v762_v24 = vld [vmem:[#allocation14 + $0x8d8] sm:$0xff]  ;;  %v828_v25 = vld [vmem:[#allocation14 + $0xae8] sm:$0xff] }
 0x20d   :  { %7020 = vmatpush1.bf16.msra.mxu0 %v7019_v37  ;;  %v555_v37 = vld [vmem:[#allocation14 + $0x260] sm:$0xff] }
 0x20e   :  { %7038 = vmatprep.subr.bf16.mxu0 %v7037_v43  ;;  %v7071_v43 = vpack.c.bf16 %v555_v37, %v489_v36  ;;  %v756_v36 = vld [vmem:[#allocation14 + $0x8a8] sm:$0xff]  ;;  %v822_v37 = vld [vmem:[#allocation14 + $0xab8] sm:$0xff] }
 0x2d3   :  { %v474_v50 = vpop.f32.mrb[0].mxu0 }
 0x2d4   :  { %v475_v54 = vadd.f32 %v6766_v44, %v474_v50  ;;  %v6952_v55 = vpop.f32.mrb[1].mxu0  ;;  %v619_v44 = vld [vmem:[#allocation14 + $0x460] sm:$0xff]  ;;  %v752_v50 = vld [vmem:[#allocation14 + $0x888] sm:$0xff] }
 0x2d5   :  { %v7075_v55 = vpack.c.bf16 %v687_v49, %v621_v48  ;;  %v7061_v58 = vpack.c.bf16 %v818_v51, %v752_v50  ;;  %v888_v48 = vld [vmem:[#allocation14 + $0xcc8] sm:$0xff]  ;;  %v954_v49 = vld [vmem:[#allocation14 + $0xed8] sm:$0xff] }
 0x2d6   :  { %v8696_v60 = vmax.f32 %v475_v54, 0.0  ;;  %v7059_v54 = vpack.c.bf16 %v685_v45, %v619_v44  ;;  %v7093_v44 = vpack.c.bf16 %v822_v37, %v756_v36  ;;  %v7109_v45 = vpack.c.bf16 %v824_v39, %v758_v38  ;;  %v890_v50 = vld [vmem:[#allocation14 + $0xcd8] sm:$0xff]  ;;  %v956_v51 = vld [vmem:[#allocation14 + $0xee8] sm:$0xff] }
 0x2d7   :  { %v894_v36 = vld [vmem:[#allocation14 + $0xcf8] sm:$0xff]  ;;  %v960_v37 = vld [vmem:[#allocation14 + $0xf08] sm:$0xff] }
 0x2d8   :  { %6768 = vmatmul.mubr.msk.f32.vlgmr.msra.gmra.mrb[4].mxu1 %vm223_vm1, %v8696_v60  ;;  %6769 = vmatmul.mubr.msk.f32.vlgmr.msra.gmra.mrb[2].mxu0 %vm223_vm1, %v8696_v60 }
 0x2d9   :  { %7024 = vmatpush1.bf16.msra.mxu1 %v7023_v56  ;;  %7040 = vmatpush1.bf16.msra.mxu0 %v7039_v57  ;;  %v751_v56 = vld [vmem:[#allocation14 + $0x880] sm:$0xff]  ;;  %v817_v57 = vld [vmem:[#allocation14 + $0xa90] sm:$0xff] }
 0x2da   :  { %7026 = vmatprep.subr.bf16.mxu1 %v7025_v61  ;;  %7042 = vmatprep.subr.bf16.mxu0 %v7041_v62  ;;  %v753_v61 = vld [vmem:[#allocation14 + $0x890] sm:$0xff]  ;;  %v819_v62 = vld [vmem:[#allocation14 + $0xaa0] sm:$0xff]  ;;  %v7063_v4 = vpack.c.bf16 %v817_v57, %v751_v56  ;;  %v7097_v56 = vpack.c.bf16 %v954_v49, %v888_v48  ;;  %v7113_v57 = vpack.c.bf16 %v956_v51, %v890_v50  ;;  %v502_v48 = vld [vmem:[#allocation14 + $0xb8] sm:$0xff] }
 0x2db   :  { %1564 = vmatprep.mubr.f32.mxu1 %v9393_v1  ;;  %1635 = vmatprep.mubr.f32.mxu0 %v9393_v1  ;;  %v7079_v5 = vpack.c.bf16 %v819_v62, %v753_v61  ;;  %v496_v61 = vld [vmem:[#allocation14 + $0x88] sm:$0xff]  ;;  %v562_v62 = vld [vmem:[#allocation14 + $0x298] sm:$0xff] }
 0x2dc   :  { %v568_v49 = vld [vmem:[#allocation14 + $0x2c8] sm:$0xff] }
 0x2dd   :  { %7028 = vmatpush1.bf16.msra.mxu1 %v7027_v6  ;;  %7044 = vmatpush1.bf16.msra.mxu0 %v7043_v7  ;;  %v883_v6 = vld [vmem:[#allocation14 + $0xca0] sm:$0xff]  ;;  %v949_v7 = vld [vmem:[#allocation14 + $0xeb0] sm:$0xff] }
 0x2de   :  { %7030 = vmatprep.subr.bf16.mxu1 %v7029_v10  ;;  %7046 = vmatprep.subr.bf16.mxu0 %v7045_v11  ;;  %v885_v10 = vld [vmem:[#allocation14 + $0xcb0] sm:$0xff]  ;;  %v951_v11 = vld [vmem:[#allocation14 + $0xec0] sm:$0xff]  ;;  %v7067_v16 = vpack.c.bf16 %v949_v7, %v883_v6  ;;  %v7117_v6 = vpack.c.bf16 %v562_v62, %v496_v61  ;;  %v7133_v7 = vpack.c.bf16 %v564_v0, %v498_v63  ;;  %v634_v61 = vld [vmem:[#allocation14 + $0x4d8] sm:$0xff] }
 0x2df   :  { %v7083_v17 = vpack.c.bf16 %v951_v11, %v885_v10  ;;  %v628_v10 = vld [vmem:[#allocation14 + $0x4a8] sm:$0xff]  ;;  %v694_v11 = vld [vmem:[#allocation14 + $0x6b8] sm:$0xff] }
 0x2e0   :  { %v700_v62 = vld [vmem:[#allocation14 + $0x6e8] sm:$0xff] }
 0x2e1   :  { %7032 = vmatpush1.bf16.msra.mxu1 %v7031_v18  ;;  %7048 = vmatpush1.bf16.msra.mxu0 %v7047_v19  ;;  %v491_v18 = vld [vmem:[#allocation14 + $0x60] sm:$0xff]  ;;  %v557_v19 = vld [vmem:[#allocation14 + $0x270] sm:$0xff] }
 0x2e2   :  { %7034 = vmatprep.subr.bf16.mxu1 %v7033_v22  ;;  %7050 = vmatprep.subr.bf16.mxu0 %v7049_v23  ;;  %v493_v22 = vld [vmem:[#allocation14 + $0x70] sm:$0xff]  ;;  %v559_v23 = vld [vmem:[#allocation14 + $0x280] sm:$0xff]  ;;  %v7087_v28 = vpack.c.bf16 %v557_v19, %v491_v18  ;;  %v7121_v18 = vpack.c.bf16 %v694_v11, %v628_v10  ;;  %v7137_v19 = vpack.c.bf16 %v696_v13, %v630_v12  ;;  %v766_v10 = vld [vmem:[#allocation14 + $0x8f8] sm:$0xff] }
 0x2e3   :  { %v7103_v29 = vpack.c.bf16 %v559_v23, %v493_v22  ;;  %v760_v22 = vld [vmem:[#allocation14 + $0x8c8] sm:$0xff]  ;;  %v826_v23 = vld [vmem:[#allocation14 + $0xad8] sm:$0xff] }
 0x2e4   :  { %v832_v11 = vld [vmem:[#allocation14 + $0xb08] sm:$0xff] }
 0x2e5   :  { %7036 = vmatpush1.bf16.msra.mxu1 %v7035_v30  ;;  %7052 = vmatpush1.bf16.msra.mxu0 %v7051_v31  ;;  %v623_v30 = vld [vmem:[#allocation14 + $0x480] sm:$0xff]  ;;  %v689_v31 = vld [vmem:[#allocation14 + $0x690] sm:$0xff] }
 0x2e6   :  { %7054 = vmatprep.subr.bf16.mxu1 %v7053_v34  ;;  %7070 = vmatprep.subr.bf16.mxu0 %v7069_v35  ;;  %v625_v34 = vld [vmem:[#allocation14 + $0x490] sm:$0xff]  ;;  %v691_v35 = vld [vmem:[#allocation14 + $0x6a0] sm:$0xff]  ;;  %v7091_v40 = vpack.c.bf16 %v689_v31, %v623_v30  ;;  %v7125_v30 = vpack.c.bf16 %v826_v23, %v760_v22  ;;  %v7141_v31 = vpack.c.bf16 %v828_v25, %v762_v24  ;;  %v898_v22 = vld [vmem:[#allocation14 + $0xd18] sm:$0xff] }
 0x2e7   :  { %v7107_v41 = vpack.c.bf16 %v691_v35, %v625_v34  ;;  %v892_v34 = vld [vmem:[#allocation14 + $0xce8] sm:$0xff]  ;;  %v958_v35 = vld [vmem:[#allocation14 + $0xef8] sm:$0xff] }
 0x2e8   :  { %6770 = vmatmul.mubr.msk.f32.vlgmr.msra.gmra.mrb[6].mxu1 %vm223_vm1, %v8696_v60  ;;  %6771 = vmatmul.mubr.msk.f32.vlgmr.msra.gmra.mrb[4].mxu0 %vm223_vm1, %v8696_v60  ;;  %v964_v23 = vld [vmem:[#allocation14 + $0xf28] sm:$0xff] }
 0x2e9   :  { %7056 = vmatpush1.bf16.msra.mxu1 %v7055_v42  ;;  %7072 = vmatpush1.bf16.msra.mxu0 %v7071_v43  ;;  %v755_v42 = vld [vmem:[#allocation14 + $0x8a0] sm:$0xff]  ;;  %v821_v43 = vld [vmem:[#allocation14 + $0xab0] sm:$0xff] }
 0x2ea   :  { %7058 = vmatprep.subr.bf16.mxu1 %v7057_v46  ;;  %7074 = vmatprep.subr.bf16.mxu0 %v7073_v47  ;;  %v757_v46 = vld [vmem:[#allocation14 + $0x8b0] sm:$0xff]  ;;  %v823_v47 = vld [vmem:[#allocation14 + $0xac0] sm:$0xff]  ;;  %v7095_v52 = vpack.c.bf16 %v821_v43, %v755_v42  ;;  %v7129_v42 = vpack.c.bf16 %v958_v35, %v892_v34  ;;  %v7145_v43 = vpack.c.bf16 %v960_v37, %v894_v36  ;;  %v506_v34 = vld [vmem:[#allocation14 + $0xd8] sm:$0xff] }
 0x2eb   :  { %1706 = vmatprep.mubr.f32.mxu1 %v9393_v1  ;;  %1777 = vmatprep.mubr.f32.mxu0 %v9393_v1  ;;  %v7111_v53 = vpack.c.bf16 %v823_v47, %v757_v46  ;;  %v500_v46 = vld [vmem:[#allocation14 + $0xa8] sm:$0xff]  ;;  %v566_v47 = vld [vmem:[#allocation14 + $0x2b8] sm:$0xff] }
 0x2ec   :  { %v572_v35 = vld [vmem:[#allocation14 + $0x2e8] sm:$0xff] }
 0x2ed   :  { %7060 = vmatpush1.bf16.msra.mxu1 %v7059_v54  ;;  %7076 = vmatpush1.bf16.msra.mxu0 %v7075_v55  ;;  %v887_v54 = vld [vmem:[#allocation14 + $0xcc0] sm:$0xff]  ;;  %v953_v55 = vld [vmem:[#allocation14 + $0xed0] sm:$0xff] }
 0x2ee   :  { %7062 = vmatprep.subr.bf16.mxu1 %v7061_v58  ;;  %7078 = vmatprep.subr.bf16.mxu0 %v7077_v59  ;;  %v889_v58 = vld [vmem:[#allocation14 + $0xcd0] sm:$0xff]  ;;  %v955_v59 = vld [vmem:[#allocation14 + $0xee0] sm:$0xff]  ;;  %v7099_v2 = vpack.c.bf16 %v953_v55, %v887_v54  ;;  %v7149_v54 = vpack.c.bf16 %v566_v47, %v500_v46  ;;  %v7165_v55 = vpack.c.bf16 %v568_v49, %v502_v48  ;;  %v638_v46 = vld [vmem:[#allocation14 + $0x4f8] sm:$0xff] }
 0x2ef   :  { %v7115_v3 = vpack.c.bf16 %v955_v59, %v889_v58  ;;  %v632_v58 = vld [vmem:[#allocation14 + $0x4c8] sm:$0xff]  ;;  %v698_v59 = vld [vmem:[#allocation14 + $0x6d8] sm:$0xff] }
 0x2f0   :  { %v704_v47 = vld [vmem:[#allocation14 + $0x708] sm:$0xff] }
 0x2f1   :  { %7064 = vmatpush1.bf16.msra.mxu1 %v7063_v4  ;;  %7080 = vmatpush1.bf16.msra.mxu0 %v7079_v5  ;;  %v495_v4 = vld [vmem:[#allocation14 + $0x80] sm:$0xff]  ;;  %v561_v5 = vld [vmem:[#allocation14 + $0x290] sm:$0xff] }
 0x2f2   :  { %7066 = vmatprep.subr.bf16.mxu1 %v7065_v8  ;;  %7082 = vmatprep.subr.bf16.mxu0 %v7081_v9  ;;  %v497_v8 = vld [vmem:[#allocation14 + $0x90] sm:$0xff]  ;;  %v563_v9 = vld [vmem:[#allocation14 + $0x2a0] sm:$0xff]  ;;  %v7119_v14 = vpack.c.bf16 %v561_v5, %v495_v4  ;;  %v7153_v4 = vpack.c.bf16 %v698_v59, %v632_v58  ;;  %v7169_v5 = vpack.c.bf16 %v700_v62, %v634_v61  ;;  %v770_v58 = vld [vmem:[#allocation14 + $0x918] sm:$0xff] }
 0x2f3   :  { %v7135_v15 = vpack.c.bf16 %v563_v9, %v497_v8  ;;  %v764_v8 = vld [vmem:[#allocation14 + $0x8e8] sm:$0xff]  ;;  %v830_v9 = vld [vmem:[#allocation14 + $0xaf8] sm:$0xff] }
 0x2f4   :  { %v836_v59 = vld [vmem:[#allocation14 + $0xb28] sm:$0xff] }
 0x2f5   :  { %7068 = vmatpush1.bf16.msra.mxu1 %v7067_v16  ;;  %7084 = vmatpush1.bf16.msra.mxu0 %v7083_v17  ;;  %v627_v16 = vld [vmem:[#allocation14 + $0x4a0] sm:$0xff]  ;;  %v693_v17 = vld [vmem:[#allocation14 + $0x6b0] sm:$0xff] }
 0x2f6   :  { %7086 = vmatprep.subr.bf16.mxu1 %v7085_v20  ;;  %7102 = vmatprep.subr.bf16.mxu0 %v7101_v21  ;;  %v629_v20 = vld [vmem:[#allocation14 + $0x4b0] sm:$0xff]  ;;  %v695_v21 = vld [vmem:[#allocation14 + $0x6c0] sm:$0xff]  ;;  %v7123_v26 = vpack.c.bf16 %v693_v17, %v627_v16  ;;  %v7157_v16 = vpack.c.bf16 %v830_v9, %v764_v8  ;;  %v7173_v17 = vpack.c.bf16 %v832_v11, %v766_v10  ;;  %v902_v8 = vld [vmem:[#allocation14 + $0xd38] sm:$0xff] }
 0x2f7   :  { %v7139_v27 = vpack.c.bf16 %v695_v21, %v629_v20  ;;  %v896_v20 = vld [vmem:[#allocation14 + $0xd08] sm:$0xff]  ;;  %v962_v21 = vld [vmem:[#allocation14 + $0xf18] sm:$0xff] }
 0x2f8   :  { %6772 = vmatmul.mubr.msk.f32.vlgmr.msra.gmra.mrb[8].mxu1 %vm223_vm1, %v8696_v60  ;;  %6773 = vmatmul.mubr.msk.f32.vlgmr.msra.gmra.mrb[6].mxu0 %vm223_vm1, %v8696_v60  ;;  %v968_v9 = vld [vmem:[#allocation14 + $0xf48] sm:$0xff] }
 0x2f9   :  { %7088 = vmatpush1.bf16.msra.mxu1 %v7087_v28  ;;  %7104 = vmatpush1.bf16.msra.mxu0 %v7103_v29  ;;  %v759_v28 = vld [vmem:[#allocation14 + $0x8c0] sm:$0xff]  ;;  %v825_v29 = vld [vmem:[#allocation14 + $0xad0] sm:$0xff] }
 0x2fa   :  { %7090 = vmatprep.subr.bf16.mxu1 %v7089_v32  ;;  %7106 = vmatprep.subr.bf16.mxu0 %v7105_v33  ;;  %v761_v32 = vld [vmem:[#allocation14 + $0x8d0] sm:$0xff]  ;;  %v827_v33 = vld [vmem:[#allocation14 + $0xae0] sm:$0xff]  ;;  %v7127_v38 = vpack.c.bf16 %v825_v29, %v759_v28  ;;  %v7161_v28 = vpack.c.bf16 %v962_v21, %v896_v20  ;;  %v7177_v29 = vpack.c.bf16 %v964_v23, %v898_v22  ;;  %v510_v20 = vld [vmem:[#allocation14 + $0xf8] sm:$0xff] }
 0x2fb   :  { %1848 = vmatprep.mubr.f32.mxu1 %v9393_v1  ;;  %1919 = vmatprep.mubr.f32.mxu0 %v9393_v1  ;;  %v7143_v39 = vpack.c.bf16 %v827_v33, %v761_v32  ;;  %v504_v32 = vld [vmem:[#allocation14 + $0xc8] sm:$0xff]  ;;  %v570_v33 = vld [vmem:[#allocation14 + $0x2d8] sm:$0xff] }
 0x2fc   :  { %v576_v21 = vld [vmem:[#allocation14 + $0x308] sm:$0xff] }
 0x2fd   :  { %7092 = vmatpush1.bf16.msra.mxu1 %v7091_v40  ;;  %7108 = vmatpush1.bf16.msra.mxu0 %v7107_v41  ;;  %v891_v40 = vld [vmem:[#allocation14 + $0xce0] sm:$0xff]  ;;  %v957_v41 = vld [vmem:[#allocation14 + $0xef0] sm:$0xff] }
 0x2fe   :  { %7094 = vmatprep.subr.bf16.mxu1 %v7093_v44  ;;  %7110 = vmatprep.subr.bf16.mxu0 %v7109_v45  ;;  %v893_v44 = vld [vmem:[#allocation14 + $0xcf0] sm:$0xff]  ;;  %v959_v45 = vld [vmem:[#allocation14 + $0xf00] sm:$0xff]  ;;  %v7131_v50 = vpack.c.bf16 %v957_v41, %v891_v40  ;;  %v7181_v40 = vpack.c.bf16 %v570_v33, %v504_v32  ;;  %v7197_v41 = vpack.c.bf16 %v572_v35, %v506_v34  ;;  %v642_v32 = vld [vmem:[#allocation14 + $0x518] sm:$0xff] }
 0x2ff   :  { %v7147_v51 = vpack.c.bf16 %v959_v45, %v893_v44  ;;  %v636_v44 = vld [vmem:[#allocation14 + $0x4e8] sm:$0xff]  ;;  %v702_v45 = vld [vmem:[#allocation14 + $0x6f8] sm:$0xff] }
 0x300   :  { %v708_v33 = vld [vmem:[#allocation14 + $0x728] sm:$0xff] }
 0x301   :  { %7096 = vmatpush1.bf16.msra.mxu1 %v7095_v52  ;;  %7112 = vmatpush1.bf16.msra.mxu0 %v7111_v53  ;;  %v499_v52 = vld [vmem:[#allocation14 + $0xa0] sm:$0xff]  ;;  %v565_v53 = vld [vmem:[#allocation14 + $0x2b0] sm:$0xff] }
 0x302   :  { %7098 = vmatprep.subr.bf16.mxu1 %v7097_v56  ;;  %7114 = vmatprep.subr.bf16.mxu0 %v7113_v57  ;;  %v501_v56 = vld [vmem:[#allocation14 + $0xb0] sm:$0xff]  ;;  %v567_v57 = vld [vmem:[#allocation14 + $0x2c0] sm:$0xff]  ;;  %v7151_v63 = vpack.c.bf16 %v565_v53, %v499_v52  ;;  %v7185_v52 = vpack.c.bf16 %v702_v45, %v636_v44  ;;  %v7201_v53 = vpack.c.bf16 %v704_v47, %v638_v46  ;;  %v774_v44 = vld [vmem:[#allocation14 + $0x938] sm:$0xff] }
 0x303   :  { %v7167_v0 = vpack.c.bf16 %v567_v57, %v501_v56  ;;  %v768_v56 = vld [vmem:[#allocation14 + $0x908] sm:$0xff]  ;;  %v834_v57 = vld [vmem:[#allocation14 + $0xb18] sm:$0xff] }
 0x304   :  { %v840_v45 = vld [vmem:[#allocation14 + $0xb48] sm:$0xff] }
 0x305   :  { %7100 = vmatpush1.bf16.msra.mxu1 %v7099_v2  ;;  %7116 = vmatpush1.bf16.msra.mxu0 %v7115_v3  ;;  %v631_v2 = vld [vmem:[#allocation14 + $0x4c0] sm:$0xff]  ;;  %v697_v3 = vld [vmem:[#allocation14 + $0x6d0] sm:$0xff] }
 0x306   :  { %7118 = vmatprep.subr.bf16.mxu1 %v7117_v6  ;;  %7134 = vmatprep.subr.bf16.mxu0 %v7133_v7  ;;  %v633_v6 = vld [vmem:[#allocation14 + $0x4d0] sm:$0xff]  ;;  %v699_v7 = vld [vmem:[#allocation14 + $0x6e0] sm:$0xff]  ;;  %v7155_v12 = vpack.c.bf16 %v697_v3, %v631_v2  ;;  %v7189_v2 = vpack.c.bf16 %v834_v57, %v768_v56  ;;  %v7205_v3 = vpack.c.bf16 %v836_v59, %v770_v58  ;;  %v906_v56 = vld [vmem:[#allocation14 + $0xd58] sm:$0xff] }
 0x307   :  { %v7171_v13 = vpack.c.bf16 %v699_v7, %v633_v6  ;;  %v900_v6 = vld [vmem:[#allocation14 + $0xd28] sm:$0xff]  ;;  %v966_v7 = vld [vmem:[#allocation14 + $0xf38] sm:$0xff] }
 0x308   :  { %6774 = vmatmul.mubr.msk.f32.vlgmr.msra.gmra.mrb[10].mxu1 %vm223_vm1, %v8696_v60  ;;  %6775 = vmatmul.mubr.msk.f32.vlgmr.msra.gmra.mrb[8].mxu0 %vm223_vm1, %v8696_v60  ;;  %v972_v57 = vld [vmem:[#allocation14 + $0xf68] sm:$0xff] }
 0x309   :  { %7120 = vmatpush1.bf16.msra.mxu1 %v7119_v14  ;;  %7136 = vmatpush1.bf16.msra.mxu0 %v7135_v15  ;;  %v763_v14 = vld [vmem:[#allocation14 + $0x8e0] sm:$0xff]  ;;  %v829_v15 = vld [vmem:[#allocation14 + $0xaf0] sm:$0xff] }
 0x30a   :  { %7122 = vmatprep.subr.bf16.mxu1 %v7121_v18  ;;  %7138 = vmatprep.subr.bf16.mxu0 %v7137_v19  ;;  %v765_v18 = vld [vmem:[#allocation14 + $0x8f0] sm:$0xff]  ;;  %v831_v19 = vld [vmem:[#allocation14 + $0xb00] sm:$0xff]  ;;  %v7159_v24 = vpack.c.bf16 %v829_v15, %v763_v14  ;;  %v7193_v14 = vpack.c.bf16 %v966_v7, %v900_v6  ;;  %v7209_v15 = vpack.c.bf16 %v968_v9, %v902_v8  ;;  %v514_v6 = vld [vmem:[#allocation14 + $0x118] sm:$0xff] }
 0x30b   :  { %1990 = vmatprep.mubr.f32.mxu1 %v9393_v1  ;;  %2061 = vmatprep.mubr.f32.mxu0 %v9393_v1  ;;  %v7175_v25 = vpack.c.bf16 %v831_v19, %v765_v18  ;;  %v508_v18 = vld [vmem:[#allocation14 + $0xe8] sm:$0xff]  ;;  %v574_v19 = vld [vmem:[#allocation14 + $0x2f8] sm:$0xff] }
 0x30c   :  { %v580_v7 = vld [vmem:[#allocation14 + $0x328] sm:$0xff] }
 0x30d   :  { %7124 = vmatpush1.bf16.msra.mxu1 %v7123_v26  ;;  %7140 = vmatpush1.bf16.msra.mxu0 %v7139_v27  ;;  %v895_v26 = vld [vmem:[#allocation14 + $0xd00] sm:$0xff]  ;;  %v961_v27 = vld [vmem:[#allocation14 + $0xf10] sm:$0xff] }
 0x30e   :  { %7126 = vmatprep.subr.bf16.mxu1 %v7125_v30  ;;  %7142 = vmatprep.subr.bf16.mxu0 %v7141_v31  ;;  %v897_v30 = vld [vmem:[#allocation14 + $0xd10] sm:$0xff]  ;;  %v963_v31 = vld [vmem:[#allocation14 + $0xf20] sm:$0xff]  ;;  %v7163_v36 = vpack.c.bf16 %v961_v27, %v895_v26  ;;  %v7213_v26 = vpack.c.bf16 %v574_v19, %v508_v18  ;;  %v7229_v27 = vpack.c.bf16 %v576_v21, %v510_v20  ;;  %v646_v18 = vld [vmem:[#allocation14 + $0x538] sm:$0xff] }
 0x30f   :  { %v7179_v37 = vpack.c.bf16 %v963_v31, %v897_v30  ;;  %v640_v30 = vld [vmem:[#allocation14 + $0x508] sm:$0xff]  ;;  %v706_v31 = vld [vmem:[#allocation14 + $0x718] sm:$0xff] }
 0x310   :  { %v712_v19 = vld [vmem:[#allocation14 + $0x748] sm:$0xff] }
 0x311   :  { %7128 = vmatpush1.bf16.msra.mxu1 %v7127_v38  ;;  %7144 = vmatpush1.bf16.msra.mxu0 %v7143_v39  ;;  %v503_v38 = vld [vmem:[#allocation14 + $0xc0] sm:$0xff]  ;;  %v569_v39 = vld [vmem:[#allocation14 + $0x2d0] sm:$0xff] }
 0x312   :  { %7130 = vmatprep.subr.bf16.mxu1 %v7129_v42  ;;  %7146 = vmatprep.subr.bf16.mxu0 %v7145_v43  ;;  %v505_v42 = vld [vmem:[#allocation14 + $0xd0] sm:$0xff]  ;;  %v571_v43 = vld [vmem:[#allocation14 + $0x2e0] sm:$0xff]  ;;  %v7183_v48 = vpack.c.bf16 %v569_v39, %v503_v38  ;;  %v7217_v38 = vpack.c.bf16 %v706_v31, %v640_v30  ;;  %v7233_v39 = vpack.c.bf16 %v708_v33, %v642_v32  ;;  %v778_v30 = vld [vmem:[#allocation14 + $0x958] sm:$0xff] }
 0x313   :  { %v7199_v49 = vpack.c.bf16 %v571_v43, %v505_v42  ;;  %v772_v42 = vld [vmem:[#allocation14 + $0x928] sm:$0xff]  ;;  %v838_v43 = vld [vmem:[#allocation14 + $0xb38] sm:$0xff] }
 0x314   :  { %v844_v31 = vld [vmem:[#allocation14 + $0xb68] sm:$0xff] }
 0x315   :  { %7132 = vmatpush1.bf16.msra.mxu1 %v7131_v50  ;;  %7148 = vmatpush1.bf16.msra.mxu0 %v7147_v51  ;;  %v635_v50 = vld [vmem:[#allocation14 + $0x4e0] sm:$0xff]  ;;  %v701_v51 = vld [vmem:[#allocation14 + $0x6f0] sm:$0xff] }
 0x316   :  { %7150 = vmatprep.subr.bf16.mxu1 %v7149_v54  ;;  %7166 = vmatprep.subr.bf16.mxu0 %v7165_v55  ;;  %v637_v54 = vld [vmem:[#allocation14 + $0x4f0] sm:$0xff]  ;;  %v703_v55 = vld [vmem:[#allocation14 + $0x700] sm:$0xff]  ;;  %v7187_v61 = vpack.c.bf16 %v701_v51, %v635_v50  ;;  %v7221_v50 = vpack.c.bf16 %v838_v43, %v772_v42  ;;  %v7237_v51 = vpack.c.bf16 %v840_v45, %v774_v44  ;;  %v910_v42 = vld [vmem:[#allocation14 + $0xd78] sm:$0xff] }
 0x317   :  { %v7203_v62 = vpack.c.bf16 %v703_v55, %v637_v54  ;;  %v904_v54 = vld [vmem:[#allocation14 + $0xd48] sm:$0xff]  ;;  %v970_v55 = vld [vmem:[#allocation14 + $0xf58] sm:$0xff] }
 0x318   :  { %6776 = vmatmul.mubr.msk.f32.vlgmr.msra.gmra.mrb[12].mxu1 %vm223_vm1, %v8696_v60  ;;  %6777 = vmatmul.mubr.msk.f32.vlgmr.msra.gmra.mrb[10].mxu0 %vm223_vm1, %v8696_v60  ;;  %v976_v43 = vld [vmem:[#allocation14 + $0xf88] sm:$0xff] }
 0x319   :  { %7152 = vmatpush1.bf16.msra.mxu1 %v7151_v63  ;;  %7168 = vmatpush1.bf16.msra.mxu0 %v7167_v0  ;;  %v767_v63 = vld [vmem:[#allocation14 + $0x900] sm:$0xff]  ;;  %v833_v0 = vld [vmem:[#allocation14 + $0xb10] sm:$0xff] }
 0x31a   :  { %7154 = vmatprep.subr.bf16.mxu1 %v7153_v4  ;;  %7170 = vmatprep.subr.bf16.mxu0 %v7169_v5  ;;  %v769_v4 = vld [vmem:[#allocation14 + $0x910] sm:$0xff]  ;;  %v835_v5 = vld [vmem:[#allocation14 + $0xb20] sm:$0xff]  ;;  %v7191_v10 = vpack.c.bf16 %v833_v0, %v767_v63  ;;  %v7225_v63 = vpack.c.bf16 %v970_v55, %v904_v54  ;;  %v7241_v0 = vpack.c.bf16 %v972_v57, %v906_v56  ;;  %v518_v54 = vld [vmem:[#allocation14 + $0x138] sm:$0xff] }
 0x31b   :  { %2132 = vmatprep.mubr.f32.mxu1 %v9393_v1  ;;  %2203 = vmatprep.mubr.f32.mxu0 %v9393_v1  ;;  %v7207_v11 = vpack.c.bf16 %v835_v5, %v769_v4  ;;  %v512_v4 = vld [vmem:[#allocation14 + $0x108] sm:$0xff]  ;;  %v578_v5 = vld [vmem:[#allocation14 + $0x318] sm:$0xff] }
 0x31c   :  { %v584_v55 = vld [vmem:[#allocation14 + $0x348] sm:$0xff] }
 0x31d   :  { %7156 = vmatpush1.bf16.msra.mxu1 %v7155_v12  ;;  %7172 = vmatpush1.bf16.msra.mxu0 %v7171_v13  ;;  %v899_v12 = vld [vmem:[#allocation14 + $0xd20] sm:$0xff]  ;;  %v965_v13 = vld [vmem:[#allocation14 + $0xf30] sm:$0xff] }
 0x31e   :  { %7158 = vmatprep.subr.bf16.mxu1 %v7157_v16  ;;  %7174 = vmatprep.subr.bf16.mxu0 %v7173_v17  ;;  %v901_v16 = vld [vmem:[#allocation14 + $0xd30] sm:$0xff]  ;;  %v967_v17 = vld [vmem:[#allocation14 + $0xf40] sm:$0xff]  ;;  %v7195_v22 = vpack.c.bf16 %v965_v13, %v899_v12  ;;  %v7245_v12 = vpack.c.bf16 %v578_v5, %v512_v4  ;;  %v7261_v13 = vpack.c.bf16 %v580_v7, %v514_v6  ;;  %v650_v4 = vld [vmem:[#allocation14 + $0x558] sm:$0xff] }
 0x31f   :  { %v7211_v23 = vpack.c.bf16 %v967_v17, %v901_v16  ;;  %v644_v16 = vld [vmem:[#allocation14 + $0x528] sm:$0xff]  ;;  %v710_v17 = vld [vmem:[#allocation14 + $0x738] sm:$0xff] }
 0x320   :  { %v716_v5 = vld [vmem:[#allocation14 + $0x768] sm:$0xff] }
 0x321   :  { %7160 = vmatpush1.bf16.msra.mxu1 %v7159_v24  ;;  %7176 = vmatpush1.bf16.msra.mxu0 %v7175_v25  ;;  %v507_v24 = vld [vmem:[#allocation14 + $0xe0] sm:$0xff]  ;;  %v573_v25 = vld [vmem:[#allocation14 + $0x2f0] sm:$0xff] }
 0x322   :  { %7162 = vmatprep.subr.bf16.mxu1 %v7161_v28  ;;  %7178 = vmatprep.subr.bf16.mxu0 %v7177_v29  ;;  %v509_v28 = vld [vmem:[#allocation14 + $0xf0] sm:$0xff]  ;;  %v575_v29 = vld [vmem:[#allocation14 + $0x300] sm:$0xff]  ;;  %v7215_v34 = vpack.c.bf16 %v573_v25, %v507_v24  ;;  %v7249_v24 = vpack.c.bf16 %v710_v17, %v644_v16  ;;  %v7265_v25 = vpack.c.bf16 %v712_v19, %v646_v18  ;;  %v782_v16 = vld [vmem:[#allocation14 + $0x978] sm:$0xff] }
 0x323   :  { %v7231_v35 = vpack.c.bf16 %v575_v29, %v509_v28  ;;  %v776_v28 = vld [vmem:[#allocation14 + $0x948] sm:$0xff]  ;;  %v842_v29 = vld [vmem:[#allocation14 + $0xb58] sm:$0xff] }
 0x324   :  { %v848_v17 = vld [vmem:[#allocation14 + $0xb88] sm:$0xff] }
 0x325   :  { %7164 = vmatpush1.bf16.msra.mxu1 %v7163_v36  ;;  %7180 = vmatpush1.bf16.msra.mxu0 %v7179_v37  ;;  %v639_v36 = vld [vmem:[#allocation14 + $0x500] sm:$0xff]  ;;  %v705_v37 = vld [vmem:[#allocation14 + $0x710] sm:$0xff] }
 0x326   :  { %7182 = vmatprep.subr.bf16.mxu1 %v7181_v40  ;;  %7198 = vmatprep.subr.bf16.mxu0 %v7197_v41  ;;  %v641_v40 = vld [vmem:[#allocation14 + $0x510] sm:$0xff]  ;;  %v707_v41 = vld [vmem:[#allocation14 + $0x720] sm:$0xff]  ;;  %v7219_v46 = vpack.c.bf16 %v705_v37, %v639_v36  ;;  %v7253_v36 = vpack.c.bf16 %v842_v29, %v776_v28  ;;  %v7269_v37 = vpack.c.bf16 %v844_v31, %v778_v30  ;;  %v914_v28 = vld [vmem:[#allocation14 + $0xd98] sm:$0xff] }
 0x327   :  { %v7235_v47 = vpack.c.bf16 %v707_v41, %v641_v40  ;;  %v908_v40 = vld [vmem:[#allocation14 + $0xd68] sm:$0xff]  ;;  %v974_v41 = vld [vmem:[#allocation14 + $0xf78] sm:$0xff] }
 0x328   :  { %6778 = vmatmul.mubr.msk.f32.vlgmr.msra.gmra.mrb[14].mxu1 %vm223_vm1, %v8696_v60  ;;  %6779 = vmatmul.mubr.msk.f32.vlgmr.msra.gmra.mrb[12].mxu0 %vm223_vm1, %v8696_v60  ;;  %v980_v29 = vld [vmem:[#allocation14 + $0xfa8] sm:$0xff] }
 0x329   :  { %7184 = vmatpush1.bf16.msra.mxu1 %v7183_v48  ;;  %7200 = vmatpush1.bf16.msra.mxu0 %v7199_v49  ;;  %v771_v48 = vld [vmem:[#allocation14 + $0x920] sm:$0xff]  ;;  %v837_v49 = vld [vmem:[#allocation14 + $0xb30] sm:$0xff] }
 0x32a   :  { %7186 = vmatprep.subr.bf16.mxu1 %v7185_v52  ;;  %7202 = vmatprep.subr.bf16.mxu0 %v7201_v53  ;;  %v773_v52 = vld [vmem:[#allocation14 + $0x930] sm:$0xff]  ;;  %v839_v53 = vld [vmem:[#allocation14 + $0xb40] sm:$0xff]  ;;  %v7223_v58 = vpack.c.bf16 %v837_v49, %v771_v48  ;;  %v7257_v48 = vpack.c.bf16 %v974_v41, %v908_v40  ;;  %v7273_v49 = vpack.c.bf16 %v976_v43, %v910_v42  ;;  %v522_v40 = vld [vmem:[#allocation14 + $0x158] sm:$0xff] }
 0x32b   :  { %2274 = vmatprep.mubr.f32.mxu1 %v9393_v1  ;;  %2345 = vmatprep.mubr.f32.mxu0 %v9393_v1  ;;  %v7239_v59 = vpack.c.bf16 %v839_v53, %v773_v52  ;;  %v516_v52 = vld [vmem:[#allocation14 + $0x128] sm:$0xff]  ;;  %v582_v53 = vld [vmem:[#allocation14 + $0x338] sm:$0xff] }
 0x32c   :  { %v588_v41 = vld [vmem:[#allocation14 + $0x368] sm:$0xff] }
 0x32d   :  { %7188 = vmatpush1.bf16.msra.mxu1 %v7187_v61  ;;  %7204 = vmatpush1.bf16.msra.mxu0 %v7203_v62  ;;  %v903_v61 = vld [vmem:[#allocation14 + $0xd40] sm:$0xff]  ;;  %v969_v62 = vld [vmem:[#allocation14 + $0xf50] sm:$0xff] }
 0x32e   :  { %7190 = vmatprep.subr.bf16.mxu1 %v7189_v2  ;;  %7206 = vmatprep.subr.bf16.mxu0 %v7205_v3  ;;  %v905_v2 = vld [vmem:[#allocation14 + $0xd50] sm:$0xff]  ;;  %v971_v3 = vld [vmem:[#allocation14 + $0xf60] sm:$0xff]  ;;  %v7227_v8 = vpack.c.bf16 %v969_v62, %v903_v61  ;;  %v7277_v61 = vpack.c.bf16 %v582_v53, %v516_v52  ;;  %v7293_v62 = vpack.c.bf16 %v584_v55, %v518_v54  ;;  %v654_v52 = vld [vmem:[#allocation14 + $0x578] sm:$0xff] }
 0x32f   :  { %v7243_v9 = vpack.c.bf16 %v971_v3, %v905_v2  ;;  %v648_v2 = vld [vmem:[#allocation14 + $0x548] sm:$0xff]  ;;  %v714_v3 = vld [vmem:[#allocation14 + $0x758] sm:$0xff] }
 0x330   :  { %v720_v53 = vld [vmem:[#allocation14 + $0x788] sm:$0xff] }
 0x331   :  { %7192 = vmatpush1.bf16.msra.mxu1 %v7191_v10  ;;  %7208 = vmatpush1.bf16.msra.mxu0 %v7207_v11  ;;  %v511_v10 = vld [vmem:[#allocation14 + $0x100] sm:$0xff]  ;;  %v577_v11 = vld [vmem:[#allocation14 + $0x310] sm:$0xff] }
 0x332   :  { %7194 = vmatprep.subr.bf16.mxu1 %v7193_v14  ;;  %7210 = vmatprep.subr.bf16.mxu0 %v7209_v15  ;;  %v513_v14 = vld [vmem:[#allocation14 + $0x110] sm:$0xff]  ;;  %v579_v15 = vld [vmem:[#allocation14 + $0x320] sm:$0xff]  ;;  %v7247_v20 = vpack.c.bf16 %v577_v11, %v511_v10  ;;  %v7281_v10 = vpack.c.bf16 %v714_v3, %v648_v2  ;;  %v7297_v11 = vpack.c.bf16 %v716_v5, %v650_v4  ;;  %v786_v2 = vld [vmem:[#allocation14 + $0x998] sm:$0xff] }
 0x333   :  { %v7263_v21 = vpack.c.bf16 %v579_v15, %v513_v14  ;;  %v780_v14 = vld [vmem:[#allocation14 + $0x968] sm:$0xff]  ;;  %v846_v15 = vld [vmem:[#allocation14 + $0xb78] sm:$0xff] }
 0x334   :  { %v852_v3 = vld [vmem:[#allocation14 + $0xba8] sm:$0xff] }
 0x335   :  { %7196 = vmatpush1.bf16.msra.mxu1 %v7195_v22  ;;  %7212 = vmatpush1.bf16.msra.mxu0 %v7211_v23  ;;  %v643_v22 = vld [vmem:[#allocation14 + $0x520] sm:$0xff]  ;;  %v709_v23 = vld [vmem:[#allocation14 + $0x730] sm:$0xff] }
 0x336   :  { %7214 = vmatprep.subr.bf16.mxu1 %v7213_v26  ;;  %7230 = vmatprep.subr.bf16.mxu0 %v7229_v27  ;;  %v645_v26 = vld [vmem:[#allocation14 + $0x530] sm:$0xff]  ;;  %v711_v27 = vld [vmem:[#allocation14 + $0x740] sm:$0xff]  ;;  %v7251_v32 = vpack.c.bf16 %v709_v23, %v643_v22  ;;  %v7285_v22 = vpack.c.bf16 %v846_v15, %v780_v14  ;;  %v7301_v23 = vpack.c.bf16 %v848_v17, %v782_v16  ;;  %v918_v14 = vld [vmem:[#allocation14 + $0xdb8] sm:$0xff] }
 0x337   :  { %v7267_v33 = vpack.c.bf16 %v711_v27, %v645_v26  ;;  %v912_v26 = vld [vmem:[#allocation14 + $0xd88] sm:$0xff]  ;;  %v978_v27 = vld [vmem:[#allocation14 + $0xf98] sm:$0xff] }
 0x338   :  { %6780 = vmatmul.mubr.msk.f32.vlgmr.msra.gmra.mrb[16].mxu1 %vm223_vm1, %v8696_v60  ;;  %6781 = vmatmul.mubr.msk.f32.vlgmr.msra.gmra.mrb[14].mxu0 %vm223_vm1, %v8696_v60  ;;  %v984_v15 = vld [vmem:[#allocation14 + $0xfc8] sm:$0xff] }
 0x339   :  { %7216 = vmatpush1.bf16.msra.mxu1 %v7215_v34  ;;  %7232 = vmatpush1.bf16.msra.mxu0 %v7231_v35  ;;  %v775_v34 = vld [vmem:[#allocation14 + $0x940] sm:$0xff]  ;;  %v841_v35 = vld [vmem:[#allocation14 + $0xb50] sm:$0xff] }
 0x33a   :  { %7218 = vmatprep.subr.bf16.mxu1 %v7217_v38  ;;  %7234 = vmatprep.subr.bf16.mxu0 %v7233_v39  ;;  %v777_v38 = vld [vmem:[#allocation14 + $0x950] sm:$0xff]  ;;  %v843_v39 = vld [vmem:[#allocation14 + $0xb60] sm:$0xff]  ;;  %v7255_v44 = vpack.c.bf16 %v841_v35, %v775_v34  ;;  %v7289_v34 = vpack.c.bf16 %v978_v27, %v912_v26  ;;  %v7305_v35 = vpack.c.bf16 %v980_v29, %v914_v28  ;;  %v526_v26 = vld [vmem:[#allocation14 + $0x178] sm:$0xff] }
 0x33b   :  { %2416 = vmatprep.mubr.f32.mxu1 %v9393_v1  ;;  %2487 = vmatprep.mubr.f32.mxu0 %v9393_v1  ;;  %v7271_v45 = vpack.c.bf16 %v843_v39, %v777_v38  ;;  %v520_v38 = vld [vmem:[#allocation14 + $0x148] sm:$0xff]  ;;  %v586_v39 = vld [vmem:[#allocation14 + $0x358] sm:$0xff] }
 0x33c   :  { %v592_v27 = vld [vmem:[#allocation14 + $0x388] sm:$0xff] }
 0x33d   :  { %7220 = vmatpush1.bf16.msra.mxu1 %v7219_v46  ;;  %7236 = vmatpush1.bf16.msra.mxu0 %v7235_v47  ;;  %v907_v46 = vld [vmem:[#allocation14 + $0xd60] sm:$0xff]  ;;  %v973_v47 = vld [vmem:[#allocation14 + $0xf70] sm:$0xff] }
 0x33e   :  { %7222 = vmatprep.subr.bf16.mxu1 %v7221_v50  ;;  %7238 = vmatprep.subr.bf16.mxu0 %v7237_v51  ;;  %v909_v50 = vld [vmem:[#allocation14 + $0xd70] sm:$0xff]  ;;  %v975_v51 = vld [vmem:[#allocation14 + $0xf80] sm:$0xff]  ;;  %v7259_v56 = vpack.c.bf16 %v973_v47, %v907_v46  ;;  %v7309_v46 = vpack.c.bf16 %v586_v39, %v520_v38  ;;  %v7325_v47 = vpack.c.bf16 %v588_v41, %v522_v40  ;;  %v658_v38 = vld [vmem:[#allocation14 + $0x598] sm:$0xff] }
 0x33f   :  { %v7275_v57 = vpack.c.bf16 %v975_v51, %v909_v50  ;;  %v652_v50 = vld [vmem:[#allocation14 + $0x568] sm:$0xff]  ;;  %v718_v51 = vld [vmem:[#allocation14 + $0x778] sm:$0xff] }
 0x340   :  { %v724_v39 = vld [vmem:[#allocation14 + $0x7a8] sm:$0xff] }
 0x341   :  { %7224 = vmatpush1.bf16.msra.mxu1 %v7223_v58  ;;  %7240 = vmatpush1.bf16.msra.mxu0 %v7239_v59  ;;  %v515_v58 = vld [vmem:[#allocation14 + $0x120] sm:$0xff]  ;;  %v581_v59 = vld [vmem:[#allocation14 + $0x330] sm:$0xff] }
 0x342   :  { %7226 = vmatprep.subr.bf16.mxu1 %v7225_v63  ;;  %7242 = vmatprep.subr.bf16.mxu0 %v7241_v0  ;;  %v517_v63 = vld [vmem:[#allocation14 + $0x130] sm:$0xff]  ;;  %v583_v0 = vld [vmem:[#allocation14 + $0x340] sm:$0xff]  ;;  %v7279_v6 = vpack.c.bf16 %v581_v59, %v515_v58  ;;  %v7313_v58 = vpack.c.bf16 %v718_v51, %v652_v50  ;;  %v7329_v59 = vpack.c.bf16 %v720_v53, %v654_v52  ;;  %v790_v50 = vld [vmem:[#allocation14 + $0x9b8] sm:$0xff] }
 0x343   :  { %v7295_v7 = vpack.c.bf16 %v583_v0, %v517_v63  ;;  %v784_v63 = vld [vmem:[#allocation14 + $0x988] sm:$0xff]  ;;  %v850_v0 = vld [vmem:[#allocation14 + $0xb98] sm:$0xff] }
 0x344   :  { %v856_v51 = vld [vmem:[#allocation14 + $0xbc8] sm:$0xff] }
 0x345   :  { %7228 = vmatpush1.bf16.msra.mxu1 %v7227_v8  ;;  %7244 = vmatpush1.bf16.msra.mxu0 %v7243_v9  ;;  %v647_v8 = vld [vmem:[#allocation14 + $0x540] sm:$0xff]  ;;  %v713_v9 = vld [vmem:[#allocation14 + $0x750] sm:$0xff] }
 0x346   :  { %7246 = vmatprep.subr.bf16.mxu1 %v7245_v12  ;;  %7262 = vmatprep.subr.bf16.mxu0 %v7261_v13  ;;  %v649_v12 = vld [vmem:[#allocation14 + $0x550] sm:$0xff]  ;;  %v715_v13 = vld [vmem:[#allocation14 + $0x760] sm:$0xff]  ;;  %v7283_v18 = vpack.c.bf16 %v713_v9, %v647_v8  ;;  %v7317_v8 = vpack.c.bf16 %v850_v0, %v784_v63  ;;  %v7333_v9 = vpack.c.bf16 %v852_v3, %v786_v2  ;;  %v922_v63 = vld [vmem:[#allocation14 + $0xdd8] sm:$0xff] }
 0x347   :  { %v7299_v19 = vpack.c.bf16 %v715_v13, %v649_v12  ;;  %v916_v12 = vld [vmem:[#allocation14 + $0xda8] sm:$0xff]  ;;  %v982_v13 = vld [vmem:[#allocation14 + $0xfb8] sm:$0xff] }
 0x348   :  { %6782 = vmatmul.mubr.msk.f32.vlgmr.msra.gmra.mrb[18].mxu1 %vm223_vm1, %v8696_v60  ;;  %6783 = vmatmul.mubr.msk.f32.vlgmr.msra.gmra.mrb[16].mxu0 %vm223_vm1, %v8696_v60  ;;  %v988_v0 = vld [vmem:[#allocation14 + $0xfe8] sm:$0xff] }
 0x349   :  { %7248 = vmatpush1.bf16.msra.mxu1 %v7247_v20  ;;  %7264 = vmatpush1.bf16.msra.mxu0 %v7263_v21  ;;  %v779_v20 = vld [vmem:[#allocation14 + $0x960] sm:$0xff]  ;;  %v845_v21 = vld [vmem:[#allocation14 + $0xb70] sm:$0xff] }
 0x34a   :  { %7250 = vmatprep.subr.bf16.mxu1 %v7249_v24  ;;  %7266 = vmatprep.subr.bf16.mxu0 %v7265_v25  ;;  %v781_v24 = vld [vmem:[#allocation14 + $0x970] sm:$0xff]  ;;  %v847_v25 = vld [vmem:[#allocation14 + $0xb80] sm:$0xff]  ;;  %v7287_v30 = vpack.c.bf16 %v845_v21, %v779_v20  ;;  %v7321_v20 = vpack.c.bf16 %v982_v13, %v916_v12  ;;  %v7337_v21 = vpack.c.bf16 %v984_v15, %v918_v14  ;;  %v530_v12 = vld [vmem:[#allocation14 + $0x198] sm:$0xff] }
 0x34b   :  { %2558 = vmatprep.mubr.f32.mxu1 %v9393_v1  ;;  %2629 = vmatprep.mubr.f32.mxu0 %v9393_v1  ;;  %v7303_v31 = vpack.c.bf16 %v847_v25, %v781_v24  ;;  %v524_v24 = vld [vmem:[#allocation14 + $0x168] sm:$0xff]  ;;  %v590_v25 = vld [vmem:[#allocation14 + $0x378] sm:$0xff] }
 0x34c   :  { %v596_v13 = vld [vmem:[#allocation14 + $0x3a8] sm:$0xff] }
 0x34d   :  { %7252 = vmatpush1.bf16.msra.mxu1 %v7251_v32  ;;  %7268 = vmatpush1.bf16.msra.mxu0 %v7267_v33  ;;  %v911_v32 = vld [vmem:[#allocation14 + $0xd80] sm:$0xff]  ;;  %v977_v33 = vld [vmem:[#allocation14 + $0xf90] sm:$0xff] }
 0x34e   :  { %7254 = vmatprep.subr.bf16.mxu1 %v7253_v36  ;;  %7270 = vmatprep.subr.bf16.mxu0 %v7269_v37  ;;  %v913_v36 = vld [vmem:[#allocation14 + $0xd90] sm:$0xff]  ;;  %v979_v37 = vld [vmem:[#allocation14 + $0xfa0] sm:$0xff]  ;;  %v7291_v42 = vpack.c.bf16 %v977_v33, %v911_v32  ;;  %v7341_v32 = vpack.c.bf16 %v590_v25, %v524_v24  ;;  %v7357_v33 = vpack.c.bf16 %v592_v27, %v526_v26  ;;  %v662_v24 = vld [vmem:[#allocation14 + $0x5b8] sm:$0xff] }
 0x34f   :  { %v7307_v43 = vpack.c.bf16 %v979_v37, %v913_v36  ;;  %v656_v36 = vld [vmem:[#allocation14 + $0x588] sm:$0xff]  ;;  %v722_v37 = vld [vmem:[#allocation14 + $0x798] sm:$0xff] }
 0x350   :  { %v728_v25 = vld [vmem:[#allocation14 + $0x7c8] sm:$0xff] }
 0x351   :  { %7256 = vmatpush1.bf16.msra.mxu1 %v7255_v44  ;;  %7272 = vmatpush1.bf16.msra.mxu0 %v7271_v45  ;;  %v519_v44 = vld [vmem:[#allocation14 + $0x140] sm:$0xff]  ;;  %v585_v45 = vld [vmem:[#allocation14 + $0x350] sm:$0xff] }
 0x352   :  { %7258 = vmatprep.subr.bf16.mxu1 %v7257_v48  ;;  %7274 = vmatprep.subr.bf16.mxu0 %v7273_v49  ;;  %v521_v48 = vld [vmem:[#allocation14 + $0x150] sm:$0xff]  ;;  %v587_v49 = vld [vmem:[#allocation14 + $0x360] sm:$0xff]  ;;  %v7311_v54 = vpack.c.bf16 %v585_v45, %v519_v44  ;;  %v7345_v44 = vpack.c.bf16 %v722_v37, %v656_v36  ;;  %v7361_v45 = vpack.c.bf16 %v724_v39, %v658_v38  ;;  %v794_v36 = vld [vmem:[#allocation14 + $0x9d8] sm:$0xff] }
 0x353   :  { %v7327_v55 = vpack.c.bf16 %v587_v49, %v521_v48  ;;  %v788_v48 = vld [vmem:[#allocation14 + $0x9a8] sm:$0xff]  ;;  %v854_v49 = vld [vmem:[#allocation14 + $0xbb8] sm:$0xff] }
 0x354   :  { %v860_v37 = vld [vmem:[#allocation14 + $0xbe8] sm:$0xff] }
 0x355   :  { %7260 = vmatpush1.bf16.msra.mxu1 %v7259_v56  ;;  %7276 = vmatpush1.bf16.msra.mxu0 %v7275_v57  ;;  %v651_v56 = vld [vmem:[#allocation14 + $0x560] sm:$0xff]  ;;  %v717_v57 = vld [vmem:[#allocation14 + $0x770] sm:$0xff] }
 0x356   :  { %7278 = vmatprep.subr.bf16.mxu1 %v7277_v61  ;;  %7294 = vmatprep.subr.bf16.mxu0 %v7293_v62  ;;  %v653_v61 = vld [vmem:[#allocation14 + $0x570] sm:$0xff]  ;;  %v719_v62 = vld [vmem:[#allocation14 + $0x780] sm:$0xff]  ;;  %v7315_v4 = vpack.c.bf16 %v717_v57, %v651_v56  ;;  %v7349_v56 = vpack.c.bf16 %v854_v49, %v788_v48  ;;  %v7365_v57 = vpack.c.bf16 %v856_v51, %v790_v50  ;;  %v926_v48 = vld [vmem:[#allocation14 + $0xdf8] sm:$0xff] }
 0x357   :  { %v7331_v5 = vpack.c.bf16 %v719_v62, %v653_v61  ;;  %v920_v61 = vld [vmem:[#allocation14 + $0xdc8] sm:$0xff]  ;;  %v986_v62 = vld [vmem:[#allocation14 + $0xfd8] sm:$0xff] }
 0x358   :  { %6784 = vmatmul.mubr.msk.f32.vlgmr.msra.gmra.mrb[20].mxu1 %vm223_vm1, %v8696_v60  ;;  %6785 = vmatmul.mubr.msk.f32.vlgmr.msra.gmra.mrb[18].mxu0 %vm223_vm1, %v8696_v60  ;;  %v992_v49 = vld [vmem:[#allocation14 + $0x1008] sm:$0xff] }
 0x359   :  { %7280 = vmatpush1.bf16.msra.mxu1 %v7279_v6  ;;  %7296 = vmatpush1.bf16.msra.mxu0 %v7295_v7  ;;  %v783_v6 = vld [vmem:[#allocation14 + $0x980] sm:$0xff]  ;;  %v849_v7 = vld [vmem:[#allocation14 + $0xb90] sm:$0xff] }
 0x35a   :  { %7282 = vmatprep.subr.bf16.mxu1 %v7281_v10  ;;  %7298 = vmatprep.subr.bf16.mxu0 %v7297_v11  ;;  %v785_v10 = vld [vmem:[#allocation14 + $0x990] sm:$0xff]  ;;  %v851_v11 = vld [vmem:[#allocation14 + $0xba0] sm:$0xff]  ;;  %v7319_v16 = vpack.c.bf16 %v849_v7, %v783_v6  ;;  %v7353_v6 = vpack.c.bf16 %v986_v62, %v920_v61  ;;  %v7369_v7 = vpack.c.bf16 %v988_v0, %v922_v63  ;;  %v534_v61 = vld [vmem:[#allocation14 + $0x1b8] sm:$0xff] }
 0x35b   :  { %2700 = vmatprep.mubr.f32.mxu1 %v9393_v1  ;;  %2771 = vmatprep.mubr.f32.mxu0 %v9393_v1  ;;  %v7335_v17 = vpack.c.bf16 %v851_v11, %v785_v10  ;;  %v528_v10 = vld [vmem:[#allocation14 + $0x188] sm:$0xff]  ;;  %v594_v11 = vld [vmem:[#allocation14 + $0x398] sm:$0xff] }
 0x35c   :  { %v600_v62 = vld [vmem:[#allocation14 + $0x3c8] sm:$0xff] }
 0x35d   :  { %7284 = vmatpush1.bf16.msra.mxu1 %v7283_v18  ;;  %7300 = vmatpush1.bf16.msra.mxu0 %v7299_v19  ;;  %v915_v18 = vld [vmem:[#allocation14 + $0xda0] sm:$0xff]  ;;  %v981_v19 = vld [vmem:[#allocation14 + $0xfb0] sm:$0xff] }
 0x35e   :  { %7286 = vmatprep.subr.bf16.mxu1 %v7285_v22  ;;  %7302 = vmatprep.subr.bf16.mxu0 %v7301_v23  ;;  %v917_v22 = vld [vmem:[#allocation14 + $0xdb0] sm:$0xff]  ;;  %v983_v23 = vld [vmem:[#allocation14 + $0xfc0] sm:$0xff]  ;;  %v7323_v28 = vpack.c.bf16 %v981_v19, %v915_v18  ;;  %v7373_v18 = vpack.c.bf16 %v594_v11, %v528_v10  ;;  %v7389_v19 = vpack.c.bf16 %v596_v13, %v530_v12  ;;  %v666_v10 = vld [vmem:[#allocation14 + $0x5d8] sm:$0xff] }
 0x35f   :  { %v7339_v29 = vpack.c.bf16 %v983_v23, %v917_v22  ;;  %v660_v22 = vld [vmem:[#allocation14 + $0x5a8] sm:$0xff]  ;;  %v726_v23 = vld [vmem:[#allocation14 + $0x7b8] sm:$0xff] }
 0x360   :  { %v732_v11 = vld [vmem:[#allocation14 + $0x7e8] sm:$0xff] }
 0x361   :  { %7288 = vmatpush1.bf16.msra.mxu1 %v7287_v30  ;;  %7304 = vmatpush1.bf16.msra.mxu0 %v7303_v31  ;;  %v523_v30 = vld [vmem:[#allocation14 + $0x160] sm:$0xff]  ;;  %v589_v31 = vld [vmem:[#allocation14 + $0x370] sm:$0xff] }
 0x362   :  { %7290 = vmatprep.subr.bf16.mxu1 %v7289_v34  ;;  %7306 = vmatprep.subr.bf16.mxu0 %v7305_v35  ;;  %v525_v34 = vld [vmem:[#allocation14 + $0x170] sm:$0xff]  ;;  %v591_v35 = vld [vmem:[#allocation14 + $0x380] sm:$0xff]  ;;  %v7343_v40 = vpack.c.bf16 %v589_v31, %v523_v30  ;;  %v7377_v30 = vpack.c.bf16 %v726_v23, %v660_v22  ;;  %v7393_v31 = vpack.c.bf16 %v728_v25, %v662_v24  ;;  %v798_v22 = vld [vmem:[#allocation14 + $0x9f8] sm:$0xff] }
 0x363   :  { %v7359_v41 = vpack.c.bf16 %v591_v35, %v525_v34  ;;  %v792_v34 = vld [vmem:[#allocation14 + $0x9c8] sm:$0xff]  ;;  %v858_v35 = vld [vmem:[#allocation14 + $0xbd8] sm:$0xff] }
 0x364   :  { %v864_v23 = vld [vmem:[#allocation14 + $0xc08] sm:$0xff] }
 0x365   :  { %7292 = vmatpush1.bf16.msra.mxu1 %v7291_v42  ;;  %7308 = vmatpush1.bf16.msra.mxu0 %v7307_v43  ;;  %v655_v42 = vld [vmem:[#allocation14 + $0x580] sm:$0xff]  ;;  %v721_v43 = vld [vmem:[#allocation14 + $0x790] sm:$0xff] }
 0x366   :  { %7310 = vmatprep.subr.bf16.mxu1 %v7309_v46  ;;  %7326 = vmatprep.subr.bf16.mxu0 %v7325_v47  ;;  %v657_v46 = vld [vmem:[#allocation14 + $0x590] sm:$0xff]  ;;  %v723_v47 = vld [vmem:[#allocation14 + $0x7a0] sm:$0xff]  ;;  %v7347_v52 = vpack.c.bf16 %v721_v43, %v655_v42  ;;  %v7381_v42 = vpack.c.bf16 %v858_v35, %v792_v34  ;;  %v7397_v43 = vpack.c.bf16 %v860_v37, %v794_v36  ;;  %v930_v34 = vld [vmem:[#allocation14 + $0xe18] sm:$0xff] }
 0x367   :  { %v7363_v53 = vpack.c.bf16 %v723_v47, %v657_v46  ;;  %v924_v46 = vld [vmem:[#allocation14 + $0xde8] sm:$0xff]  ;;  %v990_v47 = vld [vmem:[#allocation14 + $0xff8] sm:$0xff] }
 0x368   :  { %6786 = vmatmul.mubr.msk.f32.vlgmr.msra.gmra.mrb[22].mxu1 %vm223_vm1, %v8696_v60  ;;  %6787 = vmatmul.mubr.msk.f32.vlgmr.msra.gmra.mrb[20].mxu0 %vm223_vm1, %v8696_v60  ;;  %v996_v35 = vld [vmem:[#allocation14 + $0x1028] sm:$0xff] }
 0x369   :  { %7312 = vmatpush1.bf16.msra.mxu1 %v7311_v54  ;;  %7328 = vmatpush1.bf16.msra.mxu0 %v7327_v55  ;;  %v787_v54 = vld [vmem:[#allocation14 + $0x9a0] sm:$0xff]  ;;  %v853_v55 = vld [vmem:[#allocation14 + $0xbb0] sm:$0xff] }
 0x36a   :  { %7314 = vmatprep.subr.bf16.mxu1 %v7313_v58  ;;  %7330 = vmatprep.subr.bf16.mxu0 %v7329_v59  ;;  %v789_v58 = vld [vmem:[#allocation14 + $0x9b0] sm:$0xff]  ;;  %v855_v59 = vld [vmem:[#allocation14 + $0xbc0] sm:$0xff]  ;;  %v7351_v2 = vpack.c.bf16 %v853_v55, %v787_v54  ;;  %v7385_v54 = vpack.c.bf16 %v990_v47, %v924_v46  ;;  %v7401_v55 = vpack.c.bf16 %v992_v49, %v926_v48  ;;  %v538_v46 = vld [vmem:[#allocation14 + $0x1d8] sm:$0xff] }
 0x36b   :  { %2842 = vmatprep.mubr.f32.mxu1 %v9393_v1  ;;  %2913 = vmatprep.mubr.f32.mxu0 %v9393_v1  ;;  %v7367_v3 = vpack.c.bf16 %v855_v59, %v789_v58  ;;  %v532_v58 = vld [vmem:[#allocation14 + $0x1a8] sm:$0xff]  ;;  %v598_v59 = vld [vmem:[#allocation14 + $0x3b8] sm:$0xff] }
 0x36c   :  { %v604_v47 = vld [vmem:[#allocation14 + $0x3e8] sm:$0xff] }
 0x36d   :  { %7316 = vmatpush1.bf16.msra.mxu1 %v7315_v4  ;;  %7332 = vmatpush1.bf16.msra.mxu0 %v7331_v5  ;;  %v919_v4 = vld [vmem:[#allocation14 + $0xdc0] sm:$0xff]  ;;  %v985_v5 = vld [vmem:[#allocation14 + $0xfd0] sm:$0xff] }
 0x36e   :  { %7318 = vmatprep.subr.bf16.mxu1 %v7317_v8  ;;  %7334 = vmatprep.subr.bf16.mxu0 %v7333_v9  ;;  %v921_v8 = vld [vmem:[#allocation14 + $0xdd0] sm:$0xff]  ;;  %v987_v9 = vld [vmem:[#allocation14 + $0xfe0] sm:$0xff]  ;;  %v7355_v14 = vpack.c.bf16 %v985_v5, %v919_v4  ;;  %v7405_v4 = vpack.c.bf16 %v598_v59, %v532_v58  ;;  %v7421_v5 = vpack.c.bf16 %v600_v62, %v534_v61  ;;  %v670_v58 = vld [vmem:[#allocation14 + $0x5f8] sm:$0xff] }
 0x36f   :  { %v7371_v15 = vpack.c.bf16 %v987_v9, %v921_v8  ;;  %v664_v8 = vld [vmem:[#allocation14 + $0x5c8] sm:$0xff]  ;;  %v730_v9 = vld [vmem:[#allocation14 + $0x7d8] sm:$0xff] }
 0x370   :  { %v736_v59 = vld [vmem:[#allocation14 + $0x808] sm:$0xff] }
 0x371   :  { %7320 = vmatpush1.bf16.msra.mxu1 %v7319_v16  ;;  %7336 = vmatpush1.bf16.msra.mxu0 %v7335_v17  ;;  %v527_v16 = vld [vmem:[#allocation14 + $0x180] sm:$0xff]  ;;  %v593_v17 = vld [vmem:[#allocation14 + $0x390] sm:$0xff] }
 0x372   :  { %7322 = vmatprep.subr.bf16.mxu1 %v7321_v20  ;;  %7338 = vmatprep.subr.bf16.mxu0 %v7337_v21  ;;  %v529_v20 = vld [vmem:[#allocation14 + $0x190] sm:$0xff]  ;;  %v595_v21 = vld [vmem:[#allocation14 + $0x3a0] sm:$0xff]  ;;  %v7375_v26 = vpack.c.bf16 %v593_v17, %v527_v16  ;;  %v7409_v16 = vpack.c.bf16 %v730_v9, %v664_v8  ;;  %v7425_v17 = vpack.c.bf16 %v732_v11, %v666_v10  ;;  %v802_v8 = vld [vmem:[#allocation14 + $0xa18] sm:$0xff] }
 0x373   :  { %v7391_v27 = vpack.c.bf16 %v595_v21, %v529_v20  ;;  %v796_v20 = vld [vmem:[#allocation14 + $0x9e8] sm:$0xff]  ;;  %v862_v21 = vld [vmem:[#allocation14 + $0xbf8] sm:$0xff] }
 0x374   :  { %v868_v9 = vld [vmem:[#allocation14 + $0xc28] sm:$0xff] }
 0x375   :  { %7324 = vmatpush1.bf16.msra.mxu1 %v7323_v28  ;;  %7340 = vmatpush1.bf16.msra.mxu0 %v7339_v29  ;;  %v659_v28 = vld [vmem:[#allocation14 + $0x5a0] sm:$0xff]  ;;  %v725_v29 = vld [vmem:[#allocation14 + $0x7b0] sm:$0xff] }
 0x376   :  { %7342 = vmatprep.subr.bf16.mxu1 %v7341_v32  ;;  %7358 = vmatprep.subr.bf16.mxu0 %v7357_v33  ;;  %v661_v32 = vld [vmem:[#allocation14 + $0x5b0] sm:$0xff]  ;;  %v727_v33 = vld [vmem:[#allocation14 + $0x7c0] sm:$0xff]  ;;  %v7379_v38 = vpack.c.bf16 %v725_v29, %v659_v28  ;;  %v7413_v28 = vpack.c.bf16 %v862_v21, %v796_v20  ;;  %v7429_v29 = vpack.c.bf16 %v864_v23, %v798_v22  ;;  %v998_v21 = vld [vmem:[#allocation14 + $0x1038] sm:$0xff] }
 0x377   :  { %v7395_v39 = vpack.c.bf16 %v727_v33, %v661_v32  ;;  %v928_v32 = vld [vmem:[#allocation14 + $0xe08] sm:$0xff]  ;;  %v994_v33 = vld [vmem:[#allocation14 + $0x1018] sm:$0xff] }
 0x378   :  { %6788 = vmatmul.mubr.msk.f32.vlgmr.msra.gmra.mrb[24].mxu1 %vm223_vm1, %v8696_v60  ;;  %6789 = vmatmul.mubr.msk.f32.vlgmr.msra.gmra.mrb[22].mxu0 %vm223_vm1, %v8696_v60  ;;  %v934_v22 = vld [vmem:[#allocation14 + $0xe38] sm:$0xff]  ;;  %v1000_v23 = vld [vmem:[#allocation14 + $0x1048] sm:$0xff] }
 0x379   :  { %7344 = vmatpush1.bf16.msra.mxu1 %v7343_v40  ;;  %7360 = vmatpush1.bf16.msra.mxu0 %v7359_v41  ;;  %v791_v40 = vld [vmem:[#allocation14 + $0x9c0] sm:$0xff]  ;;  %v857_v41 = vld [vmem:[#allocation14 + $0xbd0] sm:$0xff] }
 0x37a   :  { %7346 = vmatprep.subr.bf16.mxu1 %v7345_v44  ;;  %7362 = vmatprep.subr.bf16.mxu0 %v7361_v45  ;;  %v793_v44 = vld [vmem:[#allocation14 + $0x9d0] sm:$0xff]  ;;  %v859_v45 = vld [vmem:[#allocation14 + $0xbe0] sm:$0xff]  ;;  %v7383_v50 = vpack.c.bf16 %v857_v41, %v791_v40  ;;  %v7417_v40 = vpack.c.bf16 %v994_v33, %v928_v32  ;;  %v7433_v41 = vpack.c.bf16 %v996_v35, %v930_v34  ;;  %v540_v34 = vld [vmem:[#allocation14 + $0x1e8] sm:$0xff] }
 0x37b   :  { %2984 = vmatprep.mubr.f32.mxu1 %v9393_v1  ;;  %3055 = vmatprep.mubr.f32.mxu0 %v9393_v1  ;;  %v7399_v51 = vpack.c.bf16 %v859_v45, %v793_v44  ;;  %v536_v44 = vld [vmem:[#allocation14 + $0x1c8] sm:$0xff]  ;;  %v602_v45 = vld [vmem:[#allocation14 + $0x3d8] sm:$0xff]  ;;  %v933_v32 = vld [vmem:[#allocation14 + $0xe30] sm:$0xff] }
 0x37c   :  { %v999_v33 = vld [vmem:[#allocation14 + $0x1040] sm:$0xff]  ;;  %v606_v35 = vld [vmem:[#allocation14 + $0x3f8] sm:$0xff] }
 0x37d   :  { %7348 = vmatpush1.bf16.msra.mxu1 %v7347_v52  ;;  %7364 = vmatpush1.bf16.msra.mxu0 %v7363_v53  ;;  %v923_v52 = vld [vmem:[#allocation14 + $0xde0] sm:$0xff]  ;;  %v989_v53 = vld [vmem:[#allocation14 + $0xff0] sm:$0xff] }
 0x37e   :  { %7350 = vmatprep.subr.bf16.mxu1 %v7349_v56  ;;  %7366 = vmatprep.subr.bf16.mxu0 %v7365_v57  ;;  %v925_v56 = vld [vmem:[#allocation14 + $0xdf0] sm:$0xff]  ;;  %v991_v57 = vld [vmem:[#allocation14 + $0x1000] sm:$0xff]  ;;  %v7387_v63 = vpack.c.bf16 %v989_v53, %v923_v52  ;;  %v7437_v52 = vpack.c.bf16 %v602_v45, %v536_v44  ;;  %v7453_v53 = vpack.c.bf16 %v604_v47, %v538_v46  ;;  %v672_v46 = vld [vmem:[#allocation14 + $0x608] sm:$0xff] }
 0x37f   :  { %v7403_v0 = vpack.c.bf16 %v991_v57, %v925_v56  ;;  %v668_v56 = vld [vmem:[#allocation14 + $0x5e8] sm:$0xff]  ;;  %v734_v57 = vld [vmem:[#allocation14 + $0x7f8] sm:$0xff]  ;;  %v541_v44 = vld [vmem:[#allocation14 + $0x1f0] sm:$0xff] }
 0x380   :  { %v607_v45 = vld [vmem:[#allocation14 + $0x400] sm:$0xff]  ;;  %v738_v47 = vld [vmem:[#allocation14 + $0x818] sm:$0xff] }
 0x381   :  { %7352 = vmatpush1.bf16.msra.mxu1 %v7351_v2  ;;  %7368 = vmatpush1.bf16.msra.mxu0 %v7367_v3  ;;  %v531_v2 = vld [vmem:[#allocation14 + $0x1a0] sm:$0xff]  ;;  %v597_v3 = vld [vmem:[#allocation14 + $0x3b0] sm:$0xff] }
 0x382   :  { %7354 = vmatprep.subr.bf16.mxu1 %v7353_v6  ;;  %7370 = vmatprep.subr.bf16.mxu0 %v7369_v7  ;;  %v533_v6 = vld [vmem:[#allocation14 + $0x1b0] sm:$0xff]  ;;  %v599_v7 = vld [vmem:[#allocation14 + $0x3c0] sm:$0xff]  ;;  %v7407_v12 = vpack.c.bf16 %v597_v3, %v531_v2  ;;  %v7441_v2 = vpack.c.bf16 %v734_v57, %v668_v56  ;;  %v7457_v3 = vpack.c.bf16 %v736_v59, %v670_v58  ;;  %v804_v58 = vld [vmem:[#allocation14 + $0xa28] sm:$0xff] }
 0x383   :  { %v7423_v13 = vpack.c.bf16 %v599_v7, %v533_v6  ;;  %v800_v6 = vld [vmem:[#allocation14 + $0xa08] sm:$0xff]  ;;  %v866_v7 = vld [vmem:[#allocation14 + $0xc18] sm:$0xff]  ;;  %v673_v56 = vld [vmem:[#allocation14 + $0x610] sm:$0xff] }
 0x384   :  { %v739_v57 = vld [vmem:[#allocation14 + $0x820] sm:$0xff]  ;;  %v870_v59 = vld [vmem:[#allocation14 + $0xc38] sm:$0xff] }
 0x385   :  { %7356 = vmatpush1.bf16.msra.mxu1 %v7355_v14  ;;  %7372 = vmatpush1.bf16.msra.mxu0 %v7371_v15  ;;  %v663_v14 = vld [vmem:[#allocation14 + $0x5c0] sm:$0xff]  ;;  %v729_v15 = vld [vmem:[#allocation14 + $0x7d0] sm:$0xff] }
 0x386   :  { %7374 = vmatprep.subr.bf16.mxu1 %v7373_v18  ;;  %7390 = vmatprep.subr.bf16.mxu0 %v7389_v19  ;;  %v665_v18 = vld [vmem:[#allocation14 + $0x5d0] sm:$0xff]  ;;  %v731_v19 = vld [vmem:[#allocation14 + $0x7e0] sm:$0xff]  ;;  %v7411_v24 = vpack.c.bf16 %v729_v15, %v663_v14  ;;  %v7445_v14 = vpack.c.bf16 %v866_v7, %v800_v6  ;;  %v7461_v15 = vpack.c.bf16 %v868_v9, %v802_v8  ;;  %v936_v8 = vld [vmem:[#allocation14 + $0xe48] sm:$0xff] }
 0x387   :  { %v7427_v25 = vpack.c.bf16 %v731_v19, %v665_v18  ;;  %v932_v18 = vld [vmem:[#allocation14 + $0xe28] sm:$0xff]  ;;  %v805_v6 = vld [vmem:[#allocation14 + $0xa30] sm:$0xff]  ;;  %v871_v7 = vld [vmem:[#allocation14 + $0xc40] sm:$0xff] }
 0x388   :  { %6790 = vmatmul.mubr.msk.f32.vlgmr.msra.gmra.mrb[26].mxu1 %vm223_vm1, %v8696_v60  ;;  %6791 = vmatmul.mubr.msk.f32.vlgmr.msra.gmra.mrb[24].mxu0 %vm223_vm1, %v8696_v60 }
 0x389   :  { %7376 = vmatpush1.bf16.msra.mxu1 %v7375_v26  ;;  %7392 = vmatpush1.bf16.msra.mxu0 %v7391_v27  ;;  %v795_v26 = vld [vmem:[#allocation14 + $0x9e0] sm:$0xff]  ;;  %v861_v27 = vld [vmem:[#allocation14 + $0xbf0] sm:$0xff] }
 0x38a   :  { %7378 = vmatprep.subr.bf16.mxu1 %v7377_v30  ;;  %7394 = vmatprep.subr.bf16.mxu0 %v7393_v31  ;;  %v797_v30 = vld [vmem:[#allocation14 + $0x9f0] sm:$0xff]  ;;  %v863_v31 = vld [vmem:[#allocation14 + $0xc00] sm:$0xff]  ;;  %v7415_v36 = vpack.c.bf16 %v861_v27, %v795_v26 }
 0x38b   :  { %3126 = vmatprep.mubr.f32.mxu1 %v9393_v1  ;;  %3197 = vmatprep.mubr.f32.mxu0 %v9393_v1  ;;  %v7431_v37 = vpack.c.bf16 %v863_v31, %v797_v30  ;;  %v7449_v30 = vpack.c.bf16 %v998_v21, %v932_v18  ;;  %v7465_v31 = vpack.c.bf16 %v1000_v23, %v934_v22  ;;  %v935_v18 = vld [vmem:[#allocation14 + $0xe40] sm:$0xff]  ;;  %v1001_v21 = vld [vmem:[#allocation14 + $0x1050] sm:$0xff] }
 0x38d   :  { %7380 = vmatpush1.bf16.msra.mxu1 %v7379_v38  ;;  %7396 = vmatpush1.bf16.msra.mxu0 %v7395_v39  ;;  %v927_v38 = vld [vmem:[#allocation14 + $0xe00] sm:$0xff]  ;;  %v993_v39 = vld [vmem:[#allocation14 + $0x1010] sm:$0xff] }
 0x38e   :  { %7382 = vmatprep.subr.bf16.mxu1 %v7381_v42  ;;  %7398 = vmatprep.subr.bf16.mxu0 %v7397_v43  ;;  %v929_v42 = vld [vmem:[#allocation14 + $0xe10] sm:$0xff]  ;;  %v995_v43 = vld [vmem:[#allocation14 + $0x1020] sm:$0xff]  ;;  %v7419_v48 = vpack.c.bf16 %v993_v39, %v927_v38  ;;  %v7467_v39 = vpack.c.bf16 %v999_v33, %v933_v32  ;;  %v7483_v32 = vpack.c.bf16 %v1001_v21, %v935_v18 }
 0x38f   :  { %v7435_v49 = vpack.c.bf16 %v995_v43, %v929_v42  ;;  %v7469_v42 = vpack.c.bf16 %v606_v35, %v540_v34  ;;  %v543_v34 = vld [vmem:[#allocation14 + $0x200] sm:$0xff]  ;;  %v609_v35 = vld [vmem:[#allocation14 + $0x410] sm:$0xff] }
 0x391   :  { %7384 = vmatpush1.bf16.msra.mxu1 %v7383_v50  ;;  %7400 = vmatpush1.bf16.msra.mxu0 %v7399_v51  ;;  %v535_v50 = vld [vmem:[#allocation14 + $0x1c0] sm:$0xff]  ;;  %v601_v51 = vld [vmem:[#allocation14 + $0x3d0] sm:$0xff] }
 0x392   :  { %7386 = vmatprep.subr.bf16.mxu1 %v7385_v54  ;;  %7402 = vmatprep.subr.bf16.mxu0 %v7401_v55  ;;  %v537_v54 = vld [vmem:[#allocation14 + $0x1d0] sm:$0xff]  ;;  %v603_v55 = vld [vmem:[#allocation14 + $0x3e0] sm:$0xff]  ;;  %v7439_v61 = vpack.c.bf16 %v601_v51, %v535_v50  ;;  %v7487_v51 = vpack.c.bf16 %v607_v45, %v541_v44  ;;  %v7503_v44 = vpack.c.bf16 %v609_v35, %v543_v34 }
 0x393   :  { %v7455_v62 = vpack.c.bf16 %v603_v55, %v537_v54  ;;  %v7473_v54 = vpack.c.bf16 %v738_v47, %v672_v46  ;;  %v675_v46 = vld [vmem:[#allocation14 + $0x620] sm:$0xff]  ;;  %v741_v47 = vld [vmem:[#allocation14 + $0x830] sm:$0xff] }
 0x395   :  { %7388 = vmatpush1.bf16.msra.mxu1 %v7387_v63  ;;  %7404 = vmatpush1.bf16.msra.mxu0 %v7403_v0  ;;  %v667_v63 = vld [vmem:[#allocation14 + $0x5e0] sm:$0xff]  ;;  %v733_v0 = vld [vmem:[#allocation14 + $0x7f0] sm:$0xff] }
 0x396   :  { %7406 = vmatprep.subr.bf16.mxu1 %v7405_v4  ;;  %7422 = vmatprep.subr.bf16.mxu0 %v7421_v5  ;;  %v669_v4 = vld [vmem:[#allocation14 + $0x5f0] sm:$0xff]  ;;  %v735_v5 = vld [vmem:[#allocation14 + $0x800] sm:$0xff]  ;;  %v7443_v10 = vpack.c.bf16 %v733_v0, %v667_v63  ;;  %v7491_v0 = vpack.c.bf16 %v739_v57, %v673_v56  ;;  %v7507_v56 = vpack.c.bf16 %v741_v47, %v675_v46 }
 0x397   :  { %v7459_v11 = vpack.c.bf16 %v735_v5, %v669_v4  ;;  %v7477_v4 = vpack.c.bf16 %v870_v59, %v804_v58  ;;  %v807_v58 = vld [vmem:[#allocation14 + $0xa40] sm:$0xff]  ;;  %v873_v59 = vld [vmem:[#allocation14 + $0xc50] sm:$0xff] }
 0x398   :  { %6792 = vmatmul.mubr.msk.f32.vlgmr.msra.gmra.mrb[28].mxu1 %vm223_vm1, %v8696_v60  ;;  %6793 = vmatmul.mubr.msk.f32.vlgmr.msra.gmra.mrb[26].mxu0 %vm223_vm1, %v8696_v60 }
 0x399   :  { %7408 = vmatpush1.bf16.msra.mxu1 %v7407_v12  ;;  %7424 = vmatpush1.bf16.msra.mxu0 %v7423_v13  ;;  %v799_v12 = vld [vmem:[#allocation14 + $0xa00] sm:$0xff]  ;;  %v865_v13 = vld [vmem:[#allocation14 + $0xc10] sm:$0xff] }
 0x39a   :  { %7410 = vmatprep.subr.bf16.mxu1 %v7409_v16  ;;  %7426 = vmatprep.subr.bf16.mxu0 %v7425_v17  ;;  %v801_v16 = vld [vmem:[#allocation14 + $0xa10] sm:$0xff]  ;;  %v867_v17 = vld [vmem:[#allocation14 + $0xc20] sm:$0xff]  ;;  %v7447_v26 = vpack.c.bf16 %v865_v13, %v799_v12  ;;  %v938_v12 = vld [vmem:[#allocation14 + $0xe58] sm:$0xff] }
 0x39b   :  { %3268 = vmatprep.mubr.f32.mxu1 %v9393_v1  ;;  %3339 = vmatprep.mubr.f32.mxu0 %v9393_v1  ;;  %v7463_v27 = vpack.c.bf16 %v867_v17, %v801_v16  ;;  %v1004_v13 = vld [vmem:[#allocation14 + $0x1068] sm:$0xff]  ;;  %v7495_v17 = vpack.c.bf16 %v871_v7, %v805_v6 }
 0x39c   :  { %v7497_v23 = vpack.c.bf16 %v1004_v13, %v938_v12  ;;  %v4086_v6 = vld [vmem:[#allocation17 + $0xc08] sm:$0xff]  ;;  %v7511_v12 = vpack.c.bf16 %v873_v59, %v807_v58 }
 0x39d   :  { %7412 = vmatpush1.bf16.msra.mxu1 %v7411_v24  ;;  %7428 = vmatpush1.bf16.msra.mxu0 %v7427_v25  ;;  %v4150_v7 = vld [vmem:[#allocation17 + $0xe08] sm:$0xff] }
 0x39e   :  { %7414 = vmatprep.subr.bf16.mxu1 %v7413_v28  ;;  %7430 = vmatprep.subr.bf16.mxu0 %v7429_v29  ;;  %v931_v28 = vld [vmem:[#allocation14 + $0xe20] sm:$0xff]  ;;  %v997_v29 = vld [vmem:[#allocation14 + $0x1030] sm:$0xff]  ;;  %v7529_v21 = vpack.c.bf16 %v4150_v7, %v4086_v6 }
 0x39f   :  { %v7451_v38 = vpack.c.bf16 %v997_v29, %v931_v28  ;;  %v544_v28 = vld [vmem:[#allocation14 + $0x208] sm:$0xff]  ;;  %v610_v29 = vld [vmem:[#allocation14 + $0x418] sm:$0xff] }
 0x3a0   :  { %v4090_v6 = vld [vmem:[#allocation17 + $0xc28] sm:$0xff] }
 0x3a1   :  { %7416 = vmatpush1.bf16.msra.mxu1 %v7415_v36  ;;  %7432 = vmatpush1.bf16.msra.mxu0 %v7431_v37  ;;  %v542_v36 = vld [vmem:[#allocation14 + $0x1f8] sm:$0xff]  ;;  %v608_v37 = vld [vmem:[#allocation14 + $0x408] sm:$0xff] }
 0x3a2   :  { %7418 = vmatprep.subr.bf16.mxu1 %v7417_v40  ;;  %7434 = vmatprep.subr.bf16.mxu0 %v7433_v41  ;;  %v539_v40 = vld [vmem:[#allocation14 + $0x1e0] sm:$0xff]  ;;  %v605_v41 = vld [vmem:[#allocation14 + $0x3f0] sm:$0xff]  ;;  %v7485_v43 = vpack.c.bf16 %v608_v37, %v542_v36  ;;  %v7501_v36 = vpack.c.bf16 %v610_v29, %v544_v28 }
 0x3a3   :  { %v7471_v50 = vpack.c.bf16 %v605_v41, %v539_v40  ;;  %v676_v40 = vld [vmem:[#allocation14 + $0x628] sm:$0xff]  ;;  %v742_v41 = vld [vmem:[#allocation14 + $0x838] sm:$0xff] }
 0x3a4   :  { %v3706_v28 = vld [vmem:[#allocation17 + $0x28] sm:$0xff] }
 0x3a5   :  { %7420 = vmatpush1.bf16.msra.mxu1 %v7419_v48  ;;  %7436 = vmatpush1.bf16.msra.mxu0 %v7435_v49  ;;  %v674_v48 = vld [vmem:[#allocation14 + $0x618] sm:$0xff]  ;;  %v740_v49 = vld [vmem:[#allocation14 + $0x828] sm:$0xff] }
 0x3a6   :  { %7438 = vmatprep.subr.bf16.mxu1 %v7437_v52  ;;  %7454 = vmatprep.subr.bf16.mxu0 %v7453_v53  ;;  %v671_v52 = vld [vmem:[#allocation14 + $0x600] sm:$0xff]  ;;  %v737_v53 = vld [vmem:[#allocation14 + $0x810] sm:$0xff]  ;;  %v7489_v55 = vpack.c.bf16 %v740_v49, %v674_v48  ;;  %v7505_v48 = vpack.c.bf16 %v742_v41, %v676_v40 }
 0x3a7   :  { %v7475_v63 = vpack.c.bf16 %v737_v53, %v671_v52  ;;  %v808_v52 = vld [vmem:[#allocation14 + $0xa48] sm:$0xff]  ;;  %v874_v53 = vld [vmem:[#allocation14 + $0xc58] sm:$0xff] }
 0x3a8   :  { %6794 = vmatmul.mubr.msk.f32.vlgmr.msra.gmra.mrb[30].mxu1 %vm223_vm1, %v8696_v60  ;;  %6795 = vmatmul.mubr.msk.f32.vlgmr.msra.gmra.mrb[28].mxu0 %vm223_vm1, %v8696_v60  ;;  %v3770_v29 = vld [vmem:[#allocation17 + $0x228] sm:$0xff] }
 0x3a9   :  { %7440 = vmatpush1.bf16.msra.mxu1 %v7439_v61  ;;  %7456 = vmatpush1.bf16.msra.mxu0 %v7455_v62  ;;  %v806_v61 = vld [vmem:[#allocation14 + $0xa38] sm:$0xff]  ;;  %v872_v62 = vld [vmem:[#allocation14 + $0xc48] sm:$0xff]  ;;  %v7549_v35 = vpack.c.bf16 %v3770_v29, %v3706_v28 }
 0x3aa   :  { %7442 = vmatprep.subr.bf16.mxu1 %v7441_v2  ;;  %7458 = vmatprep.subr.bf16.mxu0 %v7457_v3  ;;  %v803_v2 = vld [vmem:[#allocation14 + $0xa20] sm:$0xff]  ;;  %v869_v3 = vld [vmem:[#allocation14 + $0xc30] sm:$0xff]  ;;  %v7493_v5 = vpack.c.bf16 %v872_v62, %v806_v61  ;;  %v7509_v61 = vpack.c.bf16 %v874_v53, %v808_v52 }
 0x3ab   :  { %v8780_v19 = vpop.f32.mrb[4].mxu1  ;;  %v8782_v20 = vpop.f32.mrb[2].mxu0  ;;  %3410 = vmatprep.mubr.f32.mxu1 %v9393_v1  ;;  %3481 = vmatprep.mubr.f32.mxu0 %v9393_v1  ;;  %v7479_v16 = vpack.c.bf16 %v869_v3, %v803_v2  ;;  %v940_v2 = vld [vmem:[#allocation14 + $0xe68] sm:$0xff]  ;;  %v3708_v28 = vld [vmem:[#allocation17 + $0x38] sm:$0xff] }
 0x3ac   :  { %v8786_v24 = vpop.f32.mrb[5].mxu1  ;;  %v8788_v25 = vpop.f32.mrb[3].mxu0  ;;  %v3834_v40 = vld [vmem:[#allocation17 + $0x428] sm:$0xff]  ;;  %v3772_v29 = vld [vmem:[#allocation17 + $0x238] sm:$0xff] }
 0x3ad   :  { %7444 = vmatpush1.bf16.msra.mxu1 %v7443_v10  ;;  %7460 = vmatpush1.bf16.msra.mxu0 %v7459_v11  ;;  %v1002_v11 = vld [vmem:[#allocation14 + $0x1058] sm:$0xff]  ;;  %v3898_v41 = vld [vmem:[#allocation17 + $0x628] sm:$0xff] }
 0x3ae   :  { %7446 = vmatprep.subr.bf16.mxu1 %v7445_v14  ;;  %7462 = vmatprep.subr.bf16.mxu0 %v7461_v15  ;;  %v7481_v22 = vpack.c.bf16 %v1002_v11, %v936_v8  ;;  %v7553_v47 = vpack.c.bf16 %v3898_v41, %v3834_v40  ;;  %v3962_v52 = vld [vmem:[#allocation17 + $0x828] sm:$0xff]  ;;  %v3836_v40 = vld [vmem:[#allocation17 + $0x438] sm:$0xff] }
 0x3af   :  { %v4026_v53 = vld [vmem:[#allocation17 + $0xa28] sm:$0xff]  ;;  %v3900_v41 = vld [vmem:[#allocation17 + $0x638] sm:$0xff] }
 0x3b0   :  { %v7557_v59 = vpack.c.bf16 %v4026_v53, %v3962_v52  ;;  %v4154_v7 = vld [vmem:[#allocation17 + $0xe28] sm:$0xff]  ;;  %v3964_v52 = vld [vmem:[#allocation17 + $0x838] sm:$0xff] }
 0x3b1   :  { %7448 = vmatpush1.bf16.msra.mxu1 %v7447_v26  ;;  %7464 = vmatpush1.bf16.msra.mxu0 %v7463_v27  ;;  %v937_v26 = vld [vmem:[#allocation14 + $0xe50] sm:$0xff]  ;;  %v1003_v27 = vld [vmem:[#allocation14 + $0x1060] sm:$0xff] }
 0x3b2   :  { %7450 = vmatprep.subr.bf16.mxu1 %v7449_v30  ;;  %7466 = vmatprep.subr.bf16.mxu0 %v7465_v31  ;;  %v3702_v30 = vld [vmem:[#allocation17 + $0x8] sm:$0xff]  ;;  %v7499_v33 = vpack.c.bf16 %v1003_v27, %v937_v26  ;;  %v3704_v26 = vld [vmem:[#allocation17 + $0x18] sm:$0xff] }
 0x3b3   :  { %v3766_v31 = vld [vmem:[#allocation17 + $0x208] sm:$0xff]  ;;  %v3768_v27 = vld [vmem:[#allocation17 + $0x218] sm:$0xff] }
 0x3b4   :  { %v7517_v37 = vpack.c.bf16 %v3766_v31, %v3702_v30  ;;  %v7533_v34 = vpack.c.bf16 %v3768_v27, %v3704_v26  ;;  %v4089_v26 = vld [vmem:[#allocation17 + $0xc20] sm:$0xff]  ;;  %v4028_v53 = vld [vmem:[#allocation17 + $0xa38] sm:$0xff] }
 0x3b5   :  { %7452 = vmatpush1.bf16.msra.mxu1 %v7451_v38  ;;  %7468 = vmatpush1.bf16.msra.mxu0 %v7467_v39  ;;  %v3701_v38 = vld [vmem:[#allocation17] sm:$0xff] }
 0x3b6   :  { %7470 = vmatprep.subr.bf16.mxu1 %v7469_v42  ;;  %7486 = vmatprep.subr.bf16.mxu0 %v7485_v43  ;;  %v3765_v39 = vld [vmem:[#allocation17 + $0x200] sm:$0xff]  ;;  %v3830_v42 = vld [vmem:[#allocation17 + $0x408] sm:$0xff] }
 0x3b7   :  { %v3894_v43 = vld [vmem:[#allocation17 + $0x608] sm:$0xff]  ;;  %v7519_v45 = vpack.c.bf16 %v3765_v39, %v3701_v38  ;;  %v3832_v38 = vld [vmem:[#allocation17 + $0x418] sm:$0xff]  ;;  %v4153_v27 = vld [vmem:[#allocation17 + $0xe20] sm:$0xff] }
 0x3b8   :  { %6796 = vmatmul.mubr.msk.f32.vlgmr.msra.gmra.mrb[32].mxu1 %vm223_vm1, %v8696_v60  ;;  %6797 = vmatmul.mubr.msk.f32.vlgmr.msra.gmra.mrb[30].mxu0 %vm223_vm1, %v8696_v60  ;;  %v7521_v49 = vpack.c.bf16 %v3894_v43, %v3830_v42  ;;  %v3896_v39 = vld [vmem:[#allocation17 + $0x618] sm:$0xff] }
 0x3b9   :  { %7472 = vmatpush1.bf16.msra.mxu1 %v7471_v50  ;;  %7488 = vmatpush1.bf16.msra.mxu0 %v7487_v51  ;;  %v3829_v50 = vld [vmem:[#allocation17 + $0x400] sm:$0xff]  ;;  %v7537_v46 = vpack.c.bf16 %v3896_v39, %v3832_v38 }
 0x3ba   :  { %7474 = vmatprep.subr.bf16.mxu1 %v7473_v54  ;;  %7490 = vmatprep.subr.bf16.mxu0 %v7489_v55  ;;  %v3893_v51 = vld [vmem:[#allocation17 + $0x600] sm:$0xff]  ;;  %v3958_v54 = vld [vmem:[#allocation17 + $0x808] sm:$0xff] }
 0x3bb   :  { %v8794_v9 = vpop.f32.mrb[6].mxu1  ;;  %v8796_v10 = vpop.f32.mrb[4].mxu0  ;;  %3552 = vmatprep.mubr.f32.mxu1 %v9393_v1  ;;  %3623 = vmatprep.mubr.f32.mxu0 %v9393_v1  ;;  %v4022_v55 = vld [vmem:[#allocation17 + $0xa08] sm:$0xff]  ;;  %v7523_v57 = vpack.c.bf16 %v3893_v51, %v3829_v50  ;;  %v3960_v50 = vld [vmem:[#allocation17 + $0x818] sm:$0xff]  ;;  %v3709_v38 = vld [vmem:[#allocation17 + $0x40] sm:$0xff] }
 0x3bc   :  { %v8800_v14 = vpop.f32.mrb[7].mxu1  ;;  %v8802_v15 = vpop.f32.mrb[5].mxu0  ;;  %v7525_v62 = vpack.c.bf16 %v4022_v55, %v3958_v54  ;;  %v4024_v51 = vld [vmem:[#allocation17 + $0xa18] sm:$0xff]  ;;  %v3773_v39 = vld [vmem:[#allocation17 + $0x240] sm:$0xff] }
 0x3bd   :  { %7476 = vmatpush1.bf16.msra.mxu1 %v7475_v63  ;;  %7492 = vmatpush1.bf16.msra.mxu0 %v7491_v0  ;;  %v3957_v63 = vld [vmem:[#allocation17 + $0x800] sm:$0xff]  ;;  %v7541_v58 = vpack.c.bf16 %v4024_v51, %v3960_v50 }
 0x3be   :  { %7478 = vmatprep.subr.bf16.mxu1 %v7477_v4  ;;  %7494 = vmatprep.subr.bf16.mxu0 %v7493_v5  ;;  %v4021_v0 = vld [vmem:[#allocation17 + $0xa00] sm:$0xff]  ;;  %v1006_v5 = vld [vmem:[#allocation14 + $0x1078] sm:$0xff] }
 0x3bf   :  { %v7527_v13 = vpack.c.bf16 %v4021_v0, %v3957_v63  ;;  %v7513_v18 = vpack.c.bf16 %v1006_v5, %v940_v2  ;;  %v4088_v63 = vld [vmem:[#allocation17 + $0xc18] sm:$0xff]  ;;  %v3837_v50 = vld [vmem:[#allocation17 + $0x440] sm:$0xff] }
 0x3c0   :  { %v4152_v5 = vld [vmem:[#allocation17 + $0xe18] sm:$0xff]  ;;  %v3901_v51 = vld [vmem:[#allocation17 + $0x640] sm:$0xff] }
 0x3c1   :  { %7480 = vmatpush1.bf16.msra.mxu1 %v7479_v16  ;;  %7496 = vmatpush1.bf16.msra.mxu0 %v7495_v17  ;;  %v939_v16 = vld [vmem:[#allocation14 + $0xe60] sm:$0xff]  ;;  %v1005_v17 = vld [vmem:[#allocation14 + $0x1070] sm:$0xff] }
 0x3c2   :  { %7482 = vmatprep.subr.bf16.mxu1 %v7481_v22  ;;  %7498 = vmatprep.subr.bf16.mxu0 %v7497_v23  ;;  %v4085_v22 = vld [vmem:[#allocation17 + $0xc00] sm:$0xff]  ;;  %v7515_v30 = vpack.c.bf16 %v1005_v17, %v939_v16 }
 0x3c3   :  { %v4149_v23 = vld [vmem:[#allocation17 + $0xe00] sm:$0xff] }
 0x3c4   :  { %v7531_v31 = vpack.c.bf16 %v4149_v23, %v4085_v22  ;;  %v7545_v22 = vpack.c.bf16 %v4152_v5, %v4088_v63  ;;  %v7561_v23 = vpack.c.bf16 %v4154_v7, %v4090_v6  ;;  %v3965_v63 = vld [vmem:[#allocation17 + $0x840] sm:$0xff]  ;;  %v4092_v6 = vld [vmem:[#allocation17 + $0xc38] sm:$0xff] }
 0x3c5   :  { %7484 = vmatpush1.bf16.msra.mxu1 %v7483_v32  ;;  %7500 = vmatpush1.bf16.msra.mxu0 %v7499_v33  ;;  %v3703_v32 = vld [vmem:[#allocation17 + $0x10] sm:$0xff]  ;;  %v4029_v5 = vld [vmem:[#allocation17 + $0xa40] sm:$0xff] }
 0x3c6   :  { %7502 = vmatprep.subr.bf16.mxu1 %v7501_v36  ;;  %7518 = vmatprep.subr.bf16.mxu0 %v7517_v37  ;;  %v3767_v33 = vld [vmem:[#allocation17 + $0x210] sm:$0xff]  ;;  %v3705_v36 = vld [vmem:[#allocation17 + $0x20] sm:$0xff] }
 0x3c7   :  { %v3769_v37 = vld [vmem:[#allocation17 + $0x220] sm:$0xff]  ;;  %v7535_v42 = vpack.c.bf16 %v3767_v33, %v3703_v32  ;;  %v7563_v33 = vpack.c.bf16 %v4153_v27, %v4089_v26  ;;  %v7591_v27 = vpack.c.bf16 %v4029_v5, %v3965_v63 }
 0x3c8   :  { %6798 = vmatmul.mubr.msk.f32.vlgmr.msra.gmra.mrb[34].mxu1 %vm223_vm1, %v8696_v60  ;;  %6799 = vmatmul.mubr.msk.f32.vlgmr.msra.gmra.mrb[32].mxu0 %vm223_vm1, %v8696_v60  ;;  %v7551_v43 = vpack.c.bf16 %v3769_v37, %v3705_v36  ;;  %v7565_v36 = vpack.c.bf16 %v3772_v29, %v3708_v28  ;;  %v4091_v28 = vld [vmem:[#allocation17 + $0xc30] sm:$0xff] }
 0x3c9   :  { %7504 = vmatpush1.bf16.msra.mxu1 %v7503_v44  ;;  %7520 = vmatpush1.bf16.msra.mxu0 %v7519_v45  ;;  %v3831_v44 = vld [vmem:[#allocation17 + $0x410] sm:$0xff] }
 0x3ca   :  { %7506 = vmatprep.subr.bf16.mxu1 %v7505_v48  ;;  %7522 = vmatprep.subr.bf16.mxu0 %v7521_v49  ;;  %v3895_v45 = vld [vmem:[#allocation17 + $0x610] sm:$0xff]  ;;  %v3833_v48 = vld [vmem:[#allocation17 + $0x420] sm:$0xff] }
 0x3cb   :  { %v8808_v3 = vpop.f32.mrb[8].mxu1  ;;  %v8810_v4 = vpop.f32.mrb[6].mxu0  ;;  %3694 = vmatprep.mubr.f32.mxu1 %v9393_v1  ;;  %4277 = vmatprep.mubr.f32.mxu0 %v9393_v1  ;;  %v3897_v49 = vld [vmem:[#allocation17 + $0x620] sm:$0xff]  ;;  %v7539_v54 = vpack.c.bf16 %v3895_v45, %v3831_v44  ;;  %v7583_v45 = vpack.c.bf16 %v3773_v39, %v3709_v38  ;;  %v4155_v29 = vld [vmem:[#allocation17 + $0xe30] sm:$0xff] }
 0x3cc   :  { %v8814_v8 = vpop.f32.mrb[9].mxu1  ;;  %v8816_v11 = vpop.f32.mrb[7].mxu0  ;;  %v7555_v55 = vpack.c.bf16 %v3897_v49, %v3833_v48  ;;  %v7569_v48 = vpack.c.bf16 %v3900_v41, %v3836_v40  ;;  %v7579_v38 = vpack.c.bf16 %v4155_v29, %v4091_v28  ;;  %v3711_v40 = vld [vmem:[#allocation17 + $0x50] sm:$0xff]  ;;  %v4096_v28 = vld [vmem:[#allocation17 + $0xc58] sm:$0xff] }
 0x3cd   :  { %7508 = vmatpush1.bf16.msra.mxu1 %v7507_v56  ;;  %7524 = vmatpush1.bf16.msra.mxu0 %v7523_v57  ;;  %v3959_v56 = vld [vmem:[#allocation17 + $0x810] sm:$0xff] }
 0x3ce   :  { %7510 = vmatprep.subr.bf16.mxu1 %v7509_v61  ;;  %7526 = vmatprep.subr.bf16.mxu0 %v7525_v62  ;;  %v4023_v57 = vld [vmem:[#allocation17 + $0xa10] sm:$0xff]  ;;  %v3961_v61 = vld [vmem:[#allocation17 + $0x820] sm:$0xff] }
 0x3cf   :  { %v4025_v62 = vld [vmem:[#allocation17 + $0xa20] sm:$0xff]  ;;  %v7543_v16 = vpack.c.bf16 %v4023_v57, %v3959_v56  ;;  %v7587_v57 = vpack.c.bf16 %v3901_v51, %v3837_v50  ;;  %v3775_v41 = vld [vmem:[#allocation17 + $0x250] sm:$0xff] }
 0x3d0   :  { %v7559_v17 = vpack.c.bf16 %v4025_v62, %v3961_v61  ;;  %v7573_v61 = vpack.c.bf16 %v4028_v53, %v3964_v52  ;;  %v7599_v50 = vpack.c.bf16 %v3775_v41, %v3711_v40  ;;  %v3839_v52 = vld [vmem:[#allocation17 + $0x450] sm:$0xff] }
 0x3d1   :  { %7512 = vmatpush1.bf16.msra.mxu1 %v7511_v12  ;;  %7528 = vmatpush1.bf16.msra.mxu0 %v7527_v13  ;;  %v3903_v53 = vld [vmem:[#allocation17 + $0x650] sm:$0xff] }
 0x3d2   :  { %7514 = vmatprep.subr.bf16.mxu1 %v7513_v18  ;;  %7530 = vmatprep.subr.bf16.mxu0 %v7529_v21  ;;  %v4087_v18 = vld [vmem:[#allocation17 + $0xc10] sm:$0xff]  ;;  %v7603_v63 = vpack.c.bf16 %v3903_v53, %v3839_v52 }
 0x3d3   :  { %v4151_v21 = vld [vmem:[#allocation17 + $0xe10] sm:$0xff] }
 0x3d4   :  { %v7547_v32 = vpack.c.bf16 %v4151_v21, %v4087_v18  ;;  %v4094_v18 = vld [vmem:[#allocation17 + $0xc48] sm:$0xff] }
 0x3d5   :  { %7516 = vmatpush1.bf16.msra.mxu1 %v7515_v30  ;;  %7532 = vmatpush1.bf16.msra.mxu0 %v7531_v31  ;;  %v3710_v30 = vld [vmem:[#allocation17 + $0x48] sm:$0xff] }
 0x3d6   :  { %7534 = vmatprep.subr.bf16.mxu1 %v7533_v34  ;;  %7550 = vmatprep.subr.bf16.mxu0 %v7549_v35  ;;  %v3774_v31 = vld [vmem:[#allocation17 + $0x248] sm:$0xff]  ;;  %v3707_v34 = vld [vmem:[#allocation17 + $0x30] sm:$0xff] }
 0x3d7   :  { %v3771_v35 = vld [vmem:[#allocation17 + $0x230] sm:$0xff]  ;;  %v7581_v37 = vpack.c.bf16 %v3774_v31, %v3710_v30  ;;  %v4158_v21 = vld [vmem:[#allocation17 + $0xe48] sm:$0xff] }
 0x3d8   :  { %6800 = vmatmul.mubr.msk.f32.vlgmr.msra.gmra.mrb[36].mxu1 %vm223_vm1, %v8696_v60  ;;  %6801 = vmatmul.mubr.msk.f32.vlgmr.msra.gmra.mrb[34].mxu0 %vm223_vm1, %v8696_v60  ;;  %v7567_v44 = vpack.c.bf16 %v3771_v35, %v3707_v34  ;;  %v7593_v31 = vpack.c.bf16 %v4158_v21, %v4094_v18  ;;  %v3712_v34 = vld [vmem:[#allocation17 + $0x58] sm:$0xff] }
 0x3d9   :  { %7536 = vmatpush1.bf16.msra.mxu1 %v7535_v42  ;;  %7552 = vmatpush1.bf16.msra.mxu0 %v7551_v43  ;;  %v3838_v42 = vld [vmem:[#allocation17 + $0x448] sm:$0xff]  ;;  %v3776_v35 = vld [vmem:[#allocation17 + $0x258] sm:$0xff] }
 0x3da   :  { %7538 = vmatprep.subr.bf16.mxu1 %v7537_v46  ;;  %7554 = vmatprep.subr.bf16.mxu0 %v7553_v47  ;;  %v3902_v43 = vld [vmem:[#allocation17 + $0x648] sm:$0xff]  ;;  %v3835_v46 = vld [vmem:[#allocation17 + $0x430] sm:$0xff] }
 0x3db   :  { %v8822_v0 = vpop.f32.mrb[10].mxu1  ;;  %v8824_v2 = vpop.f32.mrb[8].mxu0  ;;  %4348 = vmatprep.mubr.f32.mxu1 %v9393_v1  ;;  %4419 = vmatprep.mubr.f32.mxu0 %v9393_v1  ;;  %v3899_v47 = vld [vmem:[#allocation17 + $0x630] sm:$0xff]  ;;  %v7585_v49 = vpack.c.bf16 %v3902_v43, %v3838_v42  ;;  %v7597_v42 = vpack.c.bf16 %v3776_v35, %v3712_v34 }
 0x3dc   :  { %v8828_v12 = vpop.f32.mrb[11].mxu1  ;;  %v8830_v13 = vpop.f32.mrb[9].mxu0  ;;  %v7571_v56 = vpack.c.bf16 %v3899_v47, %v3835_v46  ;;  %v3840_v46 = vld [vmem:[#allocation17 + $0x458] sm:$0xff] }
 0x3dd   :  { %7540 = vmatpush1.bf16.msra.mxu1 %v7539_v54  ;;  %7556 = vmatpush1.bf16.msra.mxu0 %v7555_v55  ;;  %v3966_v54 = vld [vmem:[#allocation17 + $0x848] sm:$0xff]  ;;  %v3904_v47 = vld [vmem:[#allocation17 + $0x658] sm:$0xff] }
 0x3de   :  { %7542 = vmatprep.subr.bf16.mxu1 %v7541_v58  ;;  %7558 = vmatprep.subr.bf16.mxu0 %v7557_v59  ;;  %v4030_v55 = vld [vmem:[#allocation17 + $0xa48] sm:$0xff]  ;;  %v3963_v58 = vld [vmem:[#allocation17 + $0x830] sm:$0xff] }
 0x3df   :  { %v4027_v59 = vld [vmem:[#allocation17 + $0xa30] sm:$0xff]  ;;  %v7589_v62 = vpack.c.bf16 %v4030_v55, %v3966_v54  ;;  %v7601_v54 = vpack.c.bf16 %v3904_v47, %v3840_v46  ;;  %v3718_v46 = vld [vmem:[#allocation17 + $0x88] sm:$0xff] }
 0x3e0   :  { %v7575_v26 = vpack.c.bf16 %v4027_v59, %v3963_v58  ;;  %v3968_v58 = vld [vmem:[#allocation17 + $0x858] sm:$0xff]  ;;  %v3782_v47 = vld [vmem:[#allocation17 + $0x288] sm:$0xff] }
 0x3e1   :  { %7544 = vmatpush1.bf16.msra.mxu1 %v7543_v16  ;;  %7560 = vmatpush1.bf16.msra.mxu0 %v7559_v17  ;;  %v4156_v17 = vld [vmem:[#allocation17 + $0xe38] sm:$0xff]  ;;  %v7645_v53 = vpack.c.bf16 %v3782_v47, %v3718_v46  ;;  %v4102_v46 = vld [vmem:[#allocation17 + $0xc88] sm:$0xff] }
 0x3e2   :  { %7546 = vmatprep.subr.bf16.mxu1 %v7545_v22  ;;  %7562 = vmatprep.subr.bf16.mxu0 %v7561_v23  ;;  %v7577_v30 = vpack.c.bf16 %v4156_v17, %v4092_v6  ;;  %v4032_v59 = vld [vmem:[#allocation17 + $0xa58] sm:$0xff]  ;;  %v3967_v6 = vld [vmem:[#allocation17 + $0x850] sm:$0xff]  ;;  %v4166_v47 = vld [vmem:[#allocation17 + $0xe88] sm:$0xff] }
 0x3e3   :  { %v4031_v17 = vld [vmem:[#allocation17 + $0xa50] sm:$0xff]  ;;  %v7605_v18 = vpack.c.bf16 %v4032_v59, %v3968_v58  ;;  %v3846_v58 = vld [vmem:[#allocation17 + $0x488] sm:$0xff] }
 0x3e4   :  { %v3910_v59 = vld [vmem:[#allocation17 + $0x688] sm:$0xff] }
 0x3e5   :  { %7548 = vmatpush1.bf16.msra.mxu1 %v7547_v32  ;;  %7564 = vmatpush1.bf16.msra.mxu0 %v7563_v33  ;;  %v4093_v32 = vld [vmem:[#allocation17 + $0xc40] sm:$0xff] }
 0x3e6   :  { %7566 = vmatprep.subr.bf16.mxu1 %v7565_v36  ;;  %7582 = vmatprep.subr.bf16.mxu0 %v7581_v37  ;;  %v4157_v33 = vld [vmem:[#allocation17 + $0xe40] sm:$0xff]  ;;  %v3714_v36 = vld [vmem:[#allocation17 + $0x68] sm:$0xff] }
 0x3e7   :  { %v3778_v37 = vld [vmem:[#allocation17 + $0x268] sm:$0xff]  ;;  %v7595_v39 = vpack.c.bf16 %v4157_v33, %v4093_v32 }
 0x3e8   :  { %6802 = vmatmul.mubr.msk.f32.vlgmr.msra.gmra.mrb[38].mxu1 %vm223_vm1, %v8696_v60  ;;  %6803 = vmatmul.mubr.msk.f32.vlgmr.msra.gmra.mrb[36].mxu0 %vm223_vm1, %v8696_v60  ;;  %v7613_v43 = vpack.c.bf16 %v3778_v37, %v3714_v36  ;;  %v4098_v32 = vld [vmem:[#allocation17 + $0xc68] sm:$0xff]  ;;  %v7607_v36 = vpack.c.bf16 %v4031_v17, %v3967_v6  ;;  %v7649_v17 = vpack.c.bf16 %v3910_v59, %v3846_v58  ;;  %v3720_v58 = vld [vmem:[#allocation17 + $0x98] sm:$0xff] }
 0x3e9   :  { %7568 = vmatpush1.bf16.msra.mxu1 %v7567_v44  ;;  %7584 = vmatpush1.bf16.msra.mxu0 %v7583_v45  ;;  %v3713_v44 = vld [vmem:[#allocation17 + $0x60] sm:$0xff]  ;;  %v4162_v33 = vld [vmem:[#allocation17 + $0xe68] sm:$0xff]  ;;  %v3784_v59 = vld [vmem:[#allocation17 + $0x298] sm:$0xff] }
 0x3ea   :  { %7570 = vmatprep.subr.bf16.mxu1 %v7569_v48  ;;  %7586 = vmatprep.subr.bf16.mxu0 %v7585_v49  ;;  %v3777_v45 = vld [vmem:[#allocation17 + $0x260] sm:$0xff]  ;;  %v3842_v48 = vld [vmem:[#allocation17 + $0x468] sm:$0xff]  ;;  %v7625_v41 = vpack.c.bf16 %v4162_v33, %v4098_v32 }
 0x3eb   :  { %v8836_v7 = vpop.f32.mrb[12].mxu1  ;;  %v8838_v16 = vpop.f32.mrb[10].mxu0  ;;  %4490 = vmatprep.mubr.f32.mxu1 %v9393_v1  ;;  %4561 = vmatprep.mubr.f32.mxu0 %v9393_v1  ;;  %v3906_v49 = vld [vmem:[#allocation17 + $0x668] sm:$0xff]  ;;  %v7615_v51 = vpack.c.bf16 %v3777_v45, %v3713_v44  ;;  %v3716_v44 = vld [vmem:[#allocation17 + $0x78] sm:$0xff] }
 0x3ec   :  { %v8842_v22 = vpop.f32.mrb[13].mxu1  ;;  %v8844_v23 = vpop.f32.mrb[11].mxu0  ;;  %v7617_v55 = vpack.c.bf16 %v3906_v49, %v3842_v48  ;;  %v3780_v45 = vld [vmem:[#allocation17 + $0x278] sm:$0xff] }
 0x3ed   :  { %7572 = vmatpush1.bf16.msra.mxu1 %v7571_v56  ;;  %7588 = vmatpush1.bf16.msra.mxu0 %v7587_v57  ;;  %v3841_v56 = vld [vmem:[#allocation17 + $0x460] sm:$0xff]  ;;  %v7629_v52 = vpack.c.bf16 %v3780_v45, %v3716_v44  ;;  %v4164_v45 = vld [vmem:[#allocation17 + $0xe78] sm:$0xff] }
 0x3ee   :  { %7574 = vmatprep.subr.bf16.mxu1 %v7573_v61  ;;  %7590 = vmatprep.subr.bf16.mxu0 %v7589_v62  ;;  %v3905_v57 = vld [vmem:[#allocation17 + $0x660] sm:$0xff]  ;;  %v3970_v61 = vld [vmem:[#allocation17 + $0x868] sm:$0xff] }
 0x3ef   :  { %v4034_v62 = vld [vmem:[#allocation17 + $0xa68] sm:$0xff]  ;;  %v7619_v5 = vpack.c.bf16 %v3905_v57, %v3841_v56  ;;  %v3844_v56 = vld [vmem:[#allocation17 + $0x478] sm:$0xff] }
 0x3f0   :  { %v7621_v21 = vpack.c.bf16 %v4034_v62, %v3970_v61  ;;  %v3908_v57 = vld [vmem:[#allocation17 + $0x678] sm:$0xff] }
 0x3f1   :  { %7576 = vmatpush1.bf16.msra.mxu1 %v7575_v26  ;;  %7592 = vmatpush1.bf16.msra.mxu0 %v7591_v27  ;;  %v3969_v26 = vld [vmem:[#allocation17 + $0x860] sm:$0xff]  ;;  %v7633_v6 = vpack.c.bf16 %v3908_v57, %v3844_v56 }
 0x3f2   :  { %7578 = vmatprep.subr.bf16.mxu1 %v7577_v30  ;;  %7594 = vmatprep.subr.bf16.mxu0 %v7593_v31  ;;  %v4033_v27 = vld [vmem:[#allocation17 + $0xa60] sm:$0xff]  ;;  %v4160_v31 = vld [vmem:[#allocation17 + $0xe58] sm:$0xff] }
 0x3f3   :  { %v7623_v37 = vpack.c.bf16 %v4033_v27, %v3969_v26  ;;  %v7609_v40 = vpack.c.bf16 %v4160_v31, %v4096_v28  ;;  %v3972_v26 = vld [vmem:[#allocation17 + $0x878] sm:$0xff]  ;;  %v3974_v28 = vld [vmem:[#allocation17 + $0x888] sm:$0xff]  ;;  %v4101_v56 = vld [vmem:[#allocation17 + $0xc80] sm:$0xff] }
 0x3f4   :  { %v4036_v27 = vld [vmem:[#allocation17 + $0xa78] sm:$0xff]  ;;  %v4038_v31 = vld [vmem:[#allocation17 + $0xa88] sm:$0xff]  ;;  %v4165_v57 = vld [vmem:[#allocation17 + $0xe80] sm:$0xff] }
 0x3f5   :  { %7580 = vmatpush1.bf16.msra.mxu1 %v7579_v38  ;;  %7596 = vmatpush1.bf16.msra.mxu0 %v7595_v39  ;;  %v4095_v38 = vld [vmem:[#allocation17 + $0xc50] sm:$0xff] }
 0x3f6   :  { %7598 = vmatprep.subr.bf16.mxu1 %v7597_v42  ;;  %7614 = vmatprep.subr.bf16.mxu0 %v7613_v43  ;;  %v4159_v39 = vld [vmem:[#allocation17 + $0xe50] sm:$0xff]  ;;  %v4097_v42 = vld [vmem:[#allocation17 + $0xc60] sm:$0xff] }
 0x3f7   :  { %v4161_v43 = vld [vmem:[#allocation17 + $0xe60] sm:$0xff]  ;;  %v7611_v48 = vpack.c.bf16 %v4159_v39, %v4095_v38  ;;  %v7637_v38 = vpack.c.bf16 %v4036_v27, %v3972_v26  ;;  %v7653_v39 = vpack.c.bf16 %v4038_v31, %v3974_v28  ;;  %v3848_v28 = vld [vmem:[#allocation17 + $0x498] sm:$0xff] }
 0x3f8   :  { %6804 = vmatmul.mubr.msk.f32.vlgmr.msra.gmra.mrb[40].mxu1 %vm223_vm1, %v8696_v60  ;;  %6805 = vmatmul.mubr.msk.f32.vlgmr.msra.gmra.mrb[38].mxu0 %vm223_vm1, %v8696_v60  ;;  %v7627_v49 = vpack.c.bf16 %v4161_v43, %v4097_v42  ;;  %v4100_v42 = vld [vmem:[#allocation17 + $0xc78] sm:$0xff]  ;;  %v3721_v26 = vld [vmem:[#allocation17 + $0xa0] sm:$0xff] }
 0x3f9   :  { %7600 = vmatpush1.bf16.msra.mxu1 %v7599_v50  ;;  %7616 = vmatpush1.bf16.msra.mxu0 %v7615_v51  ;;  %v3715_v50 = vld [vmem:[#allocation17 + $0x70] sm:$0xff]  ;;  %v3785_v27 = vld [vmem:[#allocation17 + $0x2a0] sm:$0xff]  ;;  %v3912_v31 = vld [vmem:[#allocation17 + $0x698] sm:$0xff] }
 0x3fa   :  { %7602 = vmatprep.subr.bf16.mxu1 %v7601_v54  ;;  %7618 = vmatprep.subr.bf16.mxu0 %v7617_v55  ;;  %v3779_v51 = vld [vmem:[#allocation17 + $0x270] sm:$0xff]  ;;  %v3717_v54 = vld [vmem:[#allocation17 + $0x80] sm:$0xff] }
 0x3fb   :  { %v8850_v29 = vpop.f32.mrb[14].mxu1  ;;  %v8852_v30 = vpop.f32.mrb[12].mxu0  ;;  %4632 = vmatprep.mubr.f32.mxu1 %v9393_v1  ;;  %4703 = vmatprep.mubr.f32.mxu0 %v9393_v1  ;;  %v3781_v55 = vld [vmem:[#allocation17 + $0x280] sm:$0xff]  ;;  %v7631_v61 = vpack.c.bf16 %v3779_v51, %v3715_v50 }
 0x3fc   :  { %v8856_v34 = vpop.f32.mrb[15].mxu1  ;;  %v8858_v35 = vpop.f32.mrb[13].mxu0  ;;  %v7647_v62 = vpack.c.bf16 %v3781_v55, %v3717_v54  ;;  %v7641_v54 = vpack.c.bf16 %v4164_v45, %v4100_v42  ;;  %v7657_v55 = vpack.c.bf16 %v4166_v47, %v4102_v46  ;;  %v3849_v42 = vld [vmem:[#allocation17 + $0x4a0] sm:$0xff]  ;;  %v3976_v46 = vld [vmem:[#allocation17 + $0x898] sm:$0xff] }
 0x3fd   :  { %7604 = vmatpush1.bf16.msra.mxu1 %v7603_v63  ;;  %7620 = vmatpush1.bf16.msra.mxu0 %v7619_v5  ;;  %v3843_v63 = vld [vmem:[#allocation17 + $0x470] sm:$0xff]  ;;  %v3913_v45 = vld [vmem:[#allocation17 + $0x6a0] sm:$0xff]  ;;  %v4040_v47 = vld [vmem:[#allocation17 + $0xa98] sm:$0xff] }
 0x3fe   :  { %7606 = vmatprep.subr.bf16.mxu1 %v7605_v18  ;;  %7622 = vmatprep.subr.bf16.mxu0 %v7621_v21  ;;  %v3907_v5 = vld [vmem:[#allocation17 + $0x670] sm:$0xff]  ;;  %v3845_v18 = vld [vmem:[#allocation17 + $0x480] sm:$0xff] }
 0x3ff   :  { %v3909_v21 = vld [vmem:[#allocation17 + $0x680] sm:$0xff]  ;;  %v7635_v32 = vpack.c.bf16 %v3907_v5, %v3843_v63  ;;  %v7659_v5 = vpack.c.bf16 %v4165_v57, %v4101_v56  ;;  %v7669_v56 = vpack.c.bf16 %v4040_v47, %v3976_v46  ;;  %v3723_v46 = vld [vmem:[#allocation17 + $0xb0] sm:$0xff] }
 0x400   :  { %v7651_v33 = vpack.c.bf16 %v3909_v21, %v3845_v18  ;;  %v7661_v18 = vpack.c.bf16 %v3784_v59, %v3720_v58  ;;  %v3977_v58 = vld [vmem:[#allocation17 + $0x8a0] sm:$0xff]  ;;  %v3787_v47 = vld [vmem:[#allocation17 + $0x2b0] sm:$0xff] }
 0x401   :  { %7608 = vmatpush1.bf16.msra.mxu1 %v7607_v36  ;;  %7624 = vmatpush1.bf16.msra.mxu0 %v7623_v37  ;;  %v3971_v36 = vld [vmem:[#allocation17 + $0x870] sm:$0xff]  ;;  %v4041_v59 = vld [vmem:[#allocation17 + $0xaa0] sm:$0xff] }
 0x402   :  { %7610 = vmatprep.subr.bf16.mxu1 %v7609_v40  ;;  %7626 = vmatprep.subr.bf16.mxu0 %v7625_v41  ;;  %v4035_v37 = vld [vmem:[#allocation17 + $0xa70] sm:$0xff]  ;;  %v3973_v40 = vld [vmem:[#allocation17 + $0x880] sm:$0xff] }
 0x403   :  { %v4037_v41 = vld [vmem:[#allocation17 + $0xa80] sm:$0xff]  ;;  %v7639_v50 = vpack.c.bf16 %v4035_v37, %v3971_v36  ;;  %v7679_v37 = vpack.c.bf16 %v3785_v27, %v3721_v26  ;;  %v7687_v27 = vpack.c.bf16 %v4041_v59, %v3977_v58  ;;  %v7695_v58 = vpack.c.bf16 %v3787_v47, %v3723_v46  ;;  %v4108_v46 = vld [vmem:[#allocation17 + $0xcb8] sm:$0xff] }
 0x404   :  { %v7655_v51 = vpack.c.bf16 %v4037_v41, %v3973_v40  ;;  %v7665_v40 = vpack.c.bf16 %v3912_v31, %v3848_v28  ;;  %v4103_v28 = vld [vmem:[#allocation17 + $0xc90] sm:$0xff] }
 0x405   :  { %7612 = vmatpush1.bf16.msra.mxu1 %v7611_v48  ;;  %7628 = vmatpush1.bf16.msra.mxu0 %v7627_v49  ;;  %v4167_v31 = vld [vmem:[#allocation17 + $0xe90] sm:$0xff] }
 0x406   :  { %7630 = vmatprep.subr.bf16.mxu1 %v7629_v52  ;;  %7646 = vmatprep.subr.bf16.mxu0 %v7645_v53  ;;  %v4099_v52 = vld [vmem:[#allocation17 + $0xc70] sm:$0xff] }
 0x407   :  { %v4163_v53 = vld [vmem:[#allocation17 + $0xe70] sm:$0xff] }
 0x408   :  { %6806 = vmatmul.mubr.msk.f32.vlgmr.msra.gmra.mrb[42].mxu1 %vm223_vm1, %v8696_v60  ;;  %6807 = vmatmul.mubr.msk.f32.vlgmr.msra.gmra.mrb[40].mxu0 %vm223_vm1, %v8696_v60  ;;  %v7643_v63 = vpack.c.bf16 %v4163_v53, %v4099_v52  ;;  %v7683_v53 = vpack.c.bf16 %v3913_v45, %v3849_v42  ;;  %v7675_v42 = vpack.c.bf16 %v4167_v31, %v4103_v28  ;;  %v3980_v28 = vld [vmem:[#allocation17 + $0x8b8] sm:$0xff] }
 0x409   :  { %7632 = vmatpush1.bf16.msra.mxu1 %v7631_v61  ;;  %7648 = vmatpush1.bf16.msra.mxu0 %v7647_v62  ;;  %v3722_v61 = vld [vmem:[#allocation17 + $0xa8] sm:$0xff]  ;;  %v4044_v31 = vld [vmem:[#allocation17 + $0xab8] sm:$0xff] }
 0x40a   :  { %7634 = vmatprep.subr.bf16.mxu1 %v7633_v6  ;;  %7650 = vmatprep.subr.bf16.mxu0 %v7649_v17  ;;  %v3786_v62 = vld [vmem:[#allocation17 + $0x2a8] sm:$0xff]  ;;  %v3719_v6 = vld [vmem:[#allocation17 + $0x90] sm:$0xff] }
 0x40b   :  { %v8864_v43 = vpop.f32.mrb[16].mxu1  ;;  %v8866_v44 = vpop.f32.mrb[14].mxu0  ;;  %4774 = vmatprep.mubr.f32.mxu1 %v9393_v1  ;;  %4845 = vmatprep.mubr.f32.mxu0 %v9393_v1  ;;  %v3783_v17 = vld [vmem:[#allocation17 + $0x290] sm:$0xff]  ;;  %v7677_v21 = vpack.c.bf16 %v3786_v62, %v3722_v61  ;;  %v4104_v61 = vld [vmem:[#allocation17 + $0xc98] sm:$0xff] }
 0x40c   :  { %v8870_v48 = vpop.f32.mrb[17].mxu1  ;;  %v8872_v49 = vpop.f32.mrb[15].mxu0  ;;  %v7663_v36 = vpack.c.bf16 %v3783_v17, %v3719_v6  ;;  %v4106_v6 = vld [vmem:[#allocation17 + $0xca8] sm:$0xff] }
 0x40d   :  { %9395 = vst [vmem:[#allocation32_spill] sm:$0xff] %v8872_v49  ;;  %7636 = vmatpush1.bf16.msra.mxu1 %v7635_v32  ;;  %7652 = vmatpush1.bf16.msra.mxu0 %v7651_v33  ;;  %v3850_v32 = vld [vmem:[#allocation17 + $0x4a8] sm:$0xff] }
 0x40e   :  { %7638 = vmatprep.subr.bf16.mxu1 %v7637_v38  ;;  %7654 = vmatprep.subr.bf16.mxu0 %v7653_v39  ;;  %v3914_v33 = vld [vmem:[#allocation17 + $0x6a8] sm:$0xff]  ;;  %v3847_v38 = vld [vmem:[#allocation17 + $0x490] sm:$0xff] }
 0x40f   :  { %v3911_v39 = vld [vmem:[#allocation17 + $0x690] sm:$0xff]  ;;  %v7681_v41 = vpack.c.bf16 %v3914_v33, %v3850_v32  ;;  %v4170_v17 = vld [vmem:[#allocation17 + $0xea8] sm:$0xff] }
 0x410   :  { %v7667_v52 = vpack.c.bf16 %v3911_v39, %v3847_v38  ;;  %v7689_v33 = vpack.c.bf16 %v4170_v17, %v4106_v6  ;;  %v3724_v38 = vld [vmem:[#allocation17 + $0xb8] sm:$0xff] }
 0x411   :  { %7640 = vmatpush1.bf16.msra.mxu1 %v7639_v50  ;;  %7656 = vmatpush1.bf16.msra.mxu0 %v7655_v51  ;;  %v3978_v50 = vld [vmem:[#allocation17 + $0x8a8] sm:$0xff]  ;;  %v3788_v39 = vld [vmem:[#allocation17 + $0x2b8] sm:$0xff] }
 0x412   :  { %7642 = vmatprep.subr.bf16.mxu1 %v7641_v54  ;;  %7658 = vmatprep.subr.bf16.mxu0 %v7657_v55  ;;  %v4042_v51 = vld [vmem:[#allocation17 + $0xaa8] sm:$0xff]  ;;  %v3975_v54 = vld [vmem:[#allocation17 + $0x890] sm:$0xff] }
 0x413   :  { %v4039_v55 = vld [vmem:[#allocation17 + $0xa90] sm:$0xff]  ;;  %v7685_v57 = vpack.c.bf16 %v4042_v51, %v3978_v50  ;;  %v7693_v50 = vpack.c.bf16 %v3788_v39, %v3724_v38 }
 0x414   :  { %v7671_v26 = vpack.c.bf16 %v4039_v55, %v3975_v54  ;;  %v3852_v54 = vld [vmem:[#allocation17 + $0x4b8] sm:$0xff]  ;;  %v3979_v38 = vld [vmem:[#allocation17 + $0x8b0] sm:$0xff] }
 0x415   :  { %7644 = vmatpush1.bf16.msra.mxu1 %v7643_v63  ;;  %7660 = vmatpush1.bf16.msra.mxu0 %v7659_v5  ;;  %v4168_v5 = vld [vmem:[#allocation17 + $0xe98] sm:$0xff]  ;;  %v4043_v39 = vld [vmem:[#allocation17 + $0xab0] sm:$0xff] }
 0x416   :  { %7662 = vmatprep.subr.bf16.mxu1 %v7661_v18  ;;  %7678 = vmatprep.subr.bf16.mxu0 %v7677_v21  ;;  %v7673_v32 = vpack.c.bf16 %v4168_v5, %v4104_v61  ;;  %v3916_v55 = vld [vmem:[#allocation17 + $0x6b8] sm:$0xff]  ;;  %v3851_v61 = vld [vmem:[#allocation17 + $0x4b0] sm:$0xff] }
 0x417   :  { %v3915_v5 = vld [vmem:[#allocation17 + $0x6b0] sm:$0xff]  ;;  %v7697_v6 = vpack.c.bf16 %v3916_v55, %v3852_v54 }
 0x418   :  { %6808 = vmatmul.mubr.msk.f32.vlgmr.msra.gmra.mrb[44].mxu1 %vm223_vm1, %v8696_v60  ;;  %6809 = vmatmul.mubr.msk.f32.vlgmr.msra.gmra.mrb[42].mxu0 %vm223_vm1, %v8696_v60 }
 0x419   :  { %7664 = vmatpush1.bf16.msra.mxu1 %v7663_v36  ;;  %7680 = vmatpush1.bf16.msra.mxu0 %v7679_v37  ;;  %v4105_v36 = vld [vmem:[#allocation17 + $0xca0] sm:$0xff] }
 0x41a   :  { %7666 = vmatprep.subr.bf16.mxu1 %v7665_v40  ;;  %7682 = vmatprep.subr.bf16.mxu0 %v7681_v41  ;;  %v4169_v37 = vld [vmem:[#allocation17 + $0xea0] sm:$0xff]  ;;  %v3726_v40 = vld [vmem:[#allocation17 + $0xc8] sm:$0xff] }
 0x41b   :  { %v8878_v62 = vpop.f32.mrb[18].mxu1  ;;  %v8880_v63 = vpop.f32.mrb[16].mxu0  ;;  %4916 = vmatprep.mubr.f32.mxu1 %v9393_v1  ;;  %4987 = vmatprep.mubr.f32.mxu0 %v9393_v1  ;;  %v3790_v41 = vld [vmem:[#allocation17 + $0x2c8] sm:$0xff]  ;;  %v7691_v45 = vpack.c.bf16 %v4169_v37, %v4105_v36  ;;  %v7699_v36 = vpack.c.bf16 %v3915_v5, %v3851_v61 }
 0x41c   :  { %9396 = vst [vmem:[#allocation33_spill] sm:$0xff] %v8878_v62  ;;  %9397 = vst [vmem:[#allocation34_spill] sm:$0xff] %v8880_v63  ;;  %v8884_v18 = vpop.f32.mrb[19].mxu1  ;;  %v8886_v21 = vpop.f32.mrb[17].mxu0  ;;  %v7709_v51 = vpack.c.bf16 %v3790_v41, %v3726_v40  ;;  %v7701_v40 = vpack.c.bf16 %v4044_v31, %v3980_v28  ;;  %v3730_v28 = vld [vmem:[#allocation17 + $0xe8] sm:$0xff]  ;;  %v4081_v63 = vld [vmem:[#allocation17 + $0xbe0] sm:$0xff] }
 0x41d   :  { %9398 = vst [vmem:[#allocation35_spill] sm:$0xff] %v8884_v18  ;;  %9399 = vst [vmem:[#allocation36_spill] sm:$0xff] %v8886_v21  ;;  %7668 = vmatpush1.bf16.msra.mxu1 %v7667_v52  ;;  %7684 = vmatpush1.bf16.msra.mxu0 %v7683_v53  ;;  %v3725_v52 = vld [vmem:[#allocation17 + $0xc0] sm:$0xff]  ;;  %v3794_v31 = vld [vmem:[#allocation17 + $0x2e8] sm:$0xff] }
 0x41e   :  { %7670 = vmatprep.subr.bf16.mxu1 %v7669_v56  ;;  %7686 = vmatprep.subr.bf16.mxu0 %v7685_v57  ;;  %v3789_v53 = vld [vmem:[#allocation17 + $0x2c0] sm:$0xff]  ;;  %v3854_v56 = vld [vmem:[#allocation17 + $0x4c8] sm:$0xff]  ;;  %v4144_v18 = vld [vmem:[#allocation17 + $0xdd8] sm:$0xff] }
 0x41f   :  { %v3918_v57 = vld [vmem:[#allocation17 + $0x6c8] sm:$0xff]  ;;  %v7711_v59 = vpack.c.bf16 %v3789_v53, %v3725_v52 }
 0x420   :  { %v7713_v17 = vpack.c.bf16 %v3918_v57, %v3854_v56  ;;  %v4110_v52 = vld [vmem:[#allocation17 + $0xcc8] sm:$0xff]  ;;  %v7703_v56 = vpack.c.bf16 %v4043_v39, %v3979_v38  ;;  %v7741_v39 = vpack.c.bf16 %v3794_v31, %v3730_v28 }
 0x421   :  { %7672 = vmatpush1.bf16.msra.mxu1 %v7671_v26  ;;  %7688 = vmatpush1.bf16.msra.mxu0 %v7687_v27  ;;  %v3853_v26 = vld [vmem:[#allocation17 + $0x4c0] sm:$0xff]  ;;  %v4174_v53 = vld [vmem:[#allocation17 + $0xec8] sm:$0xff] }
 0x422   :  { %7674 = vmatprep.subr.bf16.mxu1 %v7673_v32  ;;  %7690 = vmatprep.subr.bf16.mxu0 %v7689_v33  ;;  %v3917_v27 = vld [vmem:[#allocation17 + $0x6c0] sm:$0xff]  ;;  %v3982_v32 = vld [vmem:[#allocation17 + $0x8c8] sm:$0xff]  ;;  %v7721_v5 = vpack.c.bf16 %v4174_v53, %v4110_v52 }
 0x423   :  { %v4046_v33 = vld [vmem:[#allocation17 + $0xac8] sm:$0xff]  ;;  %v7715_v37 = vpack.c.bf16 %v3917_v27, %v3853_v26  ;;  %v3728_v26 = vld [vmem:[#allocation17 + $0xd8] sm:$0xff] }
 0x424   :  { %v7717_v41 = vpack.c.bf16 %v4046_v33, %v3982_v32  ;;  %v3792_v27 = vld [vmem:[#allocation17 + $0x2d8] sm:$0xff] }
 0x425   :  { %7676 = vmatpush1.bf16.msra.mxu1 %v7675_v42  ;;  %7692 = vmatpush1.bf16.msra.mxu0 %v7691_v45  ;;  %v3981_v42 = vld [vmem:[#allocation17 + $0x8c0] sm:$0xff]  ;;  %v7725_v38 = vpack.c.bf16 %v3792_v27, %v3728_v26  ;;  %v3986_v26 = vld [vmem:[#allocation17 + $0x8e8] sm:$0xff] }
 0x426   :  { %7694 = vmatprep.subr.bf16.mxu1 %v7693_v50  ;;  %7710 = vmatprep.subr.bf16.mxu0 %v7709_v51  ;;  %v4045_v45 = vld [vmem:[#allocation17 + $0xac0] sm:$0xff]  ;;  %v4172_v51 = vld [vmem:[#allocation17 + $0xeb8] sm:$0xff]  ;;  %v4050_v27 = vld [vmem:[#allocation17 + $0xae8] sm:$0xff] }
 0x427   :  { %v7719_v57 = vpack.c.bf16 %v4045_v45, %v3981_v42  ;;  %v7705_v61 = vpack.c.bf16 %v4172_v51, %v4108_v46  ;;  %v3856_v42 = vld [vmem:[#allocation17 + $0x4d8] sm:$0xff]  ;;  %v3858_v46 = vld [vmem:[#allocation17 + $0x4e8] sm:$0xff] }
 0x428   :  { %6810 = vmatmul.mubr.msk.f32.vlgmr.msra.gmra.mrb[46].mxu1 %vm223_vm1, %v8696_v60  ;;  %6811 = vmatmul.mubr.msk.f32.vlgmr.msra.gmra.mrb[44].mxu0 %vm223_vm1, %v8696_v60  ;;  %v3920_v45 = vld [vmem:[#allocation17 + $0x6d8] sm:$0xff]  ;;  %v3922_v51 = vld [vmem:[#allocation17 + $0x6e8] sm:$0xff] }
 0x429   :  { %7696 = vmatpush1.bf16.msra.mxu1 %v7695_v58  ;;  %7712 = vmatpush1.bf16.msra.mxu0 %v7711_v59  ;;  %v4107_v58 = vld [vmem:[#allocation17 + $0xcb0] sm:$0xff] }
 0x42a   :  { %7698 = vmatprep.subr.bf16.mxu1 %v7697_v6  ;;  %7714 = vmatprep.subr.bf16.mxu0 %v7713_v17  ;;  %v4171_v59 = vld [vmem:[#allocation17 + $0xeb0] sm:$0xff]  ;;  %v4109_v6 = vld [vmem:[#allocation17 + $0xcc0] sm:$0xff] }
 0x42b   :  { %v8892_v47 = vpop.f32.mrb[20].mxu1  ;;  %v8894_v50 = vpop.f32.mrb[18].mxu0  ;;  %5058 = vmatprep.mubr.f32.mxu1 %v9393_v1  ;;  %5129 = vmatprep.mubr.f32.mxu0 %v9393_v1  ;;  %v4173_v17 = vld [vmem:[#allocation17 + $0xec0] sm:$0xff]  ;;  %v7707_v32 = vpack.c.bf16 %v4171_v59, %v4107_v58  ;;  %v7729_v58 = vpack.c.bf16 %v3920_v45, %v3856_v42  ;;  %v7745_v59 = vpack.c.bf16 %v3922_v51, %v3858_v46  ;;  %v4176_v45 = vld [vmem:[#allocation17 + $0xed8] sm:$0xff]  ;;  %v4114_v46 = vld [vmem:[#allocation17 + $0xce8] sm:$0xff] }
 0x42c   :  { %9400 = vst [vmem:[#allocation37_spill] sm:$0xff] %v8892_v47  ;;  %9401 = vst [vmem:[#allocation38_spill] sm:$0xff] %v8894_v50  ;;  %v8898_v54 = vpop.f32.mrb[21].mxu1  ;;  %v8900_v55 = vpop.f32.mrb[19].mxu0  ;;  %v7723_v33 = vpack.c.bf16 %v4173_v17, %v4109_v6  ;;  %v3984_v6 = vld [vmem:[#allocation17 + $0x8d8] sm:$0xff]  ;;  %v4178_v51 = vld [vmem:[#allocation17 + $0xee8] sm:$0xff] }
 0x42d   :  { %9402 = vst [vmem:[#allocation39_spill] sm:$0xff] %v8898_v54  ;;  %9403 = vst [vmem:[#allocation40_spill] sm:$0xff] %v8900_v55  ;;  %7700 = vmatpush1.bf16.msra.mxu1 %v7699_v36  ;;  %7716 = vmatpush1.bf16.msra.mxu0 %v7715_v37  ;;  %v3727_v36 = vld [vmem:[#allocation17 + $0xd0] sm:$0xff]  ;;  %v4048_v17 = vld [vmem:[#allocation17 + $0xad8] sm:$0xff] }
 0x42e   :  { %7702 = vmatprep.subr.bf16.mxu1 %v7701_v40  ;;  %7718 = vmatprep.subr.bf16.mxu0 %v7717_v41  ;;  %v3791_v37 = vld [vmem:[#allocation17 + $0x2d0] sm:$0xff]  ;;  %v3729_v40 = vld [vmem:[#allocation17 + $0xe0] sm:$0xff]  ;;  %v3802_v55 = vld [vmem:[#allocation17 + $0x328] sm:$0xff] }
 0x42f   :  { %v3793_v41 = vld [vmem:[#allocation17 + $0x2e0] sm:$0xff]  ;;  %v7727_v52 = vpack.c.bf16 %v3791_v37, %v3727_v36  ;;  %v7733_v36 = vpack.c.bf16 %v4048_v17, %v3984_v6  ;;  %v7749_v37 = vpack.c.bf16 %v4050_v27, %v3986_v26  ;;  %v3732_v26 = vld [vmem:[#allocation17 + $0xf8] sm:$0xff] }
 0x430   :  { %v7743_v53 = vpack.c.bf16 %v3793_v41, %v3729_v40  ;;  %v4112_v40 = vld [vmem:[#allocation17 + $0xcd8] sm:$0xff]  ;;  %v4113_v6 = vld [vmem:[#allocation17 + $0xce0] sm:$0xff] }
 0x431   :  { %7704 = vmatpush1.bf16.msra.mxu1 %v7703_v56  ;;  %7720 = vmatpush1.bf16.msra.mxu0 %v7719_v57  ;;  %v3855_v56 = vld [vmem:[#allocation17 + $0x4d0] sm:$0xff]  ;;  %v4177_v17 = vld [vmem:[#allocation17 + $0xee0] sm:$0xff]  ;;  %v3796_v27 = vld [vmem:[#allocation17 + $0x2f8] sm:$0xff] }
 0x432   :  { %7706 = vmatprep.subr.bf16.mxu1 %v7705_v61  ;;  %7722 = vmatprep.subr.bf16.mxu0 %v7721_v5  ;;  %v3919_v57 = vld [vmem:[#allocation17 + $0x6d0] sm:$0xff]  ;;  %v3857_v61 = vld [vmem:[#allocation17 + $0x4e0] sm:$0xff] }
 0x433   :  { %v3921_v5 = vld [vmem:[#allocation17 + $0x6e0] sm:$0xff]  ;;  %v7731_v28 = vpack.c.bf16 %v3919_v57, %v3855_v56 }
 0x434   :  { %v7747_v31 = vpack.c.bf16 %v3921_v5, %v3857_v61  ;;  %v7737_v61 = vpack.c.bf16 %v4176_v45, %v4112_v40  ;;  %v7753_v5 = vpack.c.bf16 %v4178_v51, %v4114_v46  ;;  %v3862_v40 = vld [vmem:[#allocation17 + $0x508] sm:$0xff]  ;;  %v9002_v50 = vld [vmem:[#allocation16] sm:$0xff] }
 0x435   :  { %7708 = vmatpush1.bf16.msra.mxu1 %v7707_v32  ;;  %7724 = vmatpush1.bf16.msra.mxu0 %v7723_v33  ;;  %v3983_v32 = vld [vmem:[#allocation17 + $0x8d0] sm:$0xff]  ;;  %v3926_v45 = vld [vmem:[#allocation17 + $0x708] sm:$0xff] }
 0x436   :  { %7726 = vmatprep.subr.bf16.mxu1 %v7725_v38  ;;  %7742 = vmatprep.subr.bf16.mxu0 %v7741_v39  ;;  %v4047_v33 = vld [vmem:[#allocation17 + $0xad0] sm:$0xff]  ;;  %v3985_v38 = vld [vmem:[#allocation17 + $0x8e0] sm:$0xff] }
 0x437   :  { %v4049_v39 = vld [vmem:[#allocation17 + $0xae0] sm:$0xff]  ;;  %v7735_v56 = vpack.c.bf16 %v4047_v33, %v3983_v32  ;;  %v7757_v32 = vpack.c.bf16 %v3796_v27, %v3732_v26  ;;  %v3987_v26 = vld [vmem:[#allocation17 + $0x8f0] sm:$0xff] }
 0x438   :  { %6812 = vmatmul.mubr.msk.f32.vlgmr.msra.gmra.mrb[48].mxu1 %vm223_vm1, %v8696_v60  ;;  %6813 = vmatmul.mubr.msk.f32.vlgmr.msra.gmra.mrb[46].mxu0 %vm223_vm1, %v8696_v60  ;;  %v7751_v57 = vpack.c.bf16 %v4049_v39, %v3985_v38  ;;  %v3860_v38 = vld [vmem:[#allocation17 + $0x4f8] sm:$0xff]  ;;  %v4051_v27 = vld [vmem:[#allocation17 + $0xaf0] sm:$0xff] }
 0x439   :  { %7728 = vmatpush1.bf16.msra.mxu1 %v7727_v52  ;;  %7744 = vmatpush1.bf16.msra.mxu0 %v7743_v53  ;;  %v3924_v39 = vld [vmem:[#allocation17 + $0x6f8] sm:$0xff] }
 0x43a   :  { %7730 = vmatprep.subr.bf16.mxu1 %v7729_v58  ;;  %7746 = vmatprep.subr.bf16.mxu0 %v7745_v59  ;;  %v4111_v58 = vld [vmem:[#allocation17 + $0xcd0] sm:$0xff] }
 0x43b   :  { %v8906_v41 = vpop.f32.mrb[22].mxu1  ;;  %v8908_v42 = vpop.f32.mrb[20].mxu0  ;;  %5200 = vmatprep.mubr.f32.mxu1 %v9393_v1  ;;  %5271 = vmatprep.mubr.f32.mxu0 %v9393_v1  ;;  %v4175_v59 = vld [vmem:[#allocation17 + $0xed0] sm:$0xff]  ;;  %v3798_v1 = vld [vmem:[#allocation17 + $0x308] sm:$0xff] }
 0x43c   :  { %9404 = vst [vmem:[#allocation41_spill] sm:$0xff] %v8906_v41  ;;  %9405 = vst [vmem:[#allocation42_spill] sm:$0xff] %v8908_v42  ;;  %v8912_v52 = vpop.f32.mrb[23].mxu1  ;;  %v8914_v53 = vpop.f32.mrb[21].mxu0  ;;  %v3734_v42 = vld [vmem:[#allocation17 + $0x108] sm:$0xff] }
 0x43d   :  { %9406 = vst [vmem:[#allocation43_spill] sm:$0xff] %v8912_v52  ;;  %9407 = vst [vmem:[#allocation44_spill] sm:$0xff] %v8914_v53  ;;  %7732 = vmatpush1.bf16.msra.mxu1 %v7731_v28  ;;  %7748 = vmatpush1.bf16.msra.mxu0 %v7747_v31  ;;  %v7739_v52 = vpack.c.bf16 %v4175_v59, %v4111_v58  ;;  %v7755_v53 = vpack.c.bf16 %v4177_v17, %v4113_v6  ;;  %v3731_v28 = vld [vmem:[#allocation17 + $0xf0] sm:$0xff]  ;;  %v3988_v6 = vld [vmem:[#allocation17 + $0x8f8] sm:$0xff] }
 0x43e   :  { %7734 = vmatprep.subr.bf16.mxu1 %v7733_v36  ;;  %7750 = vmatprep.subr.bf16.mxu0 %v7749_v37  ;;  %v3795_v31 = vld [vmem:[#allocation17 + $0x2f0] sm:$0xff]  ;;  %v7773_v33 = vpack.c.bf16 %v3798_v1, %v3734_v42  ;;  %v3733_v36 = vld [vmem:[#allocation17 + $0x100] sm:$0xff]  ;;  %v7761_v58 = vpack.c.bf16 %v3924_v39, %v3860_v38  ;;  %v7777_v59 = vpack.c.bf16 %v3926_v45, %v3862_v40  ;;  %v4052_v1 = vld [vmem:[#allocation17 + $0xaf8] sm:$0xff] }
 0x43f   :  { %v3797_v37 = vld [vmem:[#allocation17 + $0x300] sm:$0xff]  ;;  %v7759_v46 = vpack.c.bf16 %v3795_v31, %v3731_v28  ;;  %v3990_v42 = vld [vmem:[#allocation17 + $0x908] sm:$0xff]  ;;  %v7765_v28 = vpack.c.bf16 %v4052_v1, %v3988_v6  ;;  %v4180_v39 = vld [vmem:[#allocation17 + $0xef8] sm:$0xff] }
 0x440   :  { %v7775_v51 = vpack.c.bf16 %v3797_v37, %v3733_v36  ;;  %v4054_v17 = vld [vmem:[#allocation17 + $0xb08] sm:$0xff]  ;;  %v4116_v36 = vld [vmem:[#allocation17 + $0xcf8] sm:$0xff]  ;;  %v4117_v1 = vld [vmem:[#allocation17 + $0xd00] sm:$0xff] }
 0x441   :  { %7736 = vmatpush1.bf16.msra.mxu1 %v7735_v56  ;;  %7752 = vmatpush1.bf16.msra.mxu0 %v7751_v57  ;;  %v3859_v56 = vld [vmem:[#allocation17 + $0x4f0] sm:$0xff]  ;;  %v7781_v31 = vpack.c.bf16 %v4054_v17, %v3990_v42  ;;  %v4118_v40 = vld [vmem:[#allocation17 + $0xd08] sm:$0xff]  ;;  %v4181_v42 = vld [vmem:[#allocation17 + $0xf00] sm:$0xff] }
 0x442   :  { %7738 = vmatprep.subr.bf16.mxu1 %v7737_v61  ;;  %7754 = vmatprep.subr.bf16.mxu0 %v7753_v5  ;;  %v3923_v57 = vld [vmem:[#allocation17 + $0x6f0] sm:$0xff]  ;;  %v3861_v61 = vld [vmem:[#allocation17 + $0x500] sm:$0xff]  ;;  %v4182_v45 = vld [vmem:[#allocation17 + $0xf08] sm:$0xff] }
 0x443   :  { %v3925_v5 = vld [vmem:[#allocation17 + $0x700] sm:$0xff]  ;;  %v7785_v6 = vpack.c.bf16 %v4182_v45, %v4118_v40  ;;  %v3736_v17 = vld [vmem:[#allocation17 + $0x118] sm:$0xff]  ;;  %v3758_v41 = vld [vmem:[#allocation17 + $0x1c8] sm:$0xff] }
 0x445   :  { %7740 = vmatpush1.bf16.msra.mxu1 %v7739_v52  ;;  %7756 = vmatpush1.bf16.msra.mxu0 %v7755_v53  ;;  %v7763_v52 = vpack.c.bf16 %v3923_v57, %v3859_v56  ;;  %v7779_v53 = vpack.c.bf16 %v3925_v5, %v3861_v61  ;;  %v7767_v57 = vpack.c.bf16 %v4051_v27, %v3987_v26  ;;  %v4179_v61 = vld [vmem:[#allocation17 + $0xef0] sm:$0xff] }
 0x446   :  { %7758 = vmatprep.subr.bf16.mxu1 %v7757_v32  ;;  %7774 = vmatprep.subr.bf16.mxu0 %v7773_v33  ;;  %v3989_v32 = vld [vmem:[#allocation17 + $0x900] sm:$0xff]  ;;  %v7769_v5 = vpack.c.bf16 %v4180_v39, %v4116_v36  ;;  %v3866_v36 = vld [vmem:[#allocation17 + $0x528] sm:$0xff] }
 0x447   :  { %v4053_v33 = vld [vmem:[#allocation17 + $0xb00] sm:$0xff]  ;;  %v3930_v39 = vld [vmem:[#allocation17 + $0x728] sm:$0xff] }
 0x448   :  { %6814 = vmatmul.mubr.msk.f32.vlgmr.msra.gmra.mrb[50].mxu1 %vm223_vm1, %v8696_v60  ;;  %6815 = vmatmul.mubr.msk.f32.vlgmr.msra.gmra.mrb[48].mxu0 %vm223_vm1, %v8696_v60 }
 0x449   :  { %7760 = vmatpush1.bf16.msra.mxu1 %v7759_v46  ;;  %7776 = vmatpush1.bf16.msra.mxu0 %v7775_v51  ;;  %v9410_v46 = vmov 0.0  }
 0x44a   :  { %7762 = vmatprep.subr.bf16.mxu1 %v7761_v58  ;;  %7778 = vmatprep.subr.bf16.mxu0 %v7777_v59  ;;  %v7783_v58 = vpack.c.bf16 %v4053_v33, %v3989_v32  ;;  %v4115_v59 = vld [vmem:[#allocation17 + $0xcf0] sm:$0xff]  ;;  %v3864_v32 = vld [vmem:[#allocation17 + $0x518] sm:$0xff] }
 0x44b   :  { %v8920_v37 = vpop.f32.mrb[24].mxu1  ;;  %v8922_v38 = vpop.f32.mrb[22].mxu0  ;;  %5342 = vmatprep.mubr.f32.mxu1 %v9410_v46  ;;  %5413 = vmatprep.mubr.f32.mxu0 %v9410_v46  ;;  %v3928_v33 = vld [vmem:[#allocation17 + $0x718] sm:$0xff] }
 0x44c   :  { %9408 = vst [vmem:[#allocation45_spill] sm:$0xff] %v8920_v37  ;;  %9409 = vst [vmem:[#allocation46_spill] sm:$0xff] %v8922_v38  ;;  %v8926_v51 = vpop.f32.mrb[25].mxu1  ;;  %v8928_v56 = vpop.f32.mrb[23].mxu0  ;;  %v3800_v38 = vld [vmem:[#allocation17 + $0x318] sm:$0xff]  ;;  %v3738_v37 = vld [vmem:[#allocation17 + $0x128] sm:$0xff] }
 0x44d   :  { %9411 = vst [vmem:[#allocation47_spill] sm:$0xff] %v8926_v51  ;;  %9412 = vst [vmem:[#allocation48_spill] sm:$0xff] %v8928_v56  ;;  %7764 = vmatpush1.bf16.msra.mxu1 %v7763_v52  ;;  %7780 = vmatpush1.bf16.msra.mxu0 %v7779_v53  ;;  %v7771_v51 = vpack.c.bf16 %v4179_v61, %v4115_v59  ;;  %v7787_v56 = vpack.c.bf16 %v4181_v42, %v4117_v1  ;;  %v3735_v52 = vld [vmem:[#allocation17 + $0x110] sm:$0xff]  ;;  %v4058_v1 = vld [vmem:[#allocation17 + $0xb28] sm:$0xff] }
 0x44e   :  { %7766 = vmatprep.subr.bf16.mxu1 %v7765_v28  ;;  %7782 = vmatprep.subr.bf16.mxu0 %v7781_v31  ;;  %v3799_v53 = vld [vmem:[#allocation17 + $0x310] sm:$0xff]  ;;  %v7789_v26 = vpack.c.bf16 %v3800_v38, %v3736_v17  ;;  %v7805_v27 = vpack.c.bf16 %v3802_v55, %v3738_v37  ;;  %v3737_v28 = vld [vmem:[#allocation17 + $0x120] sm:$0xff]  ;;  %v7793_v59 = vpack.c.bf16 %v3928_v33, %v3864_v32  ;;  %v3992_v38 = vld [vmem:[#allocation17 + $0x918] sm:$0xff] }
 0x44f   :  { %v3801_v31 = vld [vmem:[#allocation17 + $0x320] sm:$0xff]  ;;  %v7791_v40 = vpack.c.bf16 %v3799_v53, %v3735_v52  ;;  %v7809_v61 = vpack.c.bf16 %v3930_v39, %v3866_v36  ;;  %v4056_v55 = vld [vmem:[#allocation17 + $0xb18] sm:$0xff]  ;;  %v3994_v37 = vld [vmem:[#allocation17 + $0x928] sm:$0xff] }
 0x450   :  { %v7807_v45 = vpack.c.bf16 %v3801_v31, %v3737_v28  ;;  %v3991_v42 = vld [vmem:[#allocation17 + $0x910] sm:$0xff]  ;;  %v7797_v52 = vpack.c.bf16 %v4056_v55, %v3992_v38  ;;  %v7813_v53 = vpack.c.bf16 %v4058_v1, %v3994_v37  ;;  %v4120_v28 = vld [vmem:[#allocation17 + $0xd18] sm:$0xff]  ;;  %v4122_v36 = vld [vmem:[#allocation17 + $0xd28] sm:$0xff] }
 0x451   :  { %7768 = vmatpush1.bf16.msra.mxu1 %v7767_v57  ;;  %7784 = vmatpush1.bf16.msra.mxu0 %v7783_v58  ;;  %v3863_v57 = vld [vmem:[#allocation17 + $0x510] sm:$0xff]  ;;  %v4184_v33 = vld [vmem:[#allocation17 + $0xf18] sm:$0xff]  ;;  %v4186_v39 = vld [vmem:[#allocation17 + $0xf28] sm:$0xff] }
 0x452   :  { %7770 = vmatprep.subr.bf16.mxu1 %v7769_v5  ;;  %7786 = vmatprep.subr.bf16.mxu0 %v7785_v6  ;;  %v3927_v58 = vld [vmem:[#allocation17 + $0x710] sm:$0xff]  ;;  %v3865_v5 = vld [vmem:[#allocation17 + $0x520] sm:$0xff]  ;;  %v3740_v37 = vld [vmem:[#allocation17 + $0x138] sm:$0xff] }
 0x453   :  { %v3929_v6 = vld [vmem:[#allocation17 + $0x720] sm:$0xff]  ;;  %v4055_v17 = vld [vmem:[#allocation17 + $0xb10] sm:$0xff]  ;;  %v3804_v1 = vld [vmem:[#allocation17 + $0x338] sm:$0xff] }
 0x454   :  { %v4121_v38 = vld [vmem:[#allocation17 + $0xd20] sm:$0xff] }
 0x455   :  { %7772 = vmatpush1.bf16.msra.mxu1 %v7771_v51  ;;  %7788 = vmatpush1.bf16.msra.mxu0 %v7787_v56  ;;  %v7795_v51 = vpack.c.bf16 %v3927_v58, %v3863_v57  ;;  %v7811_v56 = vpack.c.bf16 %v3929_v6, %v3865_v5  ;;  %v7799_v57 = vpack.c.bf16 %v4055_v17, %v3991_v42  ;;  %v4185_v55 = vld [vmem:[#allocation17 + $0xf20] sm:$0xff] }
 0x456   :  { %7790 = vmatprep.subr.bf16.mxu1 %v7789_v26  ;;  %7806 = vmatprep.subr.bf16.mxu0 %v7805_v27  ;;  %v3993_v26 = vld [vmem:[#allocation17 + $0x920] sm:$0xff]  ;;  %v7801_v5 = vpack.c.bf16 %v4184_v33, %v4120_v28  ;;  %v7817_v6 = vpack.c.bf16 %v4186_v39, %v4122_v36  ;;  %v7821_v42 = vpack.c.bf16 %v3804_v1, %v3740_v37  ;;  %v3870_v28 = vld [vmem:[#allocation17 + $0x548] sm:$0xff]  ;;  %v3995_v37 = vld [vmem:[#allocation17 + $0x930] sm:$0xff] }
 0x457   :  { %v4057_v27 = vld [vmem:[#allocation17 + $0xb20] sm:$0xff]  ;;  %v3934_v33 = vld [vmem:[#allocation17 + $0x748] sm:$0xff]  ;;  %v4059_v1 = vld [vmem:[#allocation17 + $0xb30] sm:$0xff] }
 0x458   :  { %6816 = vmatmul.mubr.msk.f32.vlgmr.msra.gmra.mrb[52].mxu1 %vm223_vm1, %v8696_v60  ;;  %6817 = vmatmul.mubr.msk.f32.vlgmr.msra.gmra.mrb[50].mxu0 %vm223_vm1, %v8696_v60  ;;  %v7815_v58 = vpack.c.bf16 %v4057_v27, %v3993_v26  ;;  %v3868_v26 = vld [vmem:[#allocation17 + $0x538] sm:$0xff] }
 0x459   :  { %7792 = vmatpush1.bf16.msra.mxu1 %v7791_v40  ;;  %7808 = vmatpush1.bf16.msra.mxu0 %v7807_v45  ;;  %v3932_v27 = vld [vmem:[#allocation17 + $0x738] sm:$0xff] }
 0x45a   :  { %7794 = vmatprep.subr.bf16.mxu1 %v7793_v59  ;;  %7810 = vmatprep.subr.bf16.mxu0 %v7809_v61  ;;  %v4119_v59 = vld [vmem:[#allocation17 + $0xd10] sm:$0xff] }
 0x45b   :  { %v8934_v31 = vpop.f32.mrb[26].mxu1  ;;  %v8936_v32 = vpop.f32.mrb[24].mxu0  ;;  %5484 = vmatprep.mubr.f32.mxu1 %v9410_v46  ;;  %5555 = vmatprep.mubr.f32.mxu0 %v9410_v46  ;;  %v4183_v61 = vld [vmem:[#allocation17 + $0xf10] sm:$0xff] }
 0x45c   :  { %9413 = vst [vmem:[#allocation49_spill] sm:$0xff] %v8934_v31  ;;  %9414 = vst [vmem:[#allocation50_spill] sm:$0xff] %v8936_v32  ;;  %v8940_v40 = vpop.f32.mrb[27].mxu1  ;;  %v8942_v45 = vpop.f32.mrb[25].mxu0  ;;  %v3742_v32 = vld [vmem:[#allocation17 + $0x148] sm:$0xff] }
 0x45d   :  { %9415 = vst [vmem:[#allocation51_spill] sm:$0xff] %v8940_v40  ;;  %9416 = vst [vmem:[#allocation52_spill] sm:$0xff] %v8942_v45  ;;  %7796 = vmatpush1.bf16.msra.mxu1 %v7795_v51  ;;  %7812 = vmatpush1.bf16.msra.mxu0 %v7811_v56  ;;  %v3806_v31 = vld [vmem:[#allocation17 + $0x348] sm:$0xff]  ;;  %v7803_v40 = vpack.c.bf16 %v4183_v61, %v4119_v59  ;;  %v7819_v45 = vpack.c.bf16 %v4185_v55, %v4121_v38  ;;  %v3739_v51 = vld [vmem:[#allocation17 + $0x130] sm:$0xff] }
 0x45e   :  { %7798 = vmatprep.subr.bf16.mxu1 %v7797_v52  ;;  %7814 = vmatprep.subr.bf16.mxu0 %v7813_v53  ;;  %v3803_v56 = vld [vmem:[#allocation17 + $0x330] sm:$0xff]  ;;  %v7837_v17 = vpack.c.bf16 %v3806_v31, %v3742_v32  ;;  %v3741_v52 = vld [vmem:[#allocation17 + $0x140] sm:$0xff]  ;;  %v7825_v59 = vpack.c.bf16 %v3932_v27, %v3868_v26  ;;  %v7841_v61 = vpack.c.bf16 %v3934_v33, %v3870_v28  ;;  %v3996_v38 = vld [vmem:[#allocation17 + $0x938] sm:$0xff] }
 0x45f   :  { %v3805_v53 = vld [vmem:[#allocation17 + $0x340] sm:$0xff]  ;;  %v7823_v36 = vpack.c.bf16 %v3803_v56, %v3739_v51  ;;  %v4060_v31 = vld [vmem:[#allocation17 + $0xb38] sm:$0xff]  ;;  %v3998_v32 = vld [vmem:[#allocation17 + $0x948] sm:$0xff] }
 0x460   :  { %v7839_v39 = vpack.c.bf16 %v3805_v53, %v3741_v52  ;;  %v4062_v55 = vld [vmem:[#allocation17 + $0xb48] sm:$0xff]  ;;  %v7829_v51 = vpack.c.bf16 %v4060_v31, %v3996_v38  ;;  %v4124_v52 = vld [vmem:[#allocation17 + $0xd38] sm:$0xff]  ;;  %v4125_v38 = vld [vmem:[#allocation17 + $0xd40] sm:$0xff] }
 0x461   :  { %7800 = vmatpush1.bf16.msra.mxu1 %v7799_v57  ;;  %7816 = vmatpush1.bf16.msra.mxu0 %v7815_v58  ;;  %v3867_v57 = vld [vmem:[#allocation17 + $0x530] sm:$0xff]  ;;  %v7845_v56 = vpack.c.bf16 %v4062_v55, %v3998_v32  ;;  %v4188_v27 = vld [vmem:[#allocation17 + $0xf38] sm:$0xff]  ;;  %v4126_v28 = vld [vmem:[#allocation17 + $0xd48] sm:$0xff] }
 0x462   :  { %7802 = vmatprep.subr.bf16.mxu1 %v7801_v5  ;;  %7818 = vmatprep.subr.bf16.mxu0 %v7817_v6  ;;  %v3931_v58 = vld [vmem:[#allocation17 + $0x730] sm:$0xff]  ;;  %v3869_v5 = vld [vmem:[#allocation17 + $0x540] sm:$0xff]  ;;  %v4190_v33 = vld [vmem:[#allocation17 + $0xf48] sm:$0xff] }
 0x463   :  { %v3933_v6 = vld [vmem:[#allocation17 + $0x740] sm:$0xff]  ;;  %v3744_v32 = vld [vmem:[#allocation17 + $0x158] sm:$0xff] }
 0x464   :  { %v4189_v31 = vld [vmem:[#allocation17 + $0xf40] sm:$0xff]  ;;  %v3808_v55 = vld [vmem:[#allocation17 + $0x358] sm:$0xff] }
 0x465   :  { %7804 = vmatpush1.bf16.msra.mxu1 %v7803_v40  ;;  %7820 = vmatpush1.bf16.msra.mxu0 %v7819_v45  ;;  %v7827_v40 = vpack.c.bf16 %v3931_v58, %v3867_v57  ;;  %v7843_v45 = vpack.c.bf16 %v3933_v6, %v3869_v5  ;;  %v7831_v57 = vpack.c.bf16 %v4059_v1, %v3995_v37 }
 0x466   :  { %7822 = vmatprep.subr.bf16.mxu1 %v7821_v42  ;;  %7838 = vmatprep.subr.bf16.mxu0 %v7837_v17  ;;  %v3997_v42 = vld [vmem:[#allocation17 + $0x940] sm:$0xff]  ;;  %v7833_v5 = vpack.c.bf16 %v4188_v27, %v4124_v52  ;;  %v7849_v6 = vpack.c.bf16 %v4190_v33, %v4126_v28  ;;  %v7853_v37 = vpack.c.bf16 %v3808_v55, %v3744_v32  ;;  %v3874_v52 = vld [vmem:[#allocation17 + $0x568] sm:$0xff]  ;;  %v3999_v32 = vld [vmem:[#allocation17 + $0x950] sm:$0xff] }
 0x467   :  { %v4061_v17 = vld [vmem:[#allocation17 + $0xb40] sm:$0xff]  ;;  %v3938_v27 = vld [vmem:[#allocation17 + $0x768] sm:$0xff]  ;;  %v4063_v55 = vld [vmem:[#allocation17 + $0xb50] sm:$0xff] }
 0x468   :  { %6818 = vmatmul.mubr.msk.f32.vlgmr.msra.gmra.mrb[54].mxu1 %vm223_vm1, %v8696_v60  ;;  %6819 = vmatmul.mubr.msk.f32.vlgmr.msra.gmra.mrb[52].mxu0 %vm223_vm1, %v8696_v60  ;;  %v7847_v58 = vpack.c.bf16 %v4061_v17, %v3997_v42  ;;  %v3872_v42 = vld [vmem:[#allocation17 + $0x558] sm:$0xff] }
 0x469   :  { %7824 = vmatpush1.bf16.msra.mxu1 %v7823_v36  ;;  %7840 = vmatpush1.bf16.msra.mxu0 %v7839_v39  ;;  %v3936_v17 = vld [vmem:[#allocation17 + $0x758] sm:$0xff] }
 0x46a   :  { %7826 = vmatprep.subr.bf16.mxu1 %v7825_v59  ;;  %7842 = vmatprep.subr.bf16.mxu0 %v7841_v61  ;;  %v4123_v59 = vld [vmem:[#allocation17 + $0xd30] sm:$0xff] }
 0x46b   :  { %v8948_v53 = vpop.f32.mrb[28].mxu1  ;;  %v8950_v26 = vpop.f32.mrb[26].mxu0  ;;  %5626 = vmatprep.mubr.f32.mxu1 %v9410_v46  ;;  %5697 = vmatprep.mubr.f32.mxu0 %v9410_v46  ;;  %v4187_v61 = vld [vmem:[#allocation17 + $0xf30] sm:$0xff] }
 0x46c   :  { %9417 = vst [vmem:[#allocation53_spill] sm:$0xff] %v8948_v53  ;;  %9418 = vst [vmem:[#allocation54_spill] sm:$0xff] %v8950_v26  ;;  %v8954_v36 = vpop.f32.mrb[29].mxu1  ;;  %v8956_v39 = vpop.f32.mrb[27].mxu0  ;;  %v3746_v26 = vld [vmem:[#allocation17 + $0x168] sm:$0xff] }
 0x46d   :  { %9419 = vst [vmem:[#allocation55_spill] sm:$0xff] %v8954_v36  ;;  %9420 = vst [vmem:[#allocation56_spill] sm:$0xff] %v8956_v39  ;;  %7828 = vmatpush1.bf16.msra.mxu1 %v7827_v40  ;;  %7844 = vmatpush1.bf16.msra.mxu0 %v7843_v45  ;;  %v3810_v53 = vld [vmem:[#allocation17 + $0x368] sm:$0xff]  ;;  %v7835_v36 = vpack.c.bf16 %v4187_v61, %v4123_v59  ;;  %v7851_v39 = vpack.c.bf16 %v4189_v31, %v4125_v38  ;;  %v3743_v40 = vld [vmem:[#allocation17 + $0x150] sm:$0xff] }
 0x46e   :  { %7830 = vmatprep.subr.bf16.mxu1 %v7829_v51  ;;  %7846 = vmatprep.subr.bf16.mxu0 %v7845_v56  ;;  %v3807_v45 = vld [vmem:[#allocation17 + $0x350] sm:$0xff]  ;;  %v7869_v1 = vpack.c.bf16 %v3810_v53, %v3746_v26  ;;  %v3745_v51 = vld [vmem:[#allocation17 + $0x160] sm:$0xff]  ;;  %v7857_v59 = vpack.c.bf16 %v3936_v17, %v3872_v42  ;;  %v7873_v61 = vpack.c.bf16 %v3938_v27, %v3874_v52  ;;  %v4000_v38 = vld [vmem:[#allocation17 + $0x958] sm:$0xff] }
 0x46f   :  { %v3809_v56 = vld [vmem:[#allocation17 + $0x360] sm:$0xff]  ;;  %v7855_v28 = vpack.c.bf16 %v3807_v45, %v3743_v40  ;;  %v4064_v53 = vld [vmem:[#allocation17 + $0xb58] sm:$0xff]  ;;  %v4002_v26 = vld [vmem:[#allocation17 + $0x968] sm:$0xff] }
 0x470   :  { %v7871_v33 = vpack.c.bf16 %v3809_v56, %v3745_v51  ;;  %v4066_v31 = vld [vmem:[#allocation17 + $0xb68] sm:$0xff]  ;;  %v7861_v40 = vpack.c.bf16 %v4064_v53, %v4000_v38  ;;  %v4128_v51 = vld [vmem:[#allocation17 + $0xd58] sm:$0xff]  ;;  %v4129_v38 = vld [vmem:[#allocation17 + $0xd60] sm:$0xff] }
 0x471   :  { %7832 = vmatpush1.bf16.msra.mxu1 %v7831_v57  ;;  %7848 = vmatpush1.bf16.msra.mxu0 %v7847_v58  ;;  %v3871_v57 = vld [vmem:[#allocation17 + $0x550] sm:$0xff]  ;;  %v7877_v45 = vpack.c.bf16 %v4066_v31, %v4002_v26  ;;  %v4192_v17 = vld [vmem:[#allocation17 + $0xf58] sm:$0xff]  ;;  %v4130_v52 = vld [vmem:[#allocation17 + $0xd68] sm:$0xff] }
 0x472   :  { %7834 = vmatprep.subr.bf16.mxu1 %v7833_v5  ;;  %7850 = vmatprep.subr.bf16.mxu0 %v7849_v6  ;;  %v3935_v58 = vld [vmem:[#allocation17 + $0x750] sm:$0xff]  ;;  %v3873_v5 = vld [vmem:[#allocation17 + $0x560] sm:$0xff]  ;;  %v4194_v27 = vld [vmem:[#allocation17 + $0xf68] sm:$0xff] }
 0x473   :  { %v3937_v6 = vld [vmem:[#allocation17 + $0x760] sm:$0xff]  ;;  %v3748_v26 = vld [vmem:[#allocation17 + $0x178] sm:$0xff] }
 0x474   :  { %v4193_v53 = vld [vmem:[#allocation17 + $0xf60] sm:$0xff]  ;;  %v3812_v31 = vld [vmem:[#allocation17 + $0x378] sm:$0xff] }
 0x475   :  { %7836 = vmatpush1.bf16.msra.mxu1 %v7835_v36  ;;  %7852 = vmatpush1.bf16.msra.mxu0 %v7851_v39  ;;  %v7859_v36 = vpack.c.bf16 %v3935_v58, %v3871_v57  ;;  %v7875_v39 = vpack.c.bf16 %v3937_v6, %v3873_v5  ;;  %v7863_v57 = vpack.c.bf16 %v4063_v55, %v3999_v32 }
 0x476   :  { %7854 = vmatprep.subr.bf16.mxu1 %v7853_v37  ;;  %7870 = vmatprep.subr.bf16.mxu0 %v7869_v1  ;;  %v4001_v37 = vld [vmem:[#allocation17 + $0x960] sm:$0xff]  ;;  %v7865_v5 = vpack.c.bf16 %v4192_v17, %v4128_v51  ;;  %v7881_v6 = vpack.c.bf16 %v4194_v27, %v4130_v52  ;;  %v7885_v32 = vpack.c.bf16 %v3812_v31, %v3748_v26  ;;  %v3878_v51 = vld [vmem:[#allocation17 + $0x588] sm:$0xff]  ;;  %v4003_v26 = vld [vmem:[#allocation17 + $0x970] sm:$0xff] }
 0x477   :  { %v4065_v1 = vld [vmem:[#allocation17 + $0xb60] sm:$0xff]  ;;  %v3942_v17 = vld [vmem:[#allocation17 + $0x788] sm:$0xff]  ;;  %v4067_v31 = vld [vmem:[#allocation17 + $0xb70] sm:$0xff] }
 0x478   :  { %6820 = vmatmul.mubr.msk.f32.vlgmr.msra.gmra.mrb[56].mxu1 %vm223_vm1, %v8696_v60  ;;  %6821 = vmatmul.mubr.msk.f32.vlgmr.msra.gmra.mrb[54].mxu0 %vm223_vm1, %v8696_v60  ;;  %v7879_v58 = vpack.c.bf16 %v4065_v1, %v4001_v37  ;;  %v3876_v37 = vld [vmem:[#allocation17 + $0x578] sm:$0xff] }
 0x479   :  { %7856 = vmatpush1.bf16.msra.mxu1 %v7855_v28  ;;  %7872 = vmatpush1.bf16.msra.mxu0 %v7871_v33  ;;  %v3940_v1 = vld [vmem:[#allocation17 + $0x778] sm:$0xff] }
 0x47a   :  { %7858 = vmatprep.subr.bf16.mxu1 %v7857_v59  ;;  %7874 = vmatprep.subr.bf16.mxu0 %v7873_v61  ;;  %v4127_v59 = vld [vmem:[#allocation17 + $0xd50] sm:$0xff] }
 0x47b   :  { %v8962_v56 = vpop.f32.mrb[30].mxu1  ;;  %v8964_v42 = vpop.f32.mrb[28].mxu0  ;;  %5768 = vmatprep.mubr.f32.mxu1 %v9410_v46  ;;  %5839 = vmatprep.mubr.f32.mxu0 %v9410_v46  ;;  %v4191_v61 = vld [vmem:[#allocation17 + $0xf50] sm:$0xff] }
 0x47c   :  { %9421 = vst [vmem:[#allocation57_spill] sm:$0xff] %v8962_v56  ;;  %9422 = vst [vmem:[#allocation58_spill] sm:$0xff] %v8964_v42  ;;  %v8968_v28 = vpop.f32.mrb[31].mxu1  ;;  %v8970_v33 = vpop.f32.mrb[29].mxu0  ;;  %v3750_v42 = vld [vmem:[#allocation17 + $0x188] sm:$0xff] }
 0x47d   :  { %9423 = vst [vmem:[#allocation59_spill] sm:$0xff] %v8968_v28  ;;  %9424 = vst [vmem:[#allocation60_spill] sm:$0xff] %v8970_v33  ;;  %7860 = vmatpush1.bf16.msra.mxu1 %v7859_v36  ;;  %7876 = vmatpush1.bf16.msra.mxu0 %v7875_v39  ;;  %v3814_v56 = vld [vmem:[#allocation17 + $0x388] sm:$0xff]  ;;  %v7867_v28 = vpack.c.bf16 %v4191_v61, %v4127_v59  ;;  %v7883_v33 = vpack.c.bf16 %v4193_v53, %v4129_v38  ;;  %v3747_v36 = vld [vmem:[#allocation17 + $0x170] sm:$0xff] }
 0x47e   :  { %7862 = vmatprep.subr.bf16.mxu1 %v7861_v40  ;;  %7878 = vmatprep.subr.bf16.mxu0 %v7877_v45  ;;  %v3811_v39 = vld [vmem:[#allocation17 + $0x370] sm:$0xff]  ;;  %v7901_v55 = vpack.c.bf16 %v3814_v56, %v3750_v42  ;;  %v3749_v40 = vld [vmem:[#allocation17 + $0x180] sm:$0xff]  ;;  %v7889_v59 = vpack.c.bf16 %v3940_v1, %v3876_v37  ;;  %v7905_v61 = vpack.c.bf16 %v3942_v17, %v3878_v51  ;;  %v4004_v38 = vld [vmem:[#allocation17 + $0x978] sm:$0xff] }
 0x47f   :  { %v3813_v45 = vld [vmem:[#allocation17 + $0x380] sm:$0xff]  ;;  %v7887_v52 = vpack.c.bf16 %v3811_v39, %v3747_v36  ;;  %v4068_v56 = vld [vmem:[#allocation17 + $0xb78] sm:$0xff]  ;;  %v4006_v42 = vld [vmem:[#allocation17 + $0x988] sm:$0xff] }
 0x480   :  { %v7903_v27 = vpack.c.bf16 %v3813_v45, %v3749_v40  ;;  %v4070_v53 = vld [vmem:[#allocation17 + $0xb88] sm:$0xff]  ;;  %v7893_v36 = vpack.c.bf16 %v4068_v56, %v4004_v38  ;;  %v4132_v40 = vld [vmem:[#allocation17 + $0xd78] sm:$0xff]  ;;  %v4133_v38 = vld [vmem:[#allocation17 + $0xd80] sm:$0xff] }
 0x481   :  { %7864 = vmatpush1.bf16.msra.mxu1 %v7863_v57  ;;  %7880 = vmatpush1.bf16.msra.mxu0 %v7879_v58  ;;  %v3875_v57 = vld [vmem:[#allocation17 + $0x570] sm:$0xff]  ;;  %v7909_v39 = vpack.c.bf16 %v4070_v53, %v4006_v42  ;;  %v4196_v1 = vld [vmem:[#allocation17 + $0xf78] sm:$0xff]  ;;  %v4134_v51 = vld [vmem:[#allocation17 + $0xd88] sm:$0xff] }
 0x482   :  { %7866 = vmatprep.subr.bf16.mxu1 %v7865_v5  ;;  %7882 = vmatprep.subr.bf16.mxu0 %v7881_v6  ;;  %v3939_v58 = vld [vmem:[#allocation17 + $0x770] sm:$0xff]  ;;  %v3877_v5 = vld [vmem:[#allocation17 + $0x580] sm:$0xff]  ;;  %v4198_v17 = vld [vmem:[#allocation17 + $0xf88] sm:$0xff] }
 0x483   :  { %v3941_v6 = vld [vmem:[#allocation17 + $0x780] sm:$0xff]  ;;  %v3752_v42 = vld [vmem:[#allocation17 + $0x198] sm:$0xff] }
 0x484   :  { %v4197_v56 = vld [vmem:[#allocation17 + $0xf80] sm:$0xff]  ;;  %v3816_v53 = vld [vmem:[#allocation17 + $0x398] sm:$0xff] }
 0x485   :  { %7868 = vmatpush1.bf16.msra.mxu1 %v7867_v28  ;;  %7884 = vmatpush1.bf16.msra.mxu0 %v7883_v33  ;;  %v7891_v28 = vpack.c.bf16 %v3939_v58, %v3875_v57  ;;  %v7907_v33 = vpack.c.bf16 %v3941_v6, %v3877_v5  ;;  %v7895_v57 = vpack.c.bf16 %v4067_v31, %v4003_v26 }
 0x486   :  { %7886 = vmatprep.subr.bf16.mxu1 %v7885_v32  ;;  %7902 = vmatprep.subr.bf16.mxu0 %v7901_v55  ;;  %v4005_v32 = vld [vmem:[#allocation17 + $0x980] sm:$0xff]  ;;  %v7897_v5 = vpack.c.bf16 %v4196_v1, %v4132_v40  ;;  %v7913_v6 = vpack.c.bf16 %v4198_v17, %v4134_v51  ;;  %v7917_v26 = vpack.c.bf16 %v3816_v53, %v3752_v42  ;;  %v3882_v40 = vld [vmem:[#allocation17 + $0x5a8] sm:$0xff]  ;;  %v4007_v42 = vld [vmem:[#allocation17 + $0x990] sm:$0xff] }
 0x487   :  { %v4069_v55 = vld [vmem:[#allocation17 + $0xb80] sm:$0xff]  ;;  %v3946_v1 = vld [vmem:[#allocation17 + $0x7a8] sm:$0xff]  ;;  %v4071_v53 = vld [vmem:[#allocation17 + $0xb90] sm:$0xff] }
 0x488   :  { %6822 = vmatmul.mubr.msk.f32.vlgmr.msra.gmra.mrb[58].mxu1 %vm223_vm1, %v8696_v60  ;;  %6823 = vmatmul.mubr.msk.f32.vlgmr.msra.gmra.mrb[56].mxu0 %vm223_vm1, %v8696_v60  ;;  %v7911_v58 = vpack.c.bf16 %v4069_v55, %v4005_v32  ;;  %v3880_v32 = vld [vmem:[#allocation17 + $0x598] sm:$0xff] }
 0x489   :  { %7888 = vmatpush1.bf16.msra.mxu1 %v7887_v52  ;;  %7904 = vmatpush1.bf16.msra.mxu0 %v7903_v27  ;;  %v3944_v55 = vld [vmem:[#allocation17 + $0x798] sm:$0xff] }
 0x48a   :  { %7890 = vmatprep.subr.bf16.mxu1 %v7889_v59  ;;  %7906 = vmatprep.subr.bf16.mxu0 %v7905_v61  ;;  %v4131_v59 = vld [vmem:[#allocation17 + $0xd70] sm:$0xff] }
 0x48b   :  { %v8976_v45 = vpop.f32.mrb[32].mxu1  ;;  %v8978_v37 = vpop.f32.mrb[30].mxu0  ;;  %5910 = vmatprep.mubr.f32.mxu1 %v9410_v46  ;;  %5981 = vmatprep.mubr.f32.mxu0 %v9410_v46  ;;  %v4195_v61 = vld [vmem:[#allocation17 + $0xf70] sm:$0xff] }
 0x48c   :  { %9425 = vst [vmem:[#allocation61_spill] sm:$0xff] %v8976_v45  ;;  %9426 = vst [vmem:[#allocation62_spill] sm:$0xff] %v8978_v37  ;;  %v8982_v52 = vpop.f32.mrb[33].mxu1  ;;  %v8984_v27 = vpop.f32.mrb[31].mxu0  ;;  %v3754_v37 = vld [vmem:[#allocation17 + $0x1a8] sm:$0xff] }
 0x48d   :  { %9427 = vst [vmem:[#allocation63_spill] sm:$0xff] %v8982_v52  ;;  %9428 = vst [vmem:[#allocation64_spill] sm:$0xff] %v8984_v27  ;;  %7892 = vmatpush1.bf16.msra.mxu1 %v7891_v28  ;;  %7908 = vmatpush1.bf16.msra.mxu0 %v7907_v33  ;;  %v3818_v45 = vld [vmem:[#allocation17 + $0x3a8] sm:$0xff]  ;;  %v7899_v52 = vpack.c.bf16 %v4195_v61, %v4131_v59  ;;  %v7915_v27 = vpack.c.bf16 %v4197_v56, %v4133_v38  ;;  %v3751_v28 = vld [vmem:[#allocation17 + $0x190] sm:$0xff] }
 0x48e   :  { %7894 = vmatprep.subr.bf16.mxu1 %v7893_v36  ;;  %7910 = vmatprep.subr.bf16.mxu0 %v7909_v39  ;;  %v3815_v33 = vld [vmem:[#allocation17 + $0x390] sm:$0xff]  ;;  %v7933_v31 = vpack.c.bf16 %v3818_v45, %v3754_v37  ;;  %v3753_v36 = vld [vmem:[#allocation17 + $0x1a0] sm:$0xff]  ;;  %v7921_v59 = vpack.c.bf16 %v3944_v55, %v3880_v32  ;;  %v7937_v61 = vpack.c.bf16 %v3946_v1, %v3882_v40  ;;  %v4008_v38 = vld [vmem:[#allocation17 + $0x998] sm:$0xff] }
 0x48f   :  { %v3817_v39 = vld [vmem:[#allocation17 + $0x3a0] sm:$0xff]  ;;  %v7919_v51 = vpack.c.bf16 %v3815_v33, %v3751_v28  ;;  %v4072_v45 = vld [vmem:[#allocation17 + $0xb98] sm:$0xff]  ;;  %v4010_v37 = vld [vmem:[#allocation17 + $0x9a8] sm:$0xff]  ;;  %v1025_v28 = vlaneseq }
 0x490   :  { %v7935_v17 = vpack.c.bf16 %v3817_v39, %v3753_v36  ;;  %v4074_v56 = vld [vmem:[#allocation17 + $0xba8] sm:$0xff]  ;;  %v7925_v33 = vpack.c.bf16 %v4072_v45, %v4008_v38  ;;  %v4073_v36 = vld [vmem:[#allocation17 + $0xba0] sm:$0xff]  ;;  %v4136_v39 = vld [vmem:[#allocation17 + $0xd98] sm:$0xff] }
 0x491   :  { %7896 = vmatpush1.bf16.msra.mxu1 %v7895_v57  ;;  %7912 = vmatpush1.bf16.msra.mxu0 %v7911_v58  ;;  %v3879_v57 = vld [vmem:[#allocation17 + $0x590] sm:$0xff]  ;;  %v4200_v40 = vld [vmem:[#allocation17 + $0xf98] sm:$0xff]  ;;  %v4138_v1 = vld [vmem:[#allocation17 + $0xda8] sm:$0xff] }
 0x492   :  { %7898 = vmatprep.subr.bf16.mxu1 %v7897_v5  ;;  %7914 = vmatprep.subr.bf16.mxu0 %v7913_v6  ;;  %v3943_v58 = vld [vmem:[#allocation17 + $0x790] sm:$0xff]  ;;  %v3881_v5 = vld [vmem:[#allocation17 + $0x5a0] sm:$0xff]  ;;  %v7929_v38 = vpack.c.bf16 %v4200_v40, %v4136_v39  ;;  %v3884_v39 = vld [vmem:[#allocation17 + $0x5b8] sm:$0xff] }
 0x493   :  { %v3945_v6 = vld [vmem:[#allocation17 + $0x7a0] sm:$0xff] }
 0x495   :  { %7900 = vmatpush1.bf16.msra.mxu1 %v7899_v52  ;;  %7916 = vmatpush1.bf16.msra.mxu0 %v7915_v27  ;;  %v7923_v52 = vpack.c.bf16 %v3943_v58, %v3879_v57  ;;  %v7939_v27 = vpack.c.bf16 %v3945_v6, %v3881_v5  ;;  %v7927_v58 = vpack.c.bf16 %v4071_v53, %v4007_v42  ;;  %v4199_v5 = vld [vmem:[#allocation17 + $0xf90] sm:$0xff]  ;;  %v9000_v6 = vshrl.u32 %v1025_v28, 7 }
 0x496   :  { %7918 = vmatprep.subr.bf16.mxu1 %v7917_v26  ;;  %7934 = vmatprep.subr.bf16.mxu0 %v7933_v31  ;;  %v7941_v26 = vpack.c.bf16 %v4074_v56, %v4010_v37  ;;  %v4009_v31 = vld [vmem:[#allocation17 + $0x9a0] sm:$0xff]  ;;  %v3755_v42 = vld [vmem:[#allocation17 + $0x1b0] sm:$0xff] }
 0x497   :  { %v4137_v37 = vld [vmem:[#allocation17 + $0xda0] sm:$0xff]  ;;  %v3819_v53 = vld [vmem:[#allocation17 + $0x3b0] sm:$0xff]  ;;  %v9005_v28 = vsub.s32 0, %v9000_v6  ;;  %v9008_v40 = vsub.s32 1, %v9000_v6 }
 0x498   :  { %6824 = vmatmul.mubr.msk.f32.vlgmr.msra.gmra.mrb[60].mxu1 %vm223_vm1, %v8696_v60  ;;  %6825 = vmatmul.mubr.msk.f32.vlgmr.msra.gmra.mrb[58].mxu0 %vm223_vm1, %v8696_v60  ;;  %v4201_v56 = vld [vmem:[#allocation17 + $0xfa0] sm:$0xff] }
 0x499   :  { %7920 = vmatpush1.bf16.msra.mxu1 %v7919_v51  ;;  %7936 = vmatpush1.bf16.msra.mxu0 %v7935_v17  ;;  %v4202_v51 = vld [vmem:[#allocation17 + $0xfa8] sm:$0xff] }
 0x49a   :  { %7922 = vmatprep.subr.bf16.mxu1 %v7921_v59  ;;  %7938 = vmatprep.subr.bf16.mxu0 %v7937_v61  ;;  %v7943_v59 = vpack.c.bf16 %v4073_v36, %v4009_v31  ;;  %v4135_v61 = vld [vmem:[#allocation17 + $0xd90] sm:$0xff]  ;;  %v7945_v45 = vpack.c.bf16 %v4202_v51, %v4138_v1  ;;  %v3757_v31 = vld [vmem:[#allocation17 + $0x1c0] sm:$0xff]  ;;  %v3948_v1 = vld [vmem:[#allocation17 + $0x7b8] sm:$0xff] }
 0x49b   :  { %v8990_v32 = vpop.f32.mrb[34].mxu1  ;;  %v8992_v55 = vpop.f32.mrb[32].mxu0  ;;  %6052 = vmatprep.mubr.f32.mxu1 %v9410_v46  ;;  %6123 = vmatprep.mubr.f32.mxu0 %v9410_v46  ;;  %v3821_v36 = vld [vmem:[#allocation17 + $0x3c0] sm:$0xff]  ;;  %v3886_v51 = vld [vmem:[#allocation17 + $0x5c8] sm:$0xff] }
 0x49c   :  { %9429 = vst [vmem:[#allocation65_spill] sm:$0xff] %v8990_v32  ;;  %9430 = vst [vmem:[#allocation66_spill] sm:$0xff] %v8992_v55  ;;  %v8996_v17 = vpop.f32.mrb[35].mxu1  ;;  %v8998_v57 = vpop.f32.mrb[33].mxu0  ;;  %v3756_v55 = vld [vmem:[#allocation17 + $0x1b8] sm:$0xff] }
 0x49d   :  { %9431 = vst [vmem:[#allocation67_spill] sm:$0xff] %v8996_v17  ;;  %9432 = vst [vmem:[#allocation68_spill] sm:$0xff] %v8998_v57  ;;  %7924 = vmatpush1.bf16.msra.mxu1 %v7923_v52  ;;  %7940 = vmatpush1.bf16.msra.mxu0 %v7939_v27  ;;  %v3820_v32 = vld [vmem:[#allocation17 + $0x3b8] sm:$0xff]  ;;  %v3822_v17 = vld [vmem:[#allocation17 + $0x3c8] sm:$0xff]  ;;  %v7931_v52 = vpack.c.bf16 %v4199_v5, %v4135_v61  ;;  %v7947_v27 = vpack.c.bf16 %v4201_v56, %v4137_v37 }
 0x49e   :  { %7926 = vmatprep.subr.bf16.mxu1 %v7925_v33  ;;  %7942 = vmatprep.subr.bf16.mxu0 %v7941_v26  ;;  %v7949_v33 = vpack.c.bf16 %v3820_v32, %v3756_v55  ;;  %v7965_v26 = vpack.c.bf16 %v3822_v17, %v3758_v41  ;;  %v7967_v61 = vpack.c.bf16 %v3821_v36, %v3757_v31  ;;  %v3883_v5 = vld [vmem:[#allocation17 + $0x5b0] sm:$0xff]  ;;  %v3885_v55 = vld [vmem:[#allocation17 + $0x5c0] sm:$0xff]  ;;  %v4076_v57 = vld [vmem:[#allocation17 + $0xbb8] sm:$0xff] }
 0x49f   :  { %v3947_v37 = vld [vmem:[#allocation17 + $0x7b0] sm:$0xff]  ;;  %v7953_v41 = vpack.c.bf16 %v3948_v1, %v3884_v39  ;;  %v3949_v17 = vld [vmem:[#allocation17 + $0x7c0] sm:$0xff]  ;;  %v1032_v56 = vrot.slane %v9002_v50, %v9008_v40 }
 0x4a0   :  { %v4013_v1 = vld [vmem:[#allocation17 + $0x9c0] sm:$0xff] }
 0x4a1   :  { %7928 = vmatpush1.bf16.msra.mxu1 %v7927_v58  ;;  %7944 = vmatpush1.bf16.msra.mxu0 %v7943_v59  ;;  %v3950_v58 = vld [vmem:[#allocation17 + $0x7c8] sm:$0xff]  ;;  %v7951_v59 = vpack.c.bf16 %v3819_v53, %v3755_v42  ;;  %v7955_v42 = vpack.c.bf16 %v3947_v37, %v3883_v5  ;;  %v7971_v53 = vpack.c.bf16 %v3949_v17, %v3885_v55  ;;  %v4203_v55 = vld [vmem:[#allocation17 + $0xfb0] sm:$0xff] }
 0x4a2   :  { %7930 = vmatprep.subr.bf16.mxu1 %v7929_v38  ;;  %7946 = vmatprep.subr.bf16.mxu0 %v7945_v45  ;;  %v1028_v38 = vrot.slane %v9002_v50, %v9005_v28  ;;  %v7969_v32 = vpack.c.bf16 %v3950_v58, %v3886_v51  ;;  %v4012_v45 = vld [vmem:[#allocation17 + $0x9b8] sm:$0xff]  ;;  %v4077_v51 = vld [vmem:[#allocation17 + $0xbc0] sm:$0xff]  ;;  %v1427_v54 = vadd.f32 %v8786_v24, %v1032_v56  ;;  %v4206_v5 = vld [vmem:[#allocation17 + $0xfc8] sm:$0xff] }
 0x4a3   :  { %v7957_v36 = vpack.c.bf16 %v4076_v57, %v4012_v45  ;;  %v4140_v58 = vld [vmem:[#allocation17 + $0xdb8] sm:$0xff]  ;;  %v4141_v56 = vld [vmem:[#allocation17 + $0xdc0] sm:$0xff] }
 0x4a4   :  { %v1425_v31 = vadd.f32 %v8780_v19, %v1028_v38 }
 0x4a5   :  { %7932 = vmatpush1.bf16.msra.mxu1 %v7931_v52  ;;  %7948 = vmatpush1.bf16.msra.mxu0 %v7947_v27  ;;  %v4014_v52 = vld [vmem:[#allocation17 + $0x9c8] sm:$0xff] }
 0x4a6   :  { %7950 = vmatprep.subr.bf16.mxu1 %v7949_v33  ;;  %7966 = vmatprep.subr.bf16.mxu0 %v7965_v26  ;;  %v4078_v27 = vld [vmem:[#allocation17 + $0xbc8] sm:$0xff]  ;;  %v4011_v33 = vld [vmem:[#allocation17 + $0x9b0] sm:$0xff] }
 0x4a7   :  { %v4075_v26 = vld [vmem:[#allocation17 + $0xbb0] sm:$0xff]  ;;  %v7973_v39 = vpack.c.bf16 %v4078_v27, %v4014_v52  ;;  %v4205_v52 = vld [vmem:[#allocation17 + $0xfc0] sm:$0xff]  ;;  %v3760_v27 = vld [vmem:[#allocation17 + $0x1d8] sm:$0xff] }
 0x4a8   :  { %6826 = vmatmul.mubr.msk.f32.vlgmr.msra.gmra.mrb[62].mxu1 %vm223_vm1, %v8696_v60  ;;  %6827 = vmatmul.mubr.msk.f32.vlgmr.msra.gmra.mrb[60].mxu0 %vm223_vm1, %v8696_v60  ;;  %v7959_v24 = vpack.c.bf16 %v4075_v26, %v4011_v33  ;;  %v3823_v33 = vld [vmem:[#allocation17 + $0x3d0] sm:$0xff]  ;;  %v9034_v26 = vsub.s32 4, %v9000_v6 }
 0x4a9   :  { %7952 = vmatpush1.bf16.msra.mxu1 %v7951_v59  ;;  %7968 = vmatpush1.bf16.msra.mxu0 %v7967_v61  ;;  %v4204_v59 = vld [vmem:[#allocation17 + $0xfb8] sm:$0xff]  ;;  %v4142_v61 = vld [vmem:[#allocation17 + $0xdc8] sm:$0xff] }
 0x4aa   :  { %7954 = vmatprep.subr.bf16.mxu1 %v7953_v41  ;;  %7970 = vmatprep.subr.bf16.mxu0 %v7969_v32  ;;  %v7975_v41 = vpack.c.bf16 %v4077_v51, %v4013_v1  ;;  %v4139_v32 = vld [vmem:[#allocation17 + $0xdb0] sm:$0xff]  ;;  %v7961_v17 = vpack.c.bf16 %v4204_v59, %v4140_v58  ;;  %v7977_v45 = vpack.c.bf16 %v4206_v5, %v4142_v61  ;;  %v3761_v1 = vld [vmem:[#allocation17 + $0x1e0] sm:$0xff]  ;;  %v3888_v58 = vld [vmem:[#allocation17 + $0x5d8] sm:$0xff]  ;;  %v9037_v59 = vsub.s32 3, %v9000_v6 }
 0x4ab   :  { %v9020_v21 = vpop.f32.mrb[36].mxu1  ;;  %v4279_v47 = vpop.f32.mrb[34].mxu0  ;;  %6194 = vmatprep.mubr.f32.mxu1 %v9410_v46  ;;  %6265 = vmatprep.mubr.f32.mxu0 %v9410_v46  ;;  %v3825_v51 = vld [vmem:[#allocation17 + $0x3e0] sm:$0xff]  ;;  %v9040_v61 = vsub.s32 5, %v9000_v6  ;;  %v3952_v5 = vld [vmem:[#allocation17 + $0x7d8] sm:$0xff] }
 0x4ac   :  { %9433 = vst [vmem:[#allocation69_spill] sm:$0xff] %v9020_v21  ;;  %v9024_v19 = vmul.f32 %v4279_v47, %v1425_v31  ;;  %v9026_v37 = vpop.f32.mrb[37].mxu1  ;;  %v4281_v57 = vpop.f32.mrb[35].mxu0  ;;  %v3824_v47 = vld [vmem:[#allocation17 + $0x3d8] sm:$0xff]  ;;  %v3762_v31 = vld [vmem:[#allocation17 + $0x1e8] sm:$0xff] }
 0x4ad   :  { %9435 = vst [vmem:[#allocation71_spill] sm:$0xff] %v9026_v37  ;;  %v9028_v38 = vmul.f32 %v4281_v57, %v1427_v54  ;;  %7956 = vmatpush1.bf16.msra.mxu1 %v7955_v42  ;;  %7972 = vmatpush1.bf16.msra.mxu0 %v7971_v53  ;;  %v3826_v21 = vld [vmem:[#allocation17 + $0x3e8] sm:$0xff]  ;;  %v9031_v37 = vsub.s32 2, %v9000_v6  ;;  %v7963_v54 = vpack.c.bf16 %v4203_v55, %v4139_v32  ;;  %v3759_v53 = vld [vmem:[#allocation17 + $0x1d0] sm:$0xff] }
 0x4ae   :  { %9434 = vst [vmem:[#allocation70_spill] sm:$0xff] %v9024_v19  ;;  %7958 = vmatprep.subr.bf16.mxu1 %v7957_v36  ;;  %7974 = vmatprep.subr.bf16.mxu0 %v7973_v39  ;;  %v7979_v42 = vpack.c.bf16 %v4205_v52, %v4141_v56  ;;  %v7981_v36 = vpack.c.bf16 %v3824_v47, %v3760_v27  ;;  %v3890_v57 = vld [vmem:[#allocation17 + $0x5e8] sm:$0xff]  ;;  %v3889_v27 = vld [vmem:[#allocation17 + $0x5e0] sm:$0xff] }
 0x4af   :  { %9436 = vst [vmem:[#allocation72_spill] sm:$0xff] %v9028_v38  ;;  %v7997_v39 = vpack.c.bf16 %v3826_v21, %v3762_v31  ;;  %v7983_v32 = vpack.c.bf16 %v3823_v33, %v3759_v53  ;;  %v7999_v55 = vpack.c.bf16 %v3825_v51, %v3761_v1  ;;  %v3887_v21 = vld [vmem:[#allocation17 + $0x5d0] sm:$0xff]  ;;  %v7985_v56 = vpack.c.bf16 %v3952_v5, %v3888_v58  ;;  %v3953_v47 = vld [vmem:[#allocation17 + $0x7e0] sm:$0xff]  ;;  %v4016_v31 = vld [vmem:[#allocation17 + $0x9d8] sm:$0xff] }
 0x4b0   :  { %v1040_v38 = vrot.slane %v9002_v50, %v9037_v59  ;;  %v4018_v53 = vld [vmem:[#allocation17 + $0x9e8] sm:$0xff]  ;;  %v8003_v1 = vpack.c.bf16 %v3953_v47, %v3889_v27  ;;  %v4015_v51 = vld [vmem:[#allocation17 + $0x9d0] sm:$0xff]  ;;  %v4017_v19 = vld [vmem:[#allocation17 + $0x9e0] sm:$0xff] }
 0x4b1   :  { %7960 = vmatpush1.bf16.msra.mxu1 %v7959_v24  ;;  %7976 = vmatpush1.bf16.msra.mxu0 %v7975_v41  ;;  %v3954_v24 = vld [vmem:[#allocation17 + $0x7e8] sm:$0xff]  ;;  %v1036_v41 = vrot.slane %v9002_v50, %v9031_v37  ;;  %v4079_v58 = vld [vmem:[#allocation17 + $0xbd0] sm:$0xff] }
 0x4b2   :  { %7962 = vmatprep.subr.bf16.mxu1 %v7961_v17  ;;  %7978 = vmatprep.subr.bf16.mxu0 %v7977_v45  ;;  %v3951_v17 = vld [vmem:[#allocation17 + $0x7d0] sm:$0xff]  ;;  %v1044_v45 = vrot.slane %v9002_v50, %v9034_v26  ;;  %v8001_v52 = vpack.c.bf16 %v3954_v24, %v3890_v57  ;;  %v4082_v33 = vld [vmem:[#allocation17 + $0xbe8] sm:$0xff]  ;;  %v1498_v49 = vadd.f32 %v8788_v25, %v1040_v38 }
 0x4b3   :  { %v8005_v24 = vpack.c.bf16 %v4082_v33, %v4018_v53  ;;  %v4143_v38 = vld [vmem:[#allocation17 + $0xdd0] sm:$0xff]  ;;  %v4209_v53 = vld [vmem:[#allocation17 + $0xfe0] sm:$0xff]  ;;  %v3764_v33 = vld [vmem:[#allocation17 + $0x1f8] sm:$0xff] }
 0x4b4   :  { %v1567_v5 = vadd.f32 %v8794_v9, %v1044_v45 }
 0x4b5   :  { %7964 = vmatpush1.bf16.msra.mxu1 %v7963_v54  ;;  %7980 = vmatpush1.bf16.msra.mxu0 %v7979_v42  ;;  %v1048_v54 = vrot.slane %v9002_v50, %v9040_v61  ;;  %v4080_v42 = vld [vmem:[#allocation17 + $0xbd8] sm:$0xff] }
 0x4b6   :  { %7982 = vmatprep.subr.bf16.mxu1 %v7981_v36  ;;  %7998 = vmatprep.subr.bf16.mxu0 %v7997_v39  ;;  %v1496_v36 = vadd.f32 %v8782_v20, %v1036_v41  ;;  %v7987_v39 = vpack.c.bf16 %v3951_v17, %v3887_v21  ;;  %v7989_v57 = vpack.c.bf16 %v4080_v42, %v4016_v31  ;;  %v4210_v21 = vld [vmem:[#allocation17 + $0xfe8] sm:$0xff]  ;;  %v4145_v42 = vld [vmem:[#allocation17 + $0xde0] sm:$0xff] }
 0x4b7   :  { %v1569_v62 = vadd.f32 %v8800_v14, %v1048_v54  ;;  %v8007_v14 = vpack.c.bf16 %v4081_v63, %v4017_v19  ;;  %v4207_v54 = vld [vmem:[#allocation17 + $0xfd0] sm:$0xff] }
 0x4b8   :  { %6828 = vmatmul.mubr.msk.f32.vlgmr.msra.gmra.mrb[64].mxu1 %vm223_vm1, %v8696_v60  ;;  %6829 = vmatmul.mubr.msk.f32.vlgmr.msra.gmra.mrb[62].mxu0 %vm223_vm1, %v8696_v60  ;;  %v3763_v19 = vld [vmem:[#allocation17 + $0x1f0] sm:$0xff] }
 0x4b9   :  { %7984 = vmatpush1.bf16.msra.mxu1 %v7983_v32  ;;  %8000 = vmatpush1.bf16.msra.mxu0 %v7999_v55  ;;  %v4208_v32 = vld [vmem:[#allocation17 + $0xfd8] sm:$0xff]  ;;  %v4146_v55 = vld [vmem:[#allocation17 + $0xde8] sm:$0xff] }
 0x4ba   :  { %7986 = vmatprep.subr.bf16.mxu1 %v7985_v56  ;;  %8002 = vmatprep.subr.bf16.mxu0 %v8001_v52  ;;  %v7991_v52 = vpack.c.bf16 %v4079_v58, %v4015_v51  ;;  %v7993_v47 = vpack.c.bf16 %v4208_v32, %v4144_v18  ;;  %v8009_v31 = vpack.c.bf16 %v4210_v21, %v4146_v55  ;;  %v9072_v18 = vsub.s32 7, %v9000_v6  ;;  %v3892_v58 = vld [vmem:[#allocation17 + $0x5f8] sm:$0xff]  ;;  %v3891_v32 = vld [vmem:[#allocation17 + $0x5f0] sm:$0xff] }
 0x4bb   :  { %v4350_v20 = vpop.f32.mrb[38].mxu1  ;;  %v4421_v41 = vpop.f32.mrb[36].mxu0  ;;  %6336 = vmatprep.mubr.f32.mxu1 %v9410_v46  ;;  %6407 = vmatprep.mubr.f32.mxu0 %v9410_v46  ;;  %v7995_v51 = vpack.c.bf16 %v4207_v54, %v4143_v38  ;;  %v3955_v55 = vld [vmem:[#allocation17 + $0x7f0] sm:$0xff] }
 0x4bc   :  { %v9060_v9 = vmul.f32 %v4350_v20, %v1496_v36  ;;  %v9062_v17 = vmul.f32 %v4421_v41, %v1567_v5  ;;  %v4352_v45 = vpop.f32.mrb[39].mxu1  ;;  %v4423_v56 = vpop.f32.mrb[37].mxu0  ;;  %v3828_v36 = vld [vmem:[#allocation17 + $0x3f8] sm:$0xff] }
 0x4bd   :  { %v9064_v27 = vmul.f32 %v4352_v45, %v1498_v49  ;;  %v9066_v25 = vmul.f32 %v4423_v56, %v1569_v62  ;;  %7988 = vmatpush1.bf16.msra.mxu1 %v7987_v39  ;;  %8004 = vmatpush1.bf16.msra.mxu0 %v8003_v1  ;;  %v8011_v49 = vpack.c.bf16 %v4209_v53, %v4145_v42  ;;  %v9069_v62 = vsub.s32 6, %v9000_v6  ;;  %v3827_v39 = vld [vmem:[#allocation17 + $0x3f0] sm:$0xff]  ;;  %v9074_v1 = vld [vmem:[#allocation16 + $0x8] sm:$0xff]  ;;  %v3956_v5 = vld [vmem:[#allocation17 + $0x7f8] sm:$0xff] }
 0x4be   :  { %7990 = vmatprep.subr.bf16.mxu1 %v7989_v57  ;;  %8006 = vmatprep.subr.bf16.mxu0 %v8005_v24  ;;  %v8013_v63 = vpack.c.bf16 %v3828_v36, %v3764_v33  ;;  %v8015_v57 = vpack.c.bf16 %v3827_v39, %v3763_v19  ;;  %v1060_v20 = vrot.slane %v9074_v1, %v9005_v28  ;;  %v4020_v45 = vld [vmem:[#allocation17 + $0x9f8] sm:$0xff] }
 0x4bf   :  { %v1052_v24 = vrot.slane %v9002_v50, %v9069_v62  ;;  %v8017_v41 = vpack.c.bf16 %v3956_v5, %v3892_v58  ;;  %v1056_v6 = vrot.slane %v9002_v50, %v9072_v18  ;;  %v1064_v21 = vrot.slane %v9074_v1, %v9008_v40  ;;  %v4084_v56 = vld [vmem:[#allocation17 + $0xbf8] sm:$0xff]  ;;  %v4147_v58 = vld [vmem:[#allocation17 + $0xdf0] sm:$0xff] }
 0x4c0   :  { %v1709_v38 = vadd.f32 %v8808_v3, %v1060_v20  ;;  %v8021_v50 = vpack.c.bf16 %v4084_v56, %v4020_v45  ;;  %v4148_v36 = vld [vmem:[#allocation17 + $0xdf8] sm:$0xff]  ;;  %v1072_v20 = vrot.slane %v9074_v1, %v9037_v59 }
 0x4c1   :  { %7992 = vmatpush1.bf16.msra.mxu1 %v7991_v52  ;;  %8008 = vmatpush1.bf16.msra.mxu0 %v8007_v14  ;;  %v8019_v52 = vpack.c.bf16 %v3955_v55, %v3891_v32  ;;  %v1638_v14 = vadd.f32 %v8796_v10, %v1052_v24  ;;  %v1640_v54 = vadd.f32 %v8802_v15, %v1056_v6 }
 0x4c2   :  { %7994 = vmatprep.subr.bf16.mxu1 %v7993_v47  ;;  %8010 = vmatprep.subr.bf16.mxu0 %v8009_v31  ;;  %v4019_v47 = vld [vmem:[#allocation17 + $0x9f0] sm:$0xff]  ;;  %v1711_v42 = vadd.f32 %v8814_v8, %v1064_v21  ;;  %v1076_v24 = vrot.slane %v9074_v1, %v9034_v26  ;;  %v1782_v6 = vadd.f32 %v8816_v11, %v1072_v20 }
 0x4c3   :  { %v4083_v31 = vld [vmem:[#allocation17 + $0xbf0] sm:$0xff] }
 0x4c4   :  { %v8023_v39 = vpack.c.bf16 %v4083_v31, %v4019_v47  ;;  %v4211_v8 = vld [vmem:[#allocation17 + $0xff0] sm:$0xff]  ;;  %v1851_v55 = vadd.f32 %v8822_v0, %v1076_v24  ;;  %v1088_v0 = vrot.slane %v9074_v1, %v9072_v18 }
 0x4c5   :  { %7996 = vmatpush1.bf16.msra.mxu1 %v7995_v51  ;;  %8012 = vmatpush1.bf16.msra.mxu0 %v8011_v49  ;;  %v4212_v51 = vld [vmem:[#allocation17 + $0xff8] sm:$0xff]  ;;  %v8027_v5 = vpack.c.bf16 %v4211_v8, %v4147_v58 }
 0x4c6   :  { %8014 = vmatprep.subr.bf16.mxu1 %v8013_v63  ;;  %v8025_v15 = vpack.c.bf16 %v4212_v51, %v4148_v36 }
 0x4c8   :  { %6830 = vmatmul.mubr.msk.f32.vlgmr.msra.gmra.mrb[66].mxu1 %vm223_vm1, %v8696_v60  ;;  %6831 = vmatmul.mubr.msk.f32.vlgmr.msra.gmra.mrb[64].mxu0 %vm223_vm1, %v8696_v60 }
 0x4c9   :  { %8016 = vmatpush1.bf16.msra.mxu1 %v8015_v57  ;;  %6478 = vmatprep.mubr.f32.mxu1 %v9410_v46  ;;  %v1068_v57 = vrot.slane %v9074_v1, %v9031_v37 }
 0x4ca   :  { %8018 = vmatprep.subr.bf16.mxu1 %v8017_v41  ;;  %v1080_v41 = vrot.slane %v9074_v1, %v9040_v61 }
 0x4cb   :  { %v4492_v53 = vpop.f32.mrb[40].mxu1  ;;  %v4563_v33 = vpop.f32.mrb[38].mxu0  ;;  %v1780_v32 = vadd.f32 %v8810_v4, %v1068_v57  ;;  %v1084_v4 = vrot.slane %v9074_v1, %v9069_v62 }
 0x4cc   :  { %v9093_v49 = vmul.f32 %v4492_v53, %v1638_v14  ;;  %v9095_v63 = vmul.f32 %v4563_v33, %v1709_v38  ;;  %v4494_v46 = vpop.f32.mrb[41].mxu1  ;;  %v4565_v10 = vpop.f32.mrb[39].mxu0  ;;  %v1853_v21 = vadd.f32 %v8828_v12, %v1080_v41  ;;  %v1924_v53 = vadd.f32 %v8830_v13, %v1088_v0 }
 0x4cd   :  { %v9097_v19 = vmul.f32 %v4494_v46, %v1640_v54  ;;  %v9099_v3 = vmul.f32 %v4565_v10, %v1711_v42  ;;  %8020 = vmatpush1.bf16.msra.mxu1 %v8019_v52  ;;  %v1922_v54 = vadd.f32 %v8824_v2, %v1084_v4 }
 0x4ce   :  { %8022 = vmatprep.subr.bf16.mxu1 %v8021_v50 }
 0x4d1   :  { %8024 = vmatpush1.bf16.msra.mxu1 %v8023_v39 }
 0x4d2   :  { %8026 = vmatprep.subr.bf16.mxu1 %v8025_v15 }
 0x4d5   :  { %8028 = vmatpush1.bf16.msra.mxu1 %v8027_v5 }
 0x4d8   :  { %6832 = vmatmul.mubr.msk.f32.vlgmr.msra.gmra.mrb[68].mxu1 %vm223_vm1, %v8696_v60  ;;  %v1009_v60 = vld [vmem:[#allocation16 + $0x10] sm:$0xff] }
 0x4d9   :  { %v1092_v11 = vrot.slane %v1009_v60, %v9005_v28  ;;  %v1096_v12 = vrot.slane %v1009_v60, %v9008_v40  ;;  %v1100_v2 = vrot.slane %v1009_v60, %v9031_v37  ;;  %v1104_v13 = vrot.slane %v1009_v60, %v9037_v59 }
 0x4db   :  { %v4634_v45 = vpop.f32.mrb[42].mxu1  ;;  %v4705_v56 = vpop.f32.mrb[40].mxu0  ;;  %v1993_v42 = vadd.f32 %v8836_v7, %v1092_v11  ;;  %v1995_v33 = vadd.f32 %v8842_v22, %v1096_v12  ;;  %v1108_v7 = vrot.slane %v1009_v60, %v9034_v26  ;;  %v1112_v22 = vrot.slane %v1009_v60, %v9040_v61 }
 0x4dc   :  { %v9115_v52 = vmul.f32 %v4634_v45, %v1780_v32  ;;  %v9117_v14 = vmul.f32 %v4705_v56, %v1851_v55  ;;  %v4636_v38 = vpop.f32.mrb[43].mxu1  ;;  %v4707_v50 = vpop.f32.mrb[41].mxu0  ;;  %v2064_v8 = vadd.f32 %v8838_v16, %v1100_v2  ;;  %v2066_v57 = vadd.f32 %v8844_v23, %v1104_v13 }
 0x4dd   :  { %v9119_v47 = vmul.f32 %v4636_v38, %v1782_v6  ;;  %v9121_v31 = vmul.f32 %v4707_v50, %v1853_v21  ;;  %v2135_v5 = vadd.f32 %v8850_v29, %v1108_v7  ;;  %v2137_v24 = vadd.f32 %v8856_v34, %v1112_v22  ;;  %v9157_v38 = vld [vmem:[#allocation16 + $0x18] sm:$0xff]  ;;  %v9438_v7 = vld [vmem:[#allocation32_spill] sm:$0xff]  ;;  %v9439_v22 = vld [vmem:[#allocation35_spill] sm:$0xff] }
 0x4de   :  { %v1116_v16 = vrot.slane %v1009_v60, %v9069_v62  ;;  %v1124_v23 = vrot.slane %v9157_v38, %v9005_v28  ;;  %v1120_v29 = vrot.slane %v1009_v60, %v9072_v18  ;;  %v1128_v34 = vrot.slane %v9157_v38, %v9008_v40 }
 0x4e0   :  { %v2206_v50 = vadd.f32 %v8852_v30, %v1116_v16  ;;  %v2277_v4 = vadd.f32 %v8864_v43, %v1124_v23  ;;  %v2208_v11 = vadd.f32 %v8858_v35, %v1120_v29  ;;  %v2279_v0 = vadd.f32 %v8870_v48, %v1128_v34  ;;  %v6645_v23 = vld [vmem:[#allocation20 + $0x80] sm:$0xff] }
 0x4e1   :  { %v1132_v30 = vrot.slane %v9157_v38, %v9031_v37  ;;  %v1140_v35 = vrot.slane %v9157_v38, %v9034_v26  ;;  %v1136_v43 = vrot.slane %v9157_v38, %v9037_v59  ;;  %v1144_v48 = vrot.slane %v9157_v38, %v9040_v61  ;;  %v6629_v34 = vld [vmem:[#allocation20] sm:$0xff] }
 0x4e3   :  { %v2350_v13 = vadd.f32 %v9438_v7, %v1136_v43  ;;  %v6650_v43 = vld [vmem:[#allocation20 + $0xa8] sm:$0xff] }
 0x4e4   :  { %v6634_v7 = vld [vmem:[#allocation20 + $0x28] sm:$0xff] }
 0x4eb   :  { %v4776_v36 = vpop.f32.mrb[44].mxu1  ;;  %v4847_v51 = vpop.f32.mrb[42].mxu0 }
 0x4ec   :  { %v9133_v46 = vmul.f32 %v4776_v36, %v1922_v54  ;;  %v9135_v10 = vmul.f32 %v4847_v51, %v1993_v42  ;;  %v4778_v39 = vpop.f32.mrb[45].mxu1  ;;  %v4849_v15 = vpop.f32.mrb[43].mxu0 }
 0x4ed   :  { %v9137_v58 = vmul.f32 %v4778_v39, %v1924_v53  ;;  %v9139_v1 = vmul.f32 %v4849_v15, %v1995_v33  ;;  %v2348_v39 = vadd.f32 %v8866_v44, %v1132_v30  ;;  %v9437_v15 = vld [vmem:[#allocation33_spill] sm:$0xff] }
 0x4ee   :  { %v2419_v2 = vadd.f32 %v9437_v15, %v1140_v35  ;;  %v6646_v44 = vld [vmem:[#allocation20 + $0x88] sm:$0xff]  ;;  %v6649_v35 = vld [vmem:[#allocation20 + $0xa0] sm:$0xff] }
 0x4ef   :  { %v8029_v29 = vpack.c.bf16 %v6646_v44, %v6645_v23  ;;  %v9443_v23 = vld [vmem:[#allocation37_spill] sm:$0xff] }
 0x4f1   :  { %8030 = vmatprep.subr.bf16.mxu0 %v8029_v29 }
 0x4fb   :  { %v4918_v20 = vpop.f32.mrb[46].mxu1  ;;  %v4989_v41 = vpop.f32.mrb[44].mxu0 }
 0x4fc   :  { %v9149_v32 = vmul.f32 %v4918_v20, %v2064_v8  ;;  %v9151_v55 = vmul.f32 %v4989_v41, %v2135_v5  ;;  %v4920_v6 = vpop.f32.mrb[47].mxu1  ;;  %v4991_v21 = vpop.f32.mrb[45].mxu0  ;;  %v2421_v8 = vadd.f32 %v9439_v22, %v1144_v48  ;;  %v6633_v48 = vld [vmem:[#allocation20 + $0x20] sm:$0xff] }
 0x4fd   :  { %v9153_v45 = vmul.f32 %v4920_v6, %v2066_v57  ;;  %v9155_v56 = vmul.f32 %v4991_v21, %v2137_v24 }
 0x50b   :  { %v5060_v12 = vpop.f32.mrb[48].mxu1  ;;  %v5131_v54 = vpop.f32.mrb[46].mxu0 }
 0x50c   :  { %v9169_v42 = vmul.f32 %v5060_v12, %v2206_v50  ;;  %v9171_v53 = vmul.f32 %v5131_v54, %v2277_v4  ;;  %v5062_v33 = vpop.f32.mrb[49].mxu1  ;;  %v5133_v36 = vpop.f32.mrb[47].mxu0  ;;  %v6630_v50 = vld [vmem:[#allocation20 + $0x8] sm:$0xff]  ;;  %v6631_v54 = vld [vmem:[#allocation20 + $0x10] sm:$0xff] }
 0x50d   :  { %v9173_v60 = vmul.f32 %v5062_v33, %v2208_v11  ;;  %v9175_v51 = vmul.f32 %v5133_v36, %v2279_v0  ;;  %v8031_v4 = vpack.c.bf16 %v6630_v50, %v6629_v34  ;;  %v6647_v11 = vld [vmem:[#allocation20 + $0x90] sm:$0xff]  ;;  %v6648_v0 = vld [vmem:[#allocation20 + $0x98] sm:$0xff] }
 0x50e   :  { %v8033_v12 = vpack.c.bf16 %v6648_v0, %v6647_v11  ;;  %v6632_v33 = vld [vmem:[#allocation20 + $0x18] sm:$0xff]  ;;  %v6635_v34 = vld [vmem:[#allocation20 + $0x30] sm:$0xff] }
 0x50f   :  { %8032 = vmatpush3.bf16.msra.mxu0 %v8031_v4  ;;  %v9197_v36 = vld [vmem:[#allocation16 + $0x20] sm:$0xff]  ;;  %v8035_v30 = vpack.c.bf16 %v6632_v33, %v6631_v54  ;;  %v9444_v4 = vld [vmem:[#allocation36_spill] sm:$0xff] }
 0x510   :  { %8034 = vmatprep.subr.bf16.mxu0 %v8033_v12  ;;  %v1156_v15 = vrot.slane %v9197_v36, %v9005_v28  ;;  %v1160_v22 = vrot.slane %v9197_v36, %v9008_v40  ;;  %v6636_v50 = vld [vmem:[#allocation20 + $0x38] sm:$0xff] }
 0x511   :  { %v9445_v0 = vld [vmem:[#allocation39_spill] sm:$0xff]  ;;  %v8043_v33 = vpack.c.bf16 %v6636_v50, %v6635_v34  ;;  %v6639_v50 = vld [vmem:[#allocation20 + $0x50] sm:$0xff] }
 0x512   :  { %v2561_v44 = vadd.f32 %v9443_v23, %v1156_v15  ;;  %v2563_v12 = vadd.f32 %v9445_v0, %v1160_v22  ;;  %v6653_v15 = vld [vmem:[#allocation20 + $0xc0] sm:$0xff] }
 0x513   :  { %8036 = vmatpush3.bf16.msra.mxu0 %v8035_v30  ;;  %v6637_v22 = vld [vmem:[#allocation20 + $0x40] sm:$0xff] }
 0x514   :  { %v6657_v0 = vld [vmem:[#allocation20 + $0xe0] sm:$0xff] }
 0x51b   :  { %v5202_v5 = vpop.f32.mrb[50].mxu1  ;;  %v5273_v57 = vpop.f32.mrb[48].mxu0 }
 0x51c   :  { %v9189_v24 = vmul.f32 %v5202_v5, %v2348_v39  ;;  %v9191_v20 = vmul.f32 %v5273_v57, %v2419_v2  ;;  %v5204_v41 = vpop.f32.mrb[51].mxu1  ;;  %v5275_v6 = vpop.f32.mrb[49].mxu0  ;;  %v1148_v39 = vrot.slane %v9157_v38, %v9069_v62  ;;  %v8037_v2 = vpack.c.bf16 %v6650_v43, %v6649_v35  ;;  %v6651_v5 = vld [vmem:[#allocation20 + $0xb0] sm:$0xff]  ;;  %v6652_v57 = vld [vmem:[#allocation20 + $0xb8] sm:$0xff] }
 0x51d   :  { %v9193_v21 = vmul.f32 %v5204_v41, %v2350_v13  ;;  %v9195_v16 = vmul.f32 %v5275_v6, %v2421_v8  ;;  %v1152_v13 = vrot.slane %v9157_v38, %v9072_v18  ;;  %v8039_v8 = vpack.c.bf16 %v6634_v7, %v6633_v48  ;;  %v9442_v41 = vld [vmem:[#allocation34_spill] sm:$0xff]  ;;  %v6654_v7 = vld [vmem:[#allocation20 + $0xc8] sm:$0xff] }
 0x51e   :  { %8038 = vmatprep.subr.bf16.mxu0 %v8037_v2  ;;  %v2490_v6 = vadd.f32 %v9442_v41, %v1148_v39  ;;  %v8041_v29 = vpack.c.bf16 %v6652_v57, %v6651_v5  ;;  %v6638_v57 = vld [vmem:[#allocation20 + $0x48] sm:$0xff] }
 0x51f   :  { %9440 = vst [vmem:[#allocation33_spill] sm:$0xff] %v9193_v21  ;;  %9441 = vst [vmem:[#allocation32_spill] sm:$0xff] %v9195_v16  ;;  %8040 = vmatpush3.bf16.msra.mxu0 %v8039_v8  ;;  %v2492_v11 = vadd.f32 %v9444_v4, %v1152_v13  ;;  %v9448_v8 = vld [vmem:[#allocation70_spill] sm:$0xff]  ;;  %v8045_v13 = vpack.c.bf16 %v6654_v7, %v6653_v15  ;;  %v9449_v41 = vld [vmem:[#allocation72_spill] sm:$0xff]  ;;  %v1176_v15 = vrot.slane %v9197_v36, %v9040_v61 }
 0x520   :  { %8042 = vmatprep.subr.bf16.mxu0 %v8041_v29  ;;  %v6656_v29 = vld [vmem:[#allocation20 + $0xd8] sm:$0xff] }
 0x521   :  { %v6640_v4 = vld [vmem:[#allocation20 + $0x58] sm:$0xff] }
 0x523   :  { %8044 = vmatpush3.bf16.msra.mxu0 %v8043_v33 }
 0x524   :  { %8046 = vmatprep.subr.bf16.mxu0 %v8045_v13  ;;  %v6643_v13 = vld [vmem:[#allocation20 + $0x70] sm:$0xff] }
 0x52b   :  { %v5344_v38 = vpop.f32.mrb[52].mxu1  ;;  %v5415_v54 = vpop.f32.mrb[50].mxu0 }
 0x52c   :  { %v9211_v30 = vmul.f32 %v5344_v38, %v2490_v6  ;;  %v6517_v35 = vmul.f32 %v5415_v54, %v2561_v44  ;;  %v5346_v43 = vpop.f32.mrb[53].mxu1  ;;  %v5417_v48 = vpop.f32.mrb[51].mxu0  ;;  %v8047_v6 = vpack.c.bf16 %v6638_v57, %v6637_v22  ;;  %v6655_v44 = vld [vmem:[#allocation20 + $0xd0] sm:$0xff]  ;;  %v1164_v38 = vrot.slane %v9197_v36, %v9031_v37  ;;  %v6644_v22 = vld [vmem:[#allocation20 + $0x78] sm:$0xff] }
 0x52d   :  { %v9213_v2 = vmul.f32 %v5346_v43, %v2492_v11  ;;  %v6518_v39 = vmul.f32 %v5417_v48, %v2563_v12  ;;  %v8049_v34 = vpack.c.bf16 %v6656_v29, %v6655_v44  ;;  %v8051_v11 = vpack.c.bf16 %v6640_v4, %v6639_v50  ;;  %v6658_v12 = vld [vmem:[#allocation20 + $0xe8] sm:$0xff]  ;;  %v6659_v48 = vld [vmem:[#allocation20 + $0xf0] sm:$0xff] }
 0x52e   :  { %9446 = vst [vmem:[#allocation35_spill] sm:$0xff] %v9211_v30  ;;  %v9216_v5 = vadd.f32 %v6517_v35, %v9448_v8  ;;  %8048 = vmatpush3.bf16.msra.mxu0 %v8047_v6  ;;  %v1172_v54 = vrot.slane %v9197_v36, %v9034_v26  ;;  %v8053_v33 = vpack.c.bf16 %v6658_v12, %v6657_v0  ;;  %v6641_v35 = vld [vmem:[#allocation20 + $0x60] sm:$0xff]  ;;  %v6642_v43 = vld [vmem:[#allocation20 + $0x68] sm:$0xff]  ;;  %v6660_v8 = vld [vmem:[#allocation20 + $0xf8] sm:$0xff] }
 0x52f   :  { %9447 = vst [vmem:[#allocation34_spill] sm:$0xff] %v9213_v2  ;;  %v9219_v23 = vadd.f32 %v6518_v39, %v9449_v41  ;;  %8050 = vmatprep.subr.bf16.mxu0 %v8049_v34  ;;  %v1168_v39 = vrot.slane %v9197_v36, %v9037_v59  ;;  %v8055_v7 = vpack.c.bf16 %v6642_v43, %v6641_v35  ;;  %v9450_v6 = vld [vmem:[#allocation38_spill] sm:$0xff]  ;;  %v9451_v29 = vld [vmem:[#allocation41_spill] sm:$0xff]  ;;  %v9452_v50 = vld [vmem:[#allocation40_spill] sm:$0xff] }
 0x530   :  { %v8057_v57 = vpack.c.bf16 %v6660_v8, %v6659_v48  ;;  %v8059_v41 = vpack.c.bf16 %v6644_v22, %v6643_v13  ;;  %v2632_v44 = vadd.f32 %v9450_v6, %v1164_v38  ;;  %v2703_v34 = vadd.f32 %v9451_v29, %v1172_v54  ;;  %v9455_v8 = vld [vmem:[#allocation45_spill] sm:$0xff]  ;;  %v9457_v22 = vld [vmem:[#allocation47_spill] sm:$0xff] }
 0x531   :  { %v2634_v4 = vadd.f32 %v9452_v50, %v1168_v39 }
 0x532   :  { %8052 = vmatpush3.bf16.msra.mxu0 %v8051_v11  ;;  %v9453_v11 = vld [vmem:[#allocation43_spill] sm:$0xff] }
 0x533   :  { %8054 = vmatprep.subr.bf16.mxu0 %v8053_v33  ;;  %v2705_v0 = vadd.f32 %v9453_v11, %v1176_v15  ;;  %v1012_v15 = vld [vmem:[#allocation16 + $0x28] sm:$0xff] }
 0x536   :  { %8056 = vmatpush3.bf16.msra.mxu0 %v8055_v7  ;;  %v1188_v7 = vrot.slane %v1012_v15, %v9005_v28 }
 0x537   :  { %8058 = vmatprep.subr.bf16.mxu0 %v8057_v57 }
 0x538   :  { %v2845_v13 = vadd.f32 %v9455_v8, %v1188_v7  ;;  %v9458_v7 = vld [vmem:[#allocation46_spill] sm:$0xff] }
 0x53a   :  { %8060 = vmatpush3.bf16.msra.mxu0 %v8059_v41 }
 0x53b   :  { %v5486_v12 = vpop.f32.mrb[54].mxu1  ;;  %v5557_v2 = vpop.f32.mrb[52].mxu0 }
 0x53c   :  { %v6519_v30 = vmul.f32 %v5486_v12, %v2632_v44  ;;  %v6521_v35 = vmul.f32 %v5557_v2, %v2703_v34  ;;  %v5488_v43 = vpop.f32.mrb[55].mxu1  ;;  %v5559_v16 = vpop.f32.mrb[53].mxu0  ;;  %v1180_v2 = vrot.slane %v9197_v36, %v9069_v62 }
 0x53d   :  { %v6520_v21 = vmul.f32 %v5488_v43, %v2634_v4  ;;  %v6522_v33 = vmul.f32 %v5559_v16, %v2705_v0  ;;  %v1184_v16 = vrot.slane %v9197_v36, %v9072_v18  ;;  %v1204_v43 = vrot.slane %v1012_v15, %v9034_v26 }
 0x53e   :  { %v9234_v48 = vadd.f32 %v6519_v30, %v9060_v9  ;;  %v9237_v38 = vadd.f32 %v6521_v35, %v9062_v17  ;;  %v1192_v9 = vrot.slane %v1012_v15, %v9008_v40  ;;  %v9454_v30 = vld [vmem:[#allocation42_spill] sm:$0xff]  ;;  %v1196_v35 = vrot.slane %v1012_v15, %v9031_v37 }
 0x53f   :  { %v9240_v54 = vadd.f32 %v6520_v21, %v9064_v27  ;;  %v9243_v39 = vadd.f32 %v6522_v33, %v9066_v25  ;;  %v2774_v17 = vadd.f32 %v9454_v30, %v1180_v2  ;;  %v9456_v27 = vld [vmem:[#allocation44_spill] sm:$0xff]  ;;  %v1200_v33 = vrot.slane %v1012_v15, %v9037_v59 }
 0x540   :  { %v2776_v21 = vadd.f32 %v9456_v27, %v1184_v16  ;;  %v2847_v25 = vadd.f32 %v9457_v22, %v1192_v9  ;;  %v1208_v2 = vrot.slane %v1012_v15, %v9040_v61  ;;  %v9459_v16 = vld [vmem:[#allocation49_spill] sm:$0xff] }
 0x541   :  { %v2987_v9 = vadd.f32 %v9459_v16, %v1204_v43 }
 0x54b   :  { %v5628_v57 = vpop.f32.mrb[56].mxu1  ;;  %v5699_v41 = vpop.f32.mrb[54].mxu0 }
 0x54c   :  { %v6523_v6 = vmul.f32 %v5628_v57, %v2774_v17  ;;  %v6525_v44 = vmul.f32 %v5699_v41, %v2845_v13  ;;  %v5630_v29 = vpop.f32.mrb[57].mxu1  ;;  %v5701_v34 = vpop.f32.mrb[55].mxu0  ;;  %v9461_v17 = vld [vmem:[#allocation51_spill] sm:$0xff] }
 0x54d   :  { %v6524_v50 = vmul.f32 %v5630_v29, %v2776_v21  ;;  %v6526_v4 = vmul.f32 %v5701_v34, %v2847_v25  ;;  %v1013_v34 = vld [vmem:[#allocation16 + $0x30] sm:$0xff] }
 0x54e   :  { %v9256_v36 = vadd.f32 %v6523_v6, %v9093_v49  ;;  %v9259_v11 = vadd.f32 %v6525_v44, %v9095_v63  ;;  %v2916_v49 = vadd.f32 %v9458_v7, %v1196_v35  ;;  %v9460_v63 = vld [vmem:[#allocation48_spill] sm:$0xff]  ;;  %v1216_v35 = vrot.slane %v1012_v15, %v9072_v18 }
 0x54f   :  { %v9262_v0 = vadd.f32 %v6524_v50, %v9097_v19  ;;  %v9265_v12 = vadd.f32 %v6526_v4, %v9099_v3  ;;  %v2918_v30 = vadd.f32 %v9460_v63, %v1200_v33  ;;  %v2989_v19 = vadd.f32 %v9461_v17, %v1208_v2  ;;  %v9463_v2 = vld [vmem:[#allocation53_spill] sm:$0xff]  ;;  %v9464_v7 = vld [vmem:[#allocation52_spill] sm:$0xff] }
 0x550   :  { %v1212_v50 = vrot.slane %v1012_v15, %v9069_v62  ;;  %v1220_v4 = vrot.slane %v1013_v34, %v9005_v28  ;;  %v1224_v43 = vrot.slane %v1013_v34, %v9008_v40 }
 0x55b   :  { %v5770_v8 = vpop.f32.mrb[58].mxu1  ;;  %v5841_v13 = vpop.f32.mrb[56].mxu0 }
 0x55c   :  { %v6527_v3 = vmul.f32 %v5770_v8, %v2916_v49  ;;  %v6529_v27 = vmul.f32 %v5841_v13, %v2987_v9  ;;  %v5772_v21 = vpop.f32.mrb[59].mxu1  ;;  %v5843_v22 = vpop.f32.mrb[57].mxu0  ;;  %v3060_v49 = vadd.f32 %v9464_v7, %v1216_v35  ;;  %v9466_v35 = vld [vmem:[#allocation54_spill] sm:$0xff] }
 0x55d   :  { %v6528_v25 = vmul.f32 %v5772_v21, %v2918_v30  ;;  %v6530_v57 = vmul.f32 %v5843_v22, %v2989_v19 }
 0x55e   :  { %v9276_v41 = vadd.f32 %v6527_v3, %v9115_v52  ;;  %v9279_v6 = vadd.f32 %v6529_v27, %v9117_v14  ;;  %v9462_v52 = vld [vmem:[#allocation50_spill] sm:$0xff]  ;;  %v3129_v14 = vadd.f32 %v9463_v2, %v1220_v4  ;;  %v1232_v4 = vrot.slane %v1013_v34, %v9037_v59  ;;  %v9469_v2 = vld [vmem:[#allocation59_spill] sm:$0xff] }
 0x55f   :  { %v9282_v44 = vadd.f32 %v6528_v25, %v9119_v47  ;;  %v9285_v29 = vadd.f32 %v6530_v57, %v9121_v31  ;;  %v3058_v33 = vadd.f32 %v9462_v52, %v1212_v50  ;;  %v9465_v47 = vld [vmem:[#allocation55_spill] sm:$0xff]  ;;  %v1228_v57 = vrot.slane %v1013_v34, %v9031_v37 }
 0x560   :  { %v3131_v16 = vadd.f32 %v9465_v47, %v1224_v43  ;;  %v1236_v50 = vrot.slane %v1013_v34, %v9034_v26 }
 0x561   :  { %v3200_v43 = vadd.f32 %v9466_v35, %v1228_v57  ;;  %v1244_v57 = vrot.slane %v1013_v34, %v9069_v62 }
 0x56b   :  { %v5912_v9 = vpop.f32.mrb[60].mxu1  ;;  %v5983_v31 = vpop.f32.mrb[58].mxu0 }
 0x56c   :  { %v6531_v63 = vmul.f32 %v5912_v9, %v3058_v33  ;;  %v6533_v30 = vmul.f32 %v5983_v31, %v3129_v14  ;;  %v5914_v17 = vpop.f32.mrb[61].mxu1  ;;  %v5985_v19 = vpop.f32.mrb[59].mxu0 }
 0x56d   :  { %v6532_v8 = vmul.f32 %v5914_v17, %v3060_v49  ;;  %v6534_v13 = vmul.f32 %v5985_v19, %v3131_v16 }
 0x56e   :  { %v9296_v15 = vadd.f32 %v6531_v63, %v9133_v46  ;;  %v6565_v3 = vadd.f32 %v6533_v30, %v9135_v10  ;;  %v1240_v46 = vrot.slane %v1013_v34, %v9040_v61  ;;  %v9467_v10 = vld [vmem:[#allocation57_spill] sm:$0xff] }
 0x56f   :  { %v9300_v27 = vadd.f32 %v6532_v8, %v9137_v58  ;;  %v6566_v21 = vadd.f32 %v6534_v13, %v9139_v1  ;;  %v3271_v52 = vadd.f32 %v9467_v10, %v1236_v50  ;;  %v9468_v58 = vld [vmem:[#allocation56_spill] sm:$0xff] }
 0x570   :  { %v6581_v22 = vadd.f32 %v6565_v3, %v9216_v5  ;;  %v3202_v33 = vadd.f32 %v9468_v58, %v1232_v4  ;;  %v3273_v1 = vadd.f32 %v9469_v2, %v1240_v46 }
 0x571   :  { %v6582_v25 = vadd.f32 %v6566_v21, %v9219_v23  ;;  %v1014_v21 = vld [vmem:[#allocation16 + $0x38] sm:$0xff] }
 0x572   :  { %v1252_v50 = vrot.slane %v1014_v21, %v9005_v28 }
 0x57b   :  { %v6054_v14 = vpop.f32.mrb[62].mxu1  ;;  %v6125_v5 = vpop.f32.mrb[60].mxu0 }
 0x57c   :  { %v6535_v7 = vmul.f32 %v6054_v14, %v3200_v43  ;;  %v6537_v23 = vmul.f32 %v6125_v5, %v3271_v52  ;;  %v6056_v49 = vpop.f32.mrb[63].mxu1  ;;  %v6127_v47 = vpop.f32.mrb[61].mxu0 }
 0x57d   :  { %v6536_v16 = vmul.f32 %v6056_v49, %v3202_v33  ;;  %v6538_v9 = vmul.f32 %v6127_v47, %v3273_v1 }
 0x57e   :  { %v6567_v31 = vadd.f32 %v6535_v7, %v9149_v32  ;;  %v6569_v63 = vadd.f32 %v6537_v23, %v9151_v55  ;;  %v1248_v32 = vrot.slane %v1013_v34, %v9072_v18  ;;  %v1256_v55 = vrot.slane %v1014_v21, %v9008_v40 }
 0x57f   :  { %v6568_v30 = vadd.f32 %v6536_v16, %v9153_v45  ;;  %v6570_v17 = vadd.f32 %v6538_v9, %v9155_v56  ;;  %v9470_v45 = vld [vmem:[#allocation58_spill] sm:$0xff]  ;;  %v9471_v56 = vld [vmem:[#allocation61_spill] sm:$0xff] }
 0x580   :  { %v6583_v19 = vadd.f32 %v6567_v31, %v9234_v48  ;;  %v6585_v8 = vadd.f32 %v6569_v63, %v9237_v38  ;;  %v3342_v4 = vadd.f32 %v9470_v45, %v1244_v57  ;;  %v3413_v46 = vadd.f32 %v9471_v56, %v1252_v50  ;;  %v9472_v48 = vld [vmem:[#allocation60_spill] sm:$0xff]  ;;  %v9473_v38 = vld [vmem:[#allocation63_spill] sm:$0xff] }
 0x581   :  { %v6584_v13 = vadd.f32 %v6568_v30, %v9240_v54  ;;  %v6586_v3 = vadd.f32 %v6570_v17, %v9243_v39  ;;  %v3344_v35 = vadd.f32 %v9472_v48, %v1248_v32  ;;  %v3415_v43 = vadd.f32 %v9473_v38, %v1256_v55  ;;  %v9474_v30 = vld [vmem:[#allocation62_spill] sm:$0xff]  ;;  %v9475_v17 = vld [vmem:[#allocation65_spill] sm:$0xff]  ;;  %v9476_v57 = vld [vmem:[#allocation64_spill] sm:$0xff] }
 0x582   :  { %v1260_v63 = vrot.slane %v1014_v21, %v9031_v37  ;;  %v9477_v50 = vld [vmem:[#allocation67_spill] sm:$0xff] }
 0x58b   :  { %v6196_v54 = vpop.f32.mrb[64].mxu1  ;;  %v6267_v10 = vpop.f32.mrb[62].mxu0 }
 0x58c   :  { %v6539_v39 = vmul.f32 %v6196_v54, %v3342_v4  ;;  %v6541_v52 = vmul.f32 %v6267_v10, %v3413_v46  ;;  %v6198_v58 = vpop.f32.mrb[65].mxu1  ;;  %v6269_v33 = vpop.f32.mrb[63].mxu0  ;;  %v9478_v4 = vld [vmem:[#allocation33_spill] sm:$0xff]  ;;  %v9479_v46 = vld [vmem:[#allocation32_spill] sm:$0xff] }
 0x58d   :  { %v6540_v2 = vmul.f32 %v6198_v58, %v3344_v35  ;;  %v6542_v1 = vmul.f32 %v6269_v33, %v3415_v43 }
 0x58e   :  { %v6571_v34 = vadd.f32 %v6539_v39, %v9169_v42  ;;  %v6573_v14 = vadd.f32 %v6541_v52, %v9171_v53  ;;  %v1268_v42 = vrot.slane %v1014_v21, %v9034_v26  ;;  %v1264_v53 = vrot.slane %v1014_v21, %v9037_v59 }
 0x58f   :  { %v6572_v5 = vadd.f32 %v6540_v2, %v9173_v60  ;;  %v6574_v7 = vadd.f32 %v6542_v1, %v9175_v51  ;;  %v1272_v60 = vrot.slane %v1014_v21, %v9040_v61  ;;  %v3484_v51 = vadd.f32 %v9474_v30, %v1260_v63  ;;  %v9480_v1 = vld [vmem:[#allocation66_spill] sm:$0xff] }
 0x590   :  { %v6587_v23 = vadd.f32 %v6571_v34, %v9256_v36  ;;  %v6589_v49 = vadd.f32 %v6573_v14, %v9259_v11  ;;  %v3555_v36 = vadd.f32 %v9475_v17, %v1268_v42  ;;  %v3486_v11 = vadd.f32 %v9476_v57, %v1264_v53  ;;  %v9481_v14 = vld [vmem:[#allocation68_spill] sm:$0xff]  ;;  %v9484_v53 = vld [vmem:[#allocation69_spill] sm:$0xff]  ;;  %v9485_v17 = vld [vmem:[#allocation71_spill] sm:$0xff] }
 0x591   :  { %v6588_v47 = vadd.f32 %v6572_v5, %v9262_v0  ;;  %v6590_v16 = vadd.f32 %v6574_v7, %v9265_v12  ;;  %v3557_v0 = vadd.f32 %v9477_v50, %v1272_v60  ;;  %v1280_v2 = vrot.slane %v1014_v21, %v9072_v18 }
 0x592   :  { %v6597_v9 = vadd.f32 %v6589_v49, %v6581_v22  ;;  %v9482_v49 = vld [vmem:[#allocation35_spill] sm:$0xff] }
 0x593   :  { %v6598_v31 = vadd.f32 %v6590_v16, %v6582_v25 }
 0x59b   :  { %v6338_v32 = vpop.f32.mrb[66].mxu1  ;;  %v6409_v12 = vpop.f32.mrb[64].mxu0 }
 0x59c   :  { %v6543_v22 = vmul.f32 %v6338_v32, %v3484_v51  ;;  %v6545_v25 = vmul.f32 %v6409_v12, %v3555_v36  ;;  %v6340_v55 = vpop.f32.mrb[67].mxu1  ;;  %v6411_v37 = vpop.f32.mrb[65].mxu0  ;;  %v6833_v12 = vld [vmem:[#allocation22] ss:$0 sm:$0xff] }
 0x59d   :  { %v6544_v45 = vmul.f32 %v6340_v55, %v3486_v11  ;;  %v6546_v26 = vmul.f32 %v6411_v37, %v3557_v0 }
 0x59e   :  { %v6575_v59 = vadd.f32 %v6543_v22, %v9189_v24  ;;  %v6577_v61 = vadd.f32 %v6545_v25, %v9191_v20  ;;  %v1276_v20 = vrot.slane %v1014_v21, %v9069_v62 }
 0x59f   :  { %v6576_v56 = vadd.f32 %v6544_v45, %v9478_v4  ;;  %v6578_v48 = vadd.f32 %v6546_v26, %v9479_v46 }
 0x5a0   :  { %v6591_v35 = vadd.f32 %v6575_v59, %v9276_v41  ;;  %v6593_v38 = vadd.f32 %v6577_v61, %v9279_v6  ;;  %v3626_v34 = vadd.f32 %v9480_v1, %v1276_v20  ;;  %v3628_v41 = vadd.f32 %v9481_v14, %v1280_v2 }
 0x5a1   :  { %v6592_v43 = vadd.f32 %v6576_v56, %v9282_v44  ;;  %v6594_v54 = vadd.f32 %v6578_v48, %v9285_v29 }
 0x5a2   :  { %v6599_v10 = vadd.f32 %v6591_v35, %v6583_v19  ;;  %v6601_v39 = vadd.f32 %v6593_v38, %v6585_v8  ;;  %v1015_v19 = vld [vmem:[#allocation16 + $0x40] sm:$0x3] }
 0x5a3   :  { %v6600_v52 = vadd.f32 %v6592_v43, %v6584_v13  ;;  %v6602_v58 = vadd.f32 %v6594_v54, %v6586_v3  ;;  %v9483_v8 = vld [vmem:[#allocation34_spill] sm:$0xff]  ;;  %v1284_v62 = vrot.slane %v1015_v19, %v9005_v28  ;;  %v1288_v21 = vrot.slane %v1015_v19, %v9008_v40 }
 0x5a4   :  { %v6605_v33 = vadd.f32 %v6601_v39, %v6597_v9 }
 0x5a5   :  { %v6606_v24 = vadd.f32 %v6602_v58, %v6598_v31  ;;  %v6613_v31 = vld [vmem:[#allocation19] sm:$0x3]  ;;  %v3697_v60 = vadd.f32 %v9484_v53, %v1284_v62  ;;  %v3699_v36 = vadd.f32 %v9485_v17, %v1288_v21 }
 0x5a6   :  { %v6618_v51 = vrot.slane %v6613_v31, %v9005_v28 }
 0x5ab   :  { %v6480_v5 = vpop.f32.mrb[68].mxu1 }
 0x5ac   :  { %v6547_v6 = vmul.f32 %v6480_v5, %v3626_v34  ;;  %v6482_v7 = vpop.f32.mrb[69].mxu1 }
 0x5ad   :  { %v6548_v44 = vmul.f32 %v6482_v7, %v3628_v41 }
 0x5ae   :  { %v6579_v29 = vadd.f32 %v6547_v6, %v9482_v49 }
 0x5af   :  { %v6580_v13 = vadd.f32 %v6548_v44, %v9483_v8 }
 0x5b0   :  { %v6595_v3 = vadd.f32 %v6579_v29, %v9296_v15  ;;  %v6622_v15 = vrot.slane %v6613_v31, %v9008_v40 }
 0x5b1   :  { %v6596_v16 = vadd.f32 %v6580_v13, %v9300_v27 }
 0x5b2   :  { %v6603_v18 = vadd.f32 %v6595_v3, %v6587_v23 }
 0x5b3   :  { %v6604_v9 = vadd.f32 %v6596_v16, %v6588_v47 }
 0x5b4   :  { %v6607_v63 = vadd.f32 %v6603_v18, %v6599_v10 }
 0x5b5   :  { %v6608_v42 = vadd.f32 %v6604_v9, %v6600_v52 }
 0x5b6   :  { %v6609_v30 = vadd.f32 %v6607_v63, %v6605_v33 }
 0x5b7   :  { %v6610_v57 = vadd.f32 %v6608_v42, %v6606_v24 }
 0x5b8   :  { %v6611_v27 = vadd.f32 %v6609_v30, %v3697_v60 }
 0x5b9   :  { %v6612_v11 = vadd.f32 %v6610_v57, %v3699_v36 }
 0x5ba   :  { %v6625_v50 = vadd.f32 %v6618_v51, %v6611_v27 }
 0x5bb   :  { %v6626_v23 = vadd.f32 %v6622_v15, %v6612_v11 }
 0x5bc   :  { %v6627_v32 = vmax.f32 %v6625_v50, 0.0 }
 0x5bd   :  { %v6628_v0 = vmax.f32 %v6626_v23, 0.0 }
 0x5bf   :  { %6732 = vmatprep.mubr.f32.mxu0 %v6628_v0 }
 0x5c0   :  { %6733 = vmatmul.mubr.f32.vlgmr.msra.gmra.mrb[66].mxu0 %v6627_v32 }
 0x693   :  { %v6893_v47 = vpop.f32.mrb[66].mxu0 }
 0x694   :  { %v6894_v22 = vpop.f32.mrb[67].mxu0 }
 0x695   :  { %v6895_v25 = vadd.f32 %v6894_v22, %v6893_v47 }
 0x697   :  { %v6735_v28 = vadd.f32 %v6895_v25, %v6833_v12 }
 0x699   :  { %v6738_v55 = vmax.f32 %v6735_v28, 0.0 }
 0x69b   :  { %6739 = vst [vmem:[#allocation23] sm:$0xf] %v6738_v55 }
 0x69c   :  { %8385 = shalt.err (!%p8382_p10)
}
 0x69d   :  { %s8386_s2 = scalar_lea.hbm %s9392_s13, 64 }
 0x69e   :  { %p8387_p11 = scmp.ne.s32.totalorder %s9392_s13, %s8386_s2  ;;  %p8390_p12 = scmp.lt.u32.totalorder %s8386_s2, %s9392_s13 }
 0x6a0   :  { %p8392_p13 = pnand %p8390_p12, %p8387_p11 }
 0x6a2   :  { %8395 = shalt.err (!%p8392_p13)
}
 0x6a3   :  { %6749 = dma.vmem_to_hbm [thread:$0]  %s6747_s25, 64, %s9392_s13, [#allocation4]  }
 0x6a4   :  { %8410 = dma.done.wait [#allocation4], 64  }
 0x6a5   :  { %8411 = vsyncadd [#allocation4], 4294967232 }
 0x6a6   :  { %6753 = vsyncpa [#allocation3], 1 }
 0x6a7   :  { %6754 = vsyncpa [#allocation6], 1 }
 0x6a8   :  { %6755 = vsyncpa [#allocation9], 1 }
 0x6a9   :  { %6756 = vsyncpa [#allocation12], 1 }
 0x6aa   :  { %6757 = vsyncpa [#allocation15], 1 }
 0x6ab   :  { %6758 = vsyncpa [#allocation18], 1 }
 0x6ac   :  { %6759 = vsyncpa [#allocation21], 1 }
 0x6ad   :  { %6760 = vsyncpa [#allocation4], 1 }

</bundles_post_ra>
